<compile_context>
chip_gen: v7x
topology: tpu7x:2x2x1
jax: 0.10.0
libtpu: 0.0.40
codegen_flags: <defaults>
</compile_context>

<pallas_src>
import math
import numpy as np
import jax
import jax.numpy as jnp
from jax import lax
from jax.experimental import pallas as pl
from jax.experimental.pallas import tpu as pltpu


def _round_up(n, m):
    return ((n + m - 1) // m) * m


# ---------------------------------------------------------------------------
# banded x-derivative matrices (exactly reproduce F.conv2d zero padding along x)
# ---------------------------------------------------------------------------
def _x_band_matrices(Xp, nx_valid, dx):
    c1, c2 = 1.0 / 24.0 / dx, 9.0 / 8.0 / dx
    dxf = np.zeros((Xp, Xp), np.float32)   # kernelx2D   : taps x-1, x, x+1, x+2
    dxb = np.zeros((Xp, Xp), np.float32)   # kernelx2D_U : taps x-2, x-1, x, x+1
    for x in range(nx_valid):
        for off, cc in ((-1, c1), (0, -c2), (1, c2), (2, -c1)):
            j = x + off
            if 0 <= j < nx_valid:
                dxf[j, x] = cc
        for off, cc in ((-2, c1), (-1, -c2), (0, c2), (1, -c1)):
            j = x + off
            if 0 <= j < nx_valid:
                dxb[j, x] = cc
    return dxf, dxb


# ---------------------------------------------------------------------------
# Pallas kernel: one full (Zp, Xp) slab per grid step; grid = num_vels * num_shots
#   state layout (13): vx_x, vx_z, vz_x, vz_z, txx, tzz, txz,
#                      txx_x, txx_z, tzz_x, tzz_z, txz_x, txz_z
#   param  layout (9): dax, daz, dt*bx, dt*bz, dt*n1x, dt*n2x, dt*n1z, dt*n2z, dt*mu
# ---------------------------------------------------------------------------
def _make_step_kernel(num_shots, free_surface, dz):
    c1z = 1.0 / 24.0 / dz
    c2z = 9.0 / 8.0 / dz
    # taps as (offset, coefficient): out[z] = sum_k coeff_k * in[z + off_k]
    fwd_taps = ((-1, c1z), (0, -c2z), (1, c2z), (2, -c1z))   # kernelz2D
    bwd_taps = ((-2, c1z), (-1, -c2z), (0, c2z), (1, -c1z))  # kernelz2D_U

    def _dz(a, taps):
        # z-derivative as sublane shifts (XLU) + FMAs (VPU).  Correctness relies on the
        # padded rows (>= nz_pad) of `a` being zero, which the packed-state layout
        # guarantees (Zp >= nz_pad + 2 and pads stay zero across steps).
        n = a.shape[0]
        out = None
        for off, cc in taps:
            term = cc * (a if off == 0 else pltpu.roll(a, (-off) % n, 0))
            out = term if out is None else out + term
        return out

    def kernel(fs_ref, sz_ref, sx_ref,                 # scalar prefetch (SMEM)
               st_ref, prm_ref, dxf_ref, dxb_ref,      # inputs
               stn_ref, v_ref):                        # outputs
        i = pl.program_id(0)
        b = lax.div(i, jnp.int32(num_shots))           # velocity-model (batch) index
        c = lax.rem(i, jnp.int32(num_shots))           # shot index
        Zt = st_ref.shape[1]
        Xt = st_ref.shape[2]

        # ---- fused single-point source injection into txx / tzz ----
        amp = fs_ref[b]
        zi = sz_ref[c]
        xi = sx_ref[c]
        zmask = lax.broadcasted_iota(jnp.int32, (Zt, 1), 0) == zi
        xmask = lax.broadcasted_iota(jnp.int32, (1, Xt), 1) == xi
        at_src = jnp.logical_and(zmask, xmask)          # broadcasts to (Zt, Xt)

        txx = st_ref[4]
        tzz = st_ref[5]
        txz = st_ref[6]
        if free_surface:
            txx = jnp.where(at_src, amp, txx)
            tzz = jnp.where(at_src, amp, tzz)
        else:
            inj = jnp.where(at_src, amp, jnp.float32(0.0))
            txx = txx + inj
            tzz = tzz + inj

        dxf = dxf_ref[...]
        dxb = dxb_ref[...]
        dax = prm_ref[0]      # 1 - dt*ax
        daz = prm_ref[1]      # 1 - dt*az
        bx_dt = prm_ref[2]    # dt * bx
        bz_dt = prm_ref[3]    # dt * bz

        # ---- phase 1: velocity update (x-derivs on MXU, z-derivs on XLU/VPU) ----
        var_txx_x = jnp.dot(txx, dxf, preferred_element_type=jnp.float32)
        var_txz_x = jnp.dot(txz, dxb, preferred_element_type=jnp.float32)
        var_txz_z = _dz(txz, bwd_taps)
        var_tzz_z = _dz(tzz, fwd_taps)

        vx_x = dax * st_ref[0] + bx_dt * var_txx_x
        vx_z = daz * st_ref[1] + bx_dt * var_txz_z
        vz_x = dax * st_ref[2] + bz_dt * var_txz_x
        vz_z = daz * st_ref[3] + bz_dt * var_tzz_z
        vx = vx_x + vx_z
        vz = vz_x + vz_z

        v_ref[0] = vx
        v_ref[1] = vz
        stn_ref[0] = vx_x
        stn_ref[1] = vx_z
        stn_ref[2] = vz_x
        stn_ref[3] = vz_z

        # ---- phase 2: stress update (stress coefficients loaded only now) ----
        n1x_dt = prm_ref[4]
        n2x_dt = prm_ref[5]
        n1z_dt = prm_ref[6]
        n2z_dt = prm_ref[7]
        mu_dt = prm_ref[8]

        var_vx_x = jnp.dot(vx, dxb, preferred_element_type=jnp.float32)
        var_vz_x = jnp.dot(vz, dxf, preferred_element_type=jnp.float32)
        var_vx_z = _dz(vx, fwd_taps)
        var_vz_z = _dz(vz, bwd_taps)

        txx_x = dax * st_ref[7] + n1x_dt * var_vx_x
        txx_z = daz * st_ref[8] + n2x_dt * var_vz_z
        tzz_x = dax * st_ref[9] + n1z_dt * var_vx_x
        tzz_z = daz * st_ref[10] + n2z_dt * var_vz_z
        txz_x = dax * st_ref[11] + mu_dt * var_vx_z
        txz_z = daz * st_ref[12] + mu_dt * var_vz_x

        stn_ref[4] = txx_x + txx_z
        stn_ref[5] = tzz_x + tzz_z
        stn_ref[6] = txz_x + txz_z
        stn_ref[7] = txx_x
        stn_ref[8] = txx_z
        stn_ref[9] = tzz_x
        stn_ref[10] = tzz_z
        stn_ref[11] = txz_x
        stn_ref[12] = txz_z

    return kernel


# ---------------------------------------------------------------------------
# module port
# ---------------------------------------------------------------------------
class Propagator2DPallas:
    def __init__(self, nz, nx, dz, dt, npad=0, order=2, free_surface=True):
        assert order == 2, "only order=2 (the default PyTorch path) is implemented"
        self.nz, self.nx, self.npad = nz, nx, npad
        self.dz, self.dx, self.dt = float(dz), float(dz), float(dt)  # dx == dz (as in ref)
        self.free_surface = free_surface
        self.nx_pad = nx + 2 * npad
        self.nz_pad = nz + npad if free_surface else nz + 2 * npad
        self.vmax = 4000

        # Lane/sublane-aligned persistent slab.  +2 rows of guaranteed-zero padding so the
        # roll-based 4-tap z-stencil reproduces conv2d zero padding without masking.
        self.Zp = _round_up(self.nz_pad + 2, 8)
        self.Xp = _round_up(self.nx_pad, 128)
        assert self.Zp - self.nz_pad >= 2

        ax, az = self._pml_bc_mask()
        self.ax = jnp.asarray(ax)[None, None]   # [1,1,Z,X] float32 (returned like PyTorch)
        self.az = jnp.asarray(az)[None, None]

        # pre-folded PML decay factors, zero-padded to the aligned slab (pad rows/cols = 0)
        dax = np.zeros((self.Zp, self.Xp), np.float32)
        daz = np.zeros((self.Zp, self.Xp), np.float32)
        dax[: self.nz_pad, : self.nx_pad] = (1.0 - self.dt * ax).astype(np.float32)
        daz[: self.nz_pad, : self.nx_pad] = (1.0 - self.dt * az).astype(np.float32)
        self._dax = jnp.asarray(dax)
        self._daz = jnp.asarray(daz)

        dxf, dxb = _x_band_matrices(self.Xp, self.nx_pad, self.dx)
        self._dxf = jnp.asarray(dxf)
        self._dxb = jnp.asarray(dxb)

        self._step_cache = {}
        self._vmem_cap_bytes = self._query_vmem_cap()

    # ----- generation-aware VMEM cap -----
    @staticmethod
    def _query_vmem_cap():
        total = None
        try:
            info = pltpu.get_tpu_info()
            total = int(getattr(info, "vmem_capacity_bytes"))
        except Exception:
            total = None
        if not total or total <= 0:
            total = 64 * 1024 * 1024  # conservative default (v7x has the smallest VMEM)
        # leave headroom for Mosaic internal scratch
        return max(total - 8 * 1024 * 1024, 32 * 1024 * 1024)

    # ----- PML mask (same loops as PyTorch PML_bcMask) -----
    def _pml_bc_mask(self):
        Z, X = self.nz_pad, self.nx_pad
        ax = np.ones((Z, X), dtype=np.float64)
        az = np.ones((Z, X), dtype=np.float64)
        if self.npad > 0:
            R = 1e-5
            coef = -math.log(R) * 3 * self.vmax / (2 * (self.dx * self.npad) ** 2)
            for ind_x in range(0, self.npad):
                ax[:, ind_x] = coef * (self.npad - ind_x - 1) ** 2
            for ind_x in range(self.nx + self.npad, self.nx + 2 * self.npad):
                ax[:, ind_x] = coef * (ind_x - self.nx - self.npad) ** 2
            if self.free_surface:
                for ind_z in range(self.nz, self.nz + self.npad):
                    az[ind_z, :] = coef * (ind_z - self.nz) ** 2
            else:
                for ind_z in range(0, self.npad):
                    az[ind_z, :] = coef * (self.npad - ind_z - 1) ** 2
                for ind_z in range(self.nz + self.npad, self.nz + 2 * self.npad):
                    az[ind_z, :] = coef * (ind_z - self.nz - self.npad) ** 2
        return ax.astype(np.float32), az.astype(np.float32)

    # ----- replicate ___tensor_pad -----
    def _tensor_pad(self, v):
        npad = self.npad
        if not self.free_surface:
            v = jnp.concatenate([jnp.repeat(v[:, :, :1, :], npad, axis=2), v], axis=2)
        v = jnp.concatenate([v, jnp.repeat(v[:, :, -1:, :], npad, axis=2)], axis=2)
        left = jnp.repeat(v[:, :, :, :1], npad, axis=3)
        right = jnp.repeat(v[:, :, :, -1:], npad, axis=3)
        return jnp.concatenate([left, v, right], axis=3)

    # ----- replicate __parameter_den_to_Lame -----
    def _lame(self, vp, vs, rho):
        lam = vp ** 2 * rho - 2 * vs ** 2 * rho
        mu = vs ** 2 * rho
        bx = jnp.concatenate([2.0 / rho[:, :, :1, :], 1.0 / rho[:, :, 1:, :]], axis=2)
        bz = 1.0 / rho
        n1x_first = (2 * mu * (lam + mu) / (lam + 2 * mu))[:, :, :1, :]
        n1x = jnp.concatenate([n1x_first, (lam + 2 * mu)[:, :, 1:, :]], axis=2)
        zero_row = jnp.zeros((1, 1, 1, mu.shape[3]), dtype=mu.dtype)
        n2x = jnp.concatenate([zero_row, lam[:, :, 1:, :]], axis=2)
        n1z = jnp.concatenate([zero_row, lam[:, :, 1:, :]], axis=2)
        n2z = jnp.concatenate([zero_row, (lam + 2 * mu)[:, :, 1:, :]], axis=2)
        return bx, bz, n1x, n2x, n1z, n2z, mu

    # ----- fold dt into the coefficient maps, pad, and stack into one (9, Zp, Xp) array -----
    def _pack_params(self, bx, bz, n1x, n2x, n1z, n2z, mu):
        dt = jnp.float32(self.dt)
        raw = [dt * p[0, 0] for p in (bx, bz, n1x, n2x, n1z, n2z, mu)]
        Z, X = self.nz_pad, self.nx_pad
        raw = [jnp.pad(p, ((0, self.Zp - Z), (0, self.Xp - X))) for p in raw]
        return jnp.stack([self._dax, self._daz] + raw, axis=0).astype(jnp.float32)

    def _material_maps(self, vp_noPad, vs_noPad, rho_noPad):
        vp_t = self._tensor_pad(vp_noPad.reshape(1, 1, self.nz, self.nx).astype(jnp.float32))
        vs_t = self._tensor_pad(vs_noPad.reshape(1, 1, self.nz, self.nx).astype(jnp.float32))
        rho_t = self._tensor_pad(rho_noPad.reshape(1, 1, self.nz, self.nx).astype(jnp.float32))
        bx, bz, n1x, n2x, n1z, n2z, mu = self._lame(vp_t, vs_t, rho_t)
        return vp_t, vs_t, rho_t, self._pack_params(bx, bz, n1x, n2x, n1z, n2z, mu)

    def prepare_params(self, vp_noPad, vs_noPad, rho_noPad):
        """Material / PML coefficient maps, packed once for a whole time loop."""
        return self._material_maps(vp_noPad, vs_noPad, rho_noPad)[3]

    # ----- persistent packed-state layout -----
    def pack_state(self, vx_x, vx_z, vz_x, vz_z, txx, tzz, txz,
                   txx_x, txx_z, tzz_x, tzz_z, txz_x, txz_z):
        """Pack the 13 state fields (each (B, C, nz_pad, nx_pad)) into the persistent
        (B*C, 13, Zp, Xp) layout used by step_packed.  Pad rows/cols are zero and stay
        zero across steps, so this should be done ONCE before a time loop."""
        fields = (vx_x, vx_z, vz_x, vz_z, txx, tzz, txz,
                  txx_x, txx_z, tzz_x, tzz_z, txz_x, txz_z)
        B, C, Z, X = fields[0].shape
        st = jnp.stack([f.reshape(B * C, Z, X).astype(jnp.float32) for f in fields], axis=1)
        return jnp.pad(st, ((0, 0), (0, 0), (0, self.Zp - Z), (0, self.Xp - X)))

    def step_packed(self, params, state, fs, src_z, src_x):
        """One propagation step on the persistent packed state.
        params: (9, Zp, Xp) from prepare_params(); state: (B*C, 13, Zp, Xp) from
        pack_state() or a previous step; fs: (B,) source amplitudes; src_z/src_x:
        length-C raw (un-padded-grid) source indices.
        Returns (next_state, v) where v is (B*C, 2, Zp, Xp) holding (vx, vz)."""
        fs_arr = jnp.asarray(fs, jnp.float32).reshape(-1)
        sz = jnp.asarray(src_z, jnp.int32).reshape(-1)
        sx = jnp.asarray(src_x, jnp.int32).reshape(-1) + self.npad
        if not self.free_surface:
            sz = sz + self.npad
        B = int(fs_arr.shape[0])
        C = int(sz.shape[0])
        assert state.shape == (B * C, 13, self.Zp, self.Xp)
        fn = self._get_step_fn(B, C)
        return fn(params, state, fs_arr, sz, sx)

    # ----- pallas_call construction (with Buffered(1) fallback) -----
    def _build_step_fn(self, B, C, single_buffer_consts):
        Zp, Xp = self.Zp, self.Xp
        BC = B * C
        kernel = _make_step_kernel(C, self.free_surface, self.dz)

        const_kw = {"pipeline_mode": pl.Buffered(1)} if single_buffer_consts else {}
        st_in_spec = pl.BlockSpec((None, 13, Zp, Xp), lambda i, *_: (i, 0, 0, 0))
        st_out_spec = pl.BlockSpec((None, 13, Zp, Xp), lambda i, *_: (i, 0, 0, 0))
        v_out_spec = pl.BlockSpec((None, 2, Zp, Xp), lambda i, *_: (i, 0, 0, 0))
        prm_spec = pl.BlockSpec((9, Zp, Xp), lambda i, *_: (0, 0, 0), **const_kw)
        band_spec = pl.BlockSpec((Xp, Xp), lambda i, *_: (0, 0), **const_kw)

        # true working set: double-buffered field streams + (single- or double-buffered)
        # grid-constant operands; generation-aware cap with headroom for compiler scratch.
        slab = Zp * Xp * 4
        const_bufs = 1 if single_buffer_consts else 2
        vmem_need = (13 + 13 + 2) * 2 * slab + const_bufs * (9 * slab + 2 * Xp * Xp * 4)
        vmem_limit = int(min(self._vmem_cap_bytes,
                             max(vmem_need + vmem_need // 4, 32 * 1024 * 1024)))

        call = pl.pallas_call(
            kernel,
            out_shape=(jax.ShapeDtypeStruct((BC, 13, Zp, Xp), jnp.float32),
                       jax.ShapeDtypeStruct((BC, 2, Zp, Xp), jnp.float32)),
            grid_spec=pltpu.PrefetchScalarGridSpec(
                num_scalar_prefetch=3,
                grid=(BC,),
                in_specs=[st_in_spec, prm_spec, band_spec, band_spec],
                out_specs=[st_out_spec, v_out_spec],
            ),
            compiler_params=pltpu.CompilerParams(
                dimension_semantics=("parallel",),
                vmem_limit_bytes=vmem_limit,
            ),
        )

        dxf, dxb = self._dxf, self._dxb

        def step(params, state, fs_arr, sz, sx):
            return call(fs_arr, sz, sx, state, params, dxf, dxb)

        return jax.jit(step)

    def _get_step_fn(self, B, C):
        key = (B, C)
        fn = self._step_cache.get(key)
        if fn is not None:
            return fn
        last_err = None
        for single_buffer_consts in (True, False):
            try:
                cand = self._build_step_fn(B, C, single_buffer_consts)
                # validate this variant (compile + run once); the compilation is cached so
                # the subsequent real call with identical shapes reuses it.
                d_state = jnp.zeros((B * C, 13, self.Zp, self.Xp), jnp.float32)
                d_prm = jnp.zeros((9, self.Zp, self.Xp), jnp.float32)
                d_fs = jnp.zeros((B,), jnp.float32)
                d_src = jnp.zeros((C,), jnp.int32)
                jax.block_until_ready(cand(d_prm, d_state, d_fs, d_src, d_src))
                self._step_cache[key] = cand
                return cand
            except Exception as e:   # pragma: no cover - fallback path
                last_err = e
        raise last_err

    # ----- PyTorch-compatible forward -----
    def forward(self, vp_noPad, vs_noPad, rho_noPad, segment_sources,
                vx, vz, vx_x, vx_z, vz_x, vz_z,
                txx, tzz, txz, txx_x, txx_z, tzz_x, tzz_z, txz_x, txz_z):
        vp_t, vs_t, rho_t, params = self._material_maps(vp_noPad, vs_noPad, rho_noPad)

        fs, src_zx, rec_zx = segment_sources
        B, C, Z, X = txx.shape

        # one-off pack into the persistent layout; for a time loop call pack_state()
        # once and iterate step_packed() directly (no per-step pad/stack/slice passes).
        state = self.pack_state(vx_x, vx_z, vz_x, vz_z, txx, tzz, txz,
                                txx_x, txx_z, tzz_x, tzz_z, txz_x, txz_z)
        new_state, v = self.step_packed(params, state, fs, src_zx[0], src_zx[1])

        v = v[:, :, :Z, :X].reshape(B, C, 2, Z, X)
        s = new_state[:, :, :Z, :X].reshape(B, C, 13, Z, X)
        vx_n, vz_n = v[:, :, 0], v[:, :, 1]
        (vx_x_n, vx_z_n, vz_x_n, vz_z_n, txx_n, tzz_n, txz_n,
         txx_x_n, txx_z_n, tzz_x_n, tzz_z_n, txz_x_n, txz_z_n) = \
            [s[:, :, k] for k in range(13)]

        # receiver gather (host glue).  PyTorch fancy indexing vx[0, :, zr, xr] puts the
        # advanced (receiver) axis in FRONT -> shape (num_receivers, num_shots).
        zr = jnp.asarray(rec_zx[0], dtype=jnp.int32)
        xr = jnp.asarray(rec_zx[1], dtype=jnp.int32) + self.npad - 1
        if not self.free_surface:
            zr = zr + self.npad - 1
        yt_pred_x = jnp.transpose(vx_n[0][:, zr, xr])
        yt_pred_z = jnp.transpose(vz_n[0][:, zr, xr])

        regularizer = jnp.zeros((1, 1), dtype=jnp.float32)

        return (vx_n, vz_n, vx_x_n, vx_z_n, vz_x_n, vz_z_n, txx_n, tzz_n, txz_n,
                txx_x_n, txx_z_n, tzz_x_n, tzz_z_n, txz_x_n, txz_z_n,
                yt_pred_x, yt_pred_z, regularizer, vp_t, vs_t, rho_t,
                self.ax, self.az)


# ---------------------------------------------------------------------------
# float64 NumPy re-implementation of the PyTorch step (for the correctness check)
# ---------------------------------------------------------------------------
def _numpy_reference(prop, vp, vs, rho, fs, src_z, src_x, state_list):
    nz, nx, npad = prop.nz, prop.nx, prop.npad
    Z, X = prop.nz_pad, prop.nx_pad
    dz = dx = prop.dz
    dt = prop.dt
    free = prop.free_surface

    def tensor_pad(v):
        if not free:
            v = np.concatenate([np.repeat(v[:1, :], npad, axis=0), v], axis=0)
        v = np.concatenate([v, np.repeat(v[-1:, :], npad, axis=0)], axis=0)
        v = np.concatenate([np.repeat(v[:, :1], npad, axis=1), v,
                            np.repeat(v[:, -1:], npad, axis=1)], axis=1)
        return v

    vp_p = tensor_pad(np.asarray(vp, np.float64))
    vs_p = tensor_pad(np.asarray(vs, np.float64))
    rho_p = tensor_pad(np.asarray(rho, np.float64))
    lam = vp_p ** 2 * rho_p - 2.0 * vs_p ** 2 * rho_p
    mu = vs_p ** 2 * rho_p
    bx = np.concatenate([2.0 / rho_p[:1], 1.0 / rho_p[1:]], axis=0)
    bz = 1.0 / rho_p
    n1x = np.concatenate([(2 * mu * (lam + mu) / (lam + 2 * mu))[:1], (lam + 2 * mu)[1:]], axis=0)
    zero = np.zeros((1, X))
    n2x = np.concatenate([zero, lam[1:]], axis=0)
    n1z = np.concatenate([zero, lam[1:]], axis=0)
    n2z = np.concatenate([zero, (lam + 2 * mu)[1:]], axis=0)
    ax, az = prop._pml_bc_mask()
    dax = 1.0 - dt * ax.astype(np.float64)
    daz = 1.0 - dt * az.astype(np.float64)

    c1x, c2x = 1.0 / 24.0 / dx, 9.0 / 8.0 / dx
    c1z, c2z = 1.0 / 24.0 / dz, 9.0 / 8.0 / dz

    def dx_f(a):
        p = np.pad(a, ((0, 0), (2, 2)))
        return c1x * p[:, 1:X + 1] - c2x * p[:, 2:X + 2] + c2x * p[:, 3:X + 3] - c1x * p[:, 4:X + 4]

    def dx_b(a):
        p = np.pad(a, ((0, 0), (2, 2)))
        return c1x * p[:, 0:X] - c2x * p[:, 1:X + 1] + c2x * p[:, 2:X + 2] - c1x * p[:, 3:X + 3]

    def dz_f(a):
        p = np.pad(a, ((2, 2), (0, 0)))
        return c1z * p[1:Z + 1, :] - c2z * p[2:Z + 2, :] + c2z * p[3:Z + 3, :] - c1z * p[4:Z + 4, :]

    def dz_b(a):
        p = np.pad(a, ((2, 2), (0, 0)))
        return c1z * p[0:Z, :] - c2z * p[1:Z + 1, :] + c2z * p[2:Z + 2, :] - c1z * p[3:Z + 3, :]

    (vx, vz, vx_x, vx_z, vz_x, vz_z, txx, tzz, txz,
     txx_x, txx_z, tzz_x, tzz_z, txz_x, txz_z) = \
        [np.asarray(s, np.float64).copy() for s in state_list]
    fs = np.asarray(fs, np.float64)
    B, C = txx.shape[:2]
    for im in range(C):
        if free:
            txx[:, im, src_z[im], src_x[im] + npad] = fs
            tzz[:, im, src_z[im], src_x[im] + npad] = fs
        else:
            txx[:, im, src_z[im] + npad, src_x[im] + npad] += fs
            tzz[:, im, src_z[im] + npad, src_x[im] + npad] += fs

    out = [np.zeros((B, C, Z, X)) for _ in range(15)]
    for b in range(B):
        for s in range(C):
            var_txx_x = dx_f(txx[b, s]) * bx
            var_txz_z = dz_b(txz[b, s]) * bx
            var_txz_x = dx_b(txz[b, s]) * bz
            var_tzz_z = dz_f(tzz[b, s]) * bz
            VX_X = dax * vx_x[b, s] + dt * var_txx_x
            VX_Z = daz * vx_z[b, s] + dt * var_txz_z
            VX = VX_X + VX_Z
            VZ_X = dax * vz_x[b, s] + dt * var_txz_x
            VZ_Z = daz * vz_z[b, s] + dt * var_tzz_z
            VZ = VZ_X + VZ_Z
            var_vx_x = dx_b(VX)
            var_vx_z = dz_f(VX)
            var_vz_x = dx_f(VZ)
            var_vz_z = dz_b(VZ)
            TXX_X = dax * txx_x[b, s] + dt * n1x * var_vx_x
            TXX_Z = daz * txx_z[b, s] + dt * n2x * var_vz_z
            TZZ_X = dax * tzz_x[b, s] + dt * n1z * var_vx_x
            TZZ_Z = daz * tzz_z[b, s] + dt * n2z * var_vz_z
            TXZ_X = dax * txz_x[b, s] + dt * mu * var_vx_z
            TXZ_Z = daz * txz_z[b, s] + dt * mu * var_vz_x
            vals = (VX, VZ, VX_X, VX_Z, VZ_X, VZ_Z,
                    TXX_X + TXX_Z, TZZ_X + TZZ_Z, TXZ_X + TXZ_Z,
                    TXX_X, TXX_Z, TZZ_X, TZZ_Z, TXZ_X, TXZ_Z)
            for k, v_ in enumerate(vals):
                out[k][b, s] = v_
    return out


# ---------------------------------------------------------------------------
# demo
# ---------------------------------------------------------------------------
if __name__ == "__main__":
    nz, nx, npad = 28, 120, 4           # nz_pad=32, nx_pad=128 -> slab (40, 128)
    dz, dt = 10.0, 0.001
    num_vels, num_shots = 1, 4          # grid = 4 steps so the pipeline has work on all cores

    prop = Propagator2DPallas(nz, nx, dz, dt, npad=npad, order=2, free_surface=True)
    Z, X = prop.nz_pad, prop.nx_pad

    key = jax.random.PRNGKey(0)
    keys = jax.random.split(key, 20)
    vp = 2000.0 + 500.0 * jax.random.uniform(keys[0], (nz, nx), dtype=jnp.float32)
    vs = vp / jnp.sqrt(3.0)
    rho = 1000.0 + 100.0 * jax.random.uniform(keys[1], (nz, nx), dtype=jnp.float32)

    def rand_field(k, scale):
        return scale * jax.random.normal(k, (num_vels, num_shots, Z, X), dtype=jnp.float32)

    # state (PyTorch order): vx, vz, vx_x, vx_z, vz_x, vz_z, txx, tzz, txz,
    #                        txx_x, txx_z, tzz_x, tzz_z, txz_x, txz_z
    scales = [1e-3] * 6 + [1e3] * 9     # stresses big so every derivative path is visible
    state = [rand_field(k, s) for k, s in zip(keys[2:17], scales)]

    fs = jnp.array([1.0], dtype=jnp.float32)                 # amplitude, shape [num_vels]
    src_z = [2, 3, 2, 3]                                     # per-shot source z indices
    src_x = [20, 45, 70, 95]                                 # per-shot source x indices
    rec_z = [1, 1, 1, 1]
    rec_x = [10, 40, 70, 100]
    segment_sources = [fs, [src_z, src_x], [rec_z, rec_x]]

    outs = prop.forward(vp, vs, rho, segment_sources, *state)
    outs = jax.block_until_ready(outs)

    # ---- correctness check against the float64 NumPy reference of the PyTorch step ----
    names = ["vx", "vz", "vx_x", "vx_z", "vz_x", "vz_z", "txx", "tzz", "txz",
             "txx_x", "txx_z", "tzz_x", "tzz_z", "txz_x", "txz_z"]
    ref = _numpy_reference(prop, np.asarray(vp), np.asarray(vs), np.asarray(rho),
                           np.asarray(fs), src_z, src_x,
                           [np.asarray(s) for s in state])
    for name, got, want in zip(names, outs[:15], ref):
        got = np.asarray(got, np.float64)
        scale = np.max(np.abs(want)) + 1e-20
        err = np.max(np.abs(got - want)) / scale
        assert err < 3e-2, f"{name}: relative error {err:.3e}"
    assert outs[15].shape == (len(rec_z), num_shots)         # yt_pred_x
    assert outs[16].shape == (len(rec_z), num_shots)         # yt_pred_z

    # ---- persistent packed-state path: a few steps with no per-step pad/slice glue ----
    params = prop.prepare_params(vp, vs, rho)
    st = prop.pack_state(*state[2:])    # 13 state fields (PyTorch order minus vx, vz)
    v = None
    for _ in range(3):
        st, v = prop.step_packed(params, st, fs, src_z, src_x)
    st, v = jax.block_until_ready((st, v))
    assert bool(jnp.all(jnp.isfinite(st))) and bool(jnp.all(jnp.isfinite(v)))

    print("KERNEL_OK")
</pallas_src>

<mosaic_0001>
module attributes {stable_mosaic.version = 11 : i64} {
  func.func @kernel(%arg0: i32, %arg1: memref<1xf32, #tpu.memory_space<smem>>, %arg2: memref<4xi32, #tpu.memory_space<smem>>, %arg3: memref<4xi32, #tpu.memory_space<smem>>, %arg4: memref<1x13x40x128xf32, #tpu.memory_space<vmem>>, %arg5: memref<9x40x128xf32, #tpu.memory_space<vmem>>, %arg6: memref<128x128xf32, #tpu.memory_space<vmem>>, %arg7: memref<128x128xf32, #tpu.memory_space<vmem>>, %arg8: memref<1x13x40x128xf32, #tpu.memory_space<vmem>>, %arg9: memref<1x2x40x128xf32, #tpu.memory_space<vmem>>) attributes {dimension_semantics = [#tpu.dimension_semantics<parallel>], iteration_bounds = array<i64: 4>, scalar_prefetch = 3 : i64, scratch_operands = 0 : i64, tpu.core_type = #tpu.core_type<tc>, window_params = [{transform_indices = @transform_0, window_bounds = array<i64: 1, 13, 40, 128>}, {pipeline_mode = #tpu.pipeline_mode<synchronous>, transform_indices = @transform_1, window_bounds = array<i64: 9, 40, 128>}, {pipeline_mode = #tpu.pipeline_mode<synchronous>, transform_indices = @transform_2, window_bounds = array<i64: 128, 128>}, {pipeline_mode = #tpu.pipeline_mode<synchronous>, transform_indices = @transform_3, window_bounds = array<i64: 128, 128>}, {transform_indices = @transform_4, window_bounds = array<i64: 1, 13, 40, 128>}, {transform_indices = @transform_5, window_bounds = array<i64: 1, 2, 40, 128>}]} {
    %c4_i32 = arith.constant 4 : i32
    %0 = arith.divsi %arg0, %c4_i32 : i32
    %c4_i32_0 = arith.constant 4 : i32
    %1 = arith.remsi %arg0, %c4_i32_0 : i32
    %2 = arith.index_cast %0 : i32 to index
    %3 = memref.load %arg1[%2] : memref<1xf32, #tpu.memory_space<smem>>
    %4 = arith.index_cast %1 : i32 to index
    %5 = memref.load %arg2[%4] : memref<4xi32, #tpu.memory_space<smem>>
    %6 = arith.index_cast %1 : i32 to index
    %7 = memref.load %arg3[%6] : memref<4xi32, #tpu.memory_space<smem>>
    %8 = tpu.iota {dimensions = array<i32: 0>} : vector<40x1xi32>
    %9 = vector.broadcast %5 : i32 to vector<40x1xi32>
    %10 = arith.cmpi eq, %8, %9 : vector<40x1xi32>
    %11 = tpu.iota {dimensions = array<i32: 1>} : vector<1x128xi32>
    %12 = vector.broadcast %7 : i32 to vector<1x128xi32>
    %13 = arith.cmpi eq, %11, %12 : vector<1x128xi32>
    %14 = vector.broadcast %10 : vector<40x1xi1> to vector<40x128xi1>
    %15 = vector.broadcast %13 : vector<1x128xi1> to vector<40x128xi1>
    %16 = arith.andi %14, %15 : vector<40x128xi1>
    %c0 = arith.constant 0 : index
    %c4 = arith.constant 4 : index
    %c0_1 = arith.constant 0 : index
    %c0_2 = arith.constant 0 : index
    %17 = vector.load %arg4[%c0, %c4, %c0_1, %c0_2] : memref<1x13x40x128xf32, #tpu.memory_space<vmem>>, vector<1x1x40x128xf32>
    %18 = vector.shape_cast %17 : vector<1x1x40x128xf32> to vector<40x128xf32>
    %c0_3 = arith.constant 0 : index
    %c5 = arith.constant 5 : index
    %c0_4 = arith.constant 0 : index
    %c0_5 = arith.constant 0 : index
    %19 = vector.load %arg4[%c0_3, %c5, %c0_4, %c0_5] : memref<1x13x40x128xf32, #tpu.memory_space<vmem>>, vector<1x1x40x128xf32>
    %20 = vector.shape_cast %19 : vector<1x1x40x128xf32> to vector<40x128xf32>
    %c0_6 = arith.constant 0 : index
    %c6 = arith.constant 6 : index
    %c0_7 = arith.constant 0 : index
    %c0_8 = arith.constant 0 : index
    %21 = vector.load %arg4[%c0_6, %c6, %c0_7, %c0_8] : memref<1x13x40x128xf32, #tpu.memory_space<vmem>>, vector<1x1x40x128xf32>
    %22 = vector.shape_cast %21 : vector<1x1x40x128xf32> to vector<40x128xf32>
    %23 = vector.broadcast %3 : f32 to vector<40x128xf32>
    %24 = arith.select %16, %23, %18 : vector<40x128xi1>, vector<40x128xf32>
    %25 = vector.broadcast %3 : f32 to vector<40x128xf32>
    %26 = arith.select %16, %25, %20 : vector<40x128xi1>, vector<40x128xf32>
    %c0_9 = arith.constant 0 : index
    %c0_10 = arith.constant 0 : index
    %27 = vector.load %arg6[%c0_9, %c0_10] : memref<128x128xf32, #tpu.memory_space<vmem>>, vector<128x128xf32>
    %c0_11 = arith.constant 0 : index
    %c0_12 = arith.constant 0 : index
    %28 = vector.load %arg7[%c0_11, %c0_12] : memref<128x128xf32, #tpu.memory_space<vmem>>, vector<128x128xf32>
    %c0_13 = arith.constant 0 : index
    %c0_14 = arith.constant 0 : index
    %c0_15 = arith.constant 0 : index
    %29 = vector.load %arg5[%c0_13, %c0_14, %c0_15] : memref<9x40x128xf32, #tpu.memory_space<vmem>>, vector<1x40x128xf32>
    %30 = vector.shape_cast %29 : vector<1x40x128xf32> to vector<40x128xf32>
    %c1 = arith.constant 1 : index
    %c0_16 = arith.constant 0 : index
    %c0_17 = arith.constant 0 : index
    %31 = vector.load %arg5[%c1, %c0_16, %c0_17] : memref<9x40x128xf32, #tpu.memory_space<vmem>>, vector<1x40x128xf32>
    %32 = vector.shape_cast %31 : vector<1x40x128xf32> to vector<40x128xf32>
    %c2 = arith.constant 2 : index
    %c0_18 = arith.constant 0 : index
    %c0_19 = arith.constant 0 : index
    %33 = vector.load %arg5[%c2, %c0_18, %c0_19] : memref<9x40x128xf32, #tpu.memory_space<vmem>>, vector<1x40x128xf32>
    %34 = vector.shape_cast %33 : vector<1x40x128xf32> to vector<40x128xf32>
    %c3 = arith.constant 3 : index
    %c0_20 = arith.constant 0 : index
    %c0_21 = arith.constant 0 : index
    %35 = vector.load %arg5[%c3, %c0_20, %c0_21] : memref<9x40x128xf32, #tpu.memory_space<vmem>>, vector<1x40x128xf32>
    %36 = vector.shape_cast %35 : vector<1x40x128xf32> to vector<40x128xf32>
    %cst = arith.constant dense<0.000000e+00> : vector<40x128xf32>
    %37 = tpu.matmul %24, %27, %cst {dimension_numbers = #tpu.dot_dimension_numbers<[1], [0], [0], [1], [0, 0, 1, 1], [], []>} : vector<40x128xf32>, vector<128x128xf32>, vector<40x128xf32> -> vector<40x128xf32>
    %cst_22 = arith.constant dense<0.000000e+00> : vector<40x128xf32>
    %38 = tpu.matmul %22, %28, %cst_22 {dimension_numbers = #tpu.dot_dimension_numbers<[1], [0], [0], [1], [0, 0, 1, 1], [], []>} : vector<40x128xf32>, vector<128x128xf32>, vector<40x128xf32> -> vector<40x128xf32>
    %c2_i32 = arith.constant 2 : i32
    %39 = tpu.dynamic_rotate %22 by %c2_i32 dim 0 : vector<40x128xf32>, i32 -> vector<40x128xf32>
    %cst_23 = arith.constant 0.00416666688 : f32
    %40 = vector.broadcast %cst_23 : f32 to vector<40x128xf32>
    %41 = arith.mulf %40, %39 : vector<40x128xf32>
    %c1_i32 = arith.constant 1 : i32
    %42 = tpu.dynamic_rotate %22 by %c1_i32 dim 0 : vector<40x128xf32>, i32 -> vector<40x128xf32>
    %cst_24 = arith.constant -1.125000e-01 : f32
    %43 = vector.broadcast %cst_24 : f32 to vector<40x128xf32>
    %44 = arith.mulf %43, %42 : vector<40x128xf32>
    %45 = arith.addf %41, %44 : vector<40x128xf32>
    %cst_25 = arith.constant 1.125000e-01 : f32
    %46 = vector.broadcast %cst_25 : f32 to vector<40x128xf32>
    %47 = arith.mulf %46, %22 : vector<40x128xf32>
    %48 = arith.addf %45, %47 : vector<40x128xf32>
    %c39_i32 = arith.constant 39 : i32
    %49 = tpu.dynamic_rotate %22 by %c39_i32 dim 0 : vector<40x128xf32>, i32 -> vector<40x128xf32>
    %cst_26 = arith.constant -0.00416666688 : f32
    %50 = vector.broadcast %cst_26 : f32 to vector<40x128xf32>
    %51 = arith.mulf %50, %49 : vector<40x128xf32>
    %52 = arith.addf %48, %51 : vector<40x128xf32>
    %c1_i32_27 = arith.constant 1 : i32
    %53 = tpu.dynamic_rotate %26 by %c1_i32_27 dim 0 : vector<40x128xf32>, i32 -> vector<40x128xf32>
    %cst_28 = arith.constant 0.00416666688 : f32
    %54 = vector.broadcast %cst_28 : f32 to vector<40x128xf32>
    %55 = arith.mulf %54, %53 : vector<40x128xf32>
    %cst_29 = arith.constant -1.125000e-01 : f32
    %56 = vector.broadcast %cst_29 : f32 to vector<40x128xf32>
    %57 = arith.mulf %56, %26 : vector<40x128xf32>
    %58 = arith.addf %55, %57 : vector<40x128xf32>
    %c39_i32_30 = arith.constant 39 : i32
    %59 = tpu.dynamic_rotate %26 by %c39_i32_30 dim 0 : vector<40x128xf32>, i32 -> vector<40x128xf32>
    %cst_31 = arith.constant 1.125000e-01 : f32
    %60 = vector.broadcast %cst_31 : f32 to vector<40x128xf32>
    %61 = arith.mulf %60, %59 : vector<40x128xf32>
    %62 = arith.addf %58, %61 : vector<40x128xf32>
    %c38_i32 = arith.constant 38 : i32
    %63 = tpu.dynamic_rotate %26 by %c38_i32 dim 0 : vector<40x128xf32>, i32 -> vector<40x128xf32>
    %cst_32 = arith.constant -0.00416666688 : f32
    %64 = vector.broadcast %cst_32 : f32 to vector<40x128xf32>
    %65 = arith.mulf %64, %63 : vector<40x128xf32>
    %66 = arith.addf %62, %65 : vector<40x128xf32>
    %c0_33 = arith.constant 0 : index
    %c0_34 = arith.constant 0 : index
    %c0_35 = arith.constant 0 : index
    %c0_36 = arith.constant 0 : index
    %67 = vector.load %arg4[%c0_33, %c0_34, %c0_35, %c0_36] : memref<1x13x40x128xf32, #tpu.memory_space<vmem>>, vector<1x1x40x128xf32>
    %68 = vector.shape_cast %67 : vector<1x1x40x128xf32> to vector<40x128xf32>
    %69 = arith.mulf %30, %68 : vector<40x128xf32>
    %70 = arith.mulf %34, %37 : vector<40x128xf32>
    %71 = arith.addf %69, %70 : vector<40x128xf32>
    %c0_37 = arith.constant 0 : index
    %c1_38 = arith.constant 1 : index
    %c0_39 = arith.constant 0 : index
    %c0_40 = arith.constant 0 : index
    %72 = vector.load %arg4[%c0_37, %c1_38, %c0_39, %c0_40] : memref<1x13x40x128xf32, #tpu.memory_space<vmem>>, vector<1x1x40x128xf32>
    %73 = vector.shape_cast %72 : vector<1x1x40x128xf32> to vector<40x128xf32>
    %74 = arith.mulf %32, %73 : vector<40x128xf32>
    %75 = arith.mulf %34, %52 : vector<40x128xf32>
    %76 = arith.addf %74, %75 : vector<40x128xf32>
    %c0_41 = arith.constant 0 : index
    %c2_42 = arith.constant 2 : index
    %c0_43 = arith.constant 0 : index
    %c0_44 = arith.constant 0 : index
    %77 = vector.load %arg4[%c0_41, %c2_42, %c0_43, %c0_44] : memref<1x13x40x128xf32, #tpu.memory_space<vmem>>, vector<1x1x40x128xf32>
    %78 = vector.shape_cast %77 : vector<1x1x40x128xf32> to vector<40x128xf32>
    %79 = arith.mulf %30, %78 : vector<40x128xf32>
    %80 = arith.mulf %36, %38 : vector<40x128xf32>
    %81 = arith.addf %79, %80 : vector<40x128xf32>
    %c0_45 = arith.constant 0 : index
    %c3_46 = arith.constant 3 : index
    %c0_47 = arith.constant 0 : index
    %c0_48 = arith.constant 0 : index
    %82 = vector.load %arg4[%c0_45, %c3_46, %c0_47, %c0_48] : memref<1x13x40x128xf32, #tpu.memory_space<vmem>>, vector<1x1x40x128xf32>
    %83 = vector.shape_cast %82 : vector<1x1x40x128xf32> to vector<40x128xf32>
    %84 = arith.mulf %32, %83 : vector<40x128xf32>
    %85 = arith.mulf %36, %66 : vector<40x128xf32>
    %86 = arith.addf %84, %85 : vector<40x128xf32>
    %87 = arith.addf %71, %76 : vector<40x128xf32>
    %88 = arith.addf %81, %86 : vector<40x128xf32>
    %c0_49 = arith.constant 0 : index
    %c0_50 = arith.constant 0 : index
    %c0_51 = arith.constant 0 : index
    %c0_52 = arith.constant 0 : index
    %89 = vector.load %arg9[%c0_49, %c0_50, %c0_51, %c0_52] : memref<1x2x40x128xf32, #tpu.memory_space<vmem>>, vector<1x1x40x128xf32>
    %90 = vector.shape_cast %89 : vector<1x1x40x128xf32> to vector<40x128xf32>
    %91 = vector.shape_cast %87 : vector<40x128xf32> to vector<1x1x40x128xf32>
    tpu.vector_store %arg9[%c0_49, %c0_50, %c0_51, %c0_52], %91 {strides = array<i32>} : memref<1x2x40x128xf32, #tpu.memory_space<vmem>>, vector<1x1x40x128xf32>,
    %c0_53 = arith.constant 0 : index
    %c1_54 = arith.constant 1 : index
    %c0_55 = arith.constant 0 : index
    %c0_56 = arith.constant 0 : index
    %92 = vector.load %arg9[%c0_53, %c1_54, %c0_55, %c0_56] : memref<1x2x40x128xf32, #tpu.memory_space<vmem>>, vector<1x1x40x128xf32>
    %93 = vector.shape_cast %92 : vector<1x1x40x128xf32> to vector<40x128xf32>
    %94 = vector.shape_cast %88 : vector<40x128xf32> to vector<1x1x40x128xf32>
    tpu.vector_store %arg9[%c0_53, %c1_54, %c0_55, %c0_56], %94 {strides = array<i32>} : memref<1x2x40x128xf32, #tpu.memory_space<vmem>>, vector<1x1x40x128xf32>,
    %c0_57 = arith.constant 0 : index
    %c0_58 = arith.constant 0 : index
    %c0_59 = arith.constant 0 : index
    %c0_60 = arith.constant 0 : index
    %95 = vector.load %arg8[%c0_57, %c0_58, %c0_59, %c0_60] : memref<1x13x40x128xf32, #tpu.memory_space<vmem>>, vector<1x1x40x128xf32>
    %96 = vector.shape_cast %95 : vector<1x1x40x128xf32> to vector<40x128xf32>
    %97 = vector.shape_cast %71 : vector<40x128xf32> to vector<1x1x40x128xf32>
    tpu.vector_store %arg8[%c0_57, %c0_58, %c0_59, %c0_60], %97 {strides = array<i32>} : memref<1x13x40x128xf32, #tpu.memory_space<vmem>>, vector<1x1x40x128xf32>,
    %c0_61 = arith.constant 0 : index
    %c1_62 = arith.constant 1 : index
    %c0_63 = arith.constant 0 : index
    %c0_64 = arith.constant 0 : index
    %98 = vector.load %arg8[%c0_61, %c1_62, %c0_63, %c0_64] : memref<1x13x40x128xf32, #tpu.memory_space<vmem>>, vector<1x1x40x128xf32>
    %99 = vector.shape_cast %98 : vector<1x1x40x128xf32> to vector<40x128xf32>
    %100 = vector.shape_cast %76 : vector<40x128xf32> to vector<1x1x40x128xf32>
    tpu.vector_store %arg8[%c0_61, %c1_62, %c0_63, %c0_64], %100 {strides = array<i32>} : memref<1x13x40x128xf32, #tpu.memory_space<vmem>>, vector<1x1x40x128xf32>,
    %c0_65 = arith.constant 0 : index
    %c2_66 = arith.constant 2 : index
    %c0_67 = arith.constant 0 : index
    %c0_68 = arith.constant 0 : index
    %101 = vector.load %arg8[%c0_65, %c2_66, %c0_67, %c0_68] : memref<1x13x40x128xf32, #tpu.memory_space<vmem>>, vector<1x1x40x128xf32>
    %102 = vector.shape_cast %101 : vector<1x1x40x128xf32> to vector<40x128xf32>
    %103 = vector.shape_cast %81 : vector<40x128xf32> to vector<1x1x40x128xf32>
    tpu.vector_store %arg8[%c0_65, %c2_66, %c0_67, %c0_68], %103 {strides = array<i32>} : memref<1x13x40x128xf32, #tpu.memory_space<vmem>>, vector<1x1x40x128xf32>,
    %c0_69 = arith.constant 0 : index
    %c3_70 = arith.constant 3 : index
    %c0_71 = arith.constant 0 : index
    %c0_72 = arith.constant 0 : index
    %104 = vector.load %arg8[%c0_69, %c3_70, %c0_71, %c0_72] : memref<1x13x40x128xf32, #tpu.memory_space<vmem>>, vector<1x1x40x128xf32>
    %105 = vector.shape_cast %104 : vector<1x1x40x128xf32> to vector<40x128xf32>
    %106 = vector.shape_cast %86 : vector<40x128xf32> to vector<1x1x40x128xf32>
    tpu.vector_store %arg8[%c0_69, %c3_70, %c0_71, %c0_72], %106 {strides = array<i32>} : memref<1x13x40x128xf32, #tpu.memory_space<vmem>>, vector<1x1x40x128xf32>,
    %c4_73 = arith.constant 4 : index
    %c0_74 = arith.constant 0 : index
    %c0_75 = arith.constant 0 : index
    %107 = vector.load %arg5[%c4_73, %c0_74, %c0_75] : memref<9x40x128xf32, #tpu.memory_space<vmem>>, vector<1x40x128xf32>
    %108 = vector.shape_cast %107 : vector<1x40x128xf32> to vector<40x128xf32>
    %c5_76 = arith.constant 5 : index
    %c0_77 = arith.constant 0 : index
    %c0_78 = arith.constant 0 : index
    %109 = vector.load %arg5[%c5_76, %c0_77, %c0_78] : memref<9x40x128xf32, #tpu.memory_space<vmem>>, vector<1x40x128xf32>
    %110 = vector.shape_cast %109 : vector<1x40x128xf32> to vector<40x128xf32>
    %c6_79 = arith.constant 6 : index
    %c0_80 = arith.constant 0 : index
    %c0_81 = arith.constant 0 : index
    %111 = vector.load %arg5[%c6_79, %c0_80, %c0_81] : memref<9x40x128xf32, #tpu.memory_space<vmem>>, vector<1x40x128xf32>
    %112 = vector.shape_cast %111 : vector<1x40x128xf32> to vector<40x128xf32>
    %c7 = arith.constant 7 : index
    %c0_82 = arith.constant 0 : index
    %c0_83 = arith.constant 0 : index
    %113 = vector.load %arg5[%c7, %c0_82, %c0_83] : memref<9x40x128xf32, #tpu.memory_space<vmem>>, vector<1x40x128xf32>
    %114 = vector.shape_cast %113 : vector<1x40x128xf32> to vector<40x128xf32>
    %c8 = arith.constant 8 : index
    %c0_84 = arith.constant 0 : index
    %c0_85 = arith.constant 0 : index
    %115 = vector.load %arg5[%c8, %c0_84, %c0_85] : memref<9x40x128xf32, #tpu.memory_space<vmem>>, vector<1x40x128xf32>
    %116 = vector.shape_cast %115 : vector<1x40x128xf32> to vector<40x128xf32>
    %cst_86 = arith.constant dense<0.000000e+00> : vector<40x128xf32>
    %117 = tpu.matmul %87, %28, %cst_86 {dimension_numbers = #tpu.dot_dimension_numbers<[1], [0], [0], [1], [0, 0, 1, 1], [], []>} : vector<40x128xf32>, vector<128x128xf32>, vector<40x128xf32> -> vector<40x128xf32>
    %cst_87 = arith.constant dense<0.000000e+00> : vector<40x128xf32>
    %118 = tpu.matmul %88, %27, %cst_87 {dimension_numbers = #tpu.dot_dimension_numbers<[1], [0], [0], [1], [0, 0, 1, 1], [], []>} : vector<40x128xf32>, vector<128x128xf32>, vector<40x128xf32> -> vector<40x128xf32>
    %c1_i32_88 = arith.constant 1 : i32
    %119 = tpu.dynamic_rotate %87 by %c1_i32_88 dim 0 : vector<40x128xf32>, i32 -> vector<40x128xf32>
    %cst_89 = arith.constant 0.00416666688 : f32
    %120 = vector.broadcast %cst_89 : f32 to vector<40x128xf32>
    %121 = arith.mulf %120, %119 : vector<40x128xf32>
    %cst_90 = arith.constant -1.125000e-01 : f32
    %122 = vector.broadcast %cst_90 : f32 to vector<40x128xf32>
    %123 = arith.mulf %122, %87 : vector<40x128xf32>
    %124 = arith.addf %121, %123 : vector<40x128xf32>
    %c39_i32_91 = arith.constant 39 : i32
    %125 = tpu.dynamic_rotate %87 by %c39_i32_91 dim 0 : vector<40x128xf32>, i32 -> vector<40x128xf32>
    %cst_92 = arith.constant 1.125000e-01 : f32
    %126 = vector.broadcast %cst_92 : f32 to vector<40x128xf32>
    %127 = arith.mulf %126, %125 : vector<40x128xf32>
    %128 = arith.addf %124, %127 : vector<40x128xf32>
    %c38_i32_93 = arith.constant 38 : i32
    %129 = tpu.dynamic_rotate %87 by %c38_i32_93 dim 0 : vector<40x128xf32>, i32 -> vector<40x128xf32>
    %cst_94 = arith.constant -0.00416666688 : f32
    %130 = vector.broadcast %cst_94 : f32 to vector<40x128xf32>
    %131 = arith.mulf %130, %129 : vector<40x128xf32>
    %132 = arith.addf %128, %131 : vector<40x128xf32>
    %c2_i32_95 = arith.constant 2 : i32
    %133 = tpu.dynamic_rotate %88 by %c2_i32_95 dim 0 : vector<40x128xf32>, i32 -> vector<40x128xf32>
    %cst_96 = arith.constant 0.00416666688 : f32
    %134 = vector.broadcast %cst_96 : f32 to vector<40x128xf32>
    %135 = arith.mulf %134, %133 : vector<40x128xf32>
    %c1_i32_97 = arith.constant 1 : i32
    %136 = tpu.dynamic_rotate %88 by %c1_i32_97 dim 0 : vector<40x128xf32>, i32 -> vector<40x128xf32>
    %cst_98 = arith.constant -1.125000e-01 : f32
    %137 = vector.broadcast %cst_98 : f32 to vector<40x128xf32>
    %138 = arith.mulf %137, %136 : vector<40x128xf32>
    %139 = arith.addf %135, %138 : vector<40x128xf32>
    %cst_99 = arith.constant 1.125000e-01 : f32
    %140 = vector.broadcast %cst_99 : f32 to vector<40x128xf32>
    %141 = arith.mulf %140, %88 : vector<40x128xf32>
    %142 = arith.addf %139, %141 : vector<40x128xf32>
    %c39_i32_100 = arith.constant 39 : i32
    %143 = tpu.dynamic_rotate %88 by %c39_i32_100 dim 0 : vector<40x128xf32>, i32 -> vector<40x128xf32>
    %cst_101 = arith.constant -0.00416666688 : f32
    %144 = vector.broadcast %cst_101 : f32 to vector<40x128xf32>
    %145 = arith.mulf %144, %143 : vector<40x128xf32>
    %146 = arith.addf %142, %145 : vector<40x128xf32>
    %c0_102 = arith.constant 0 : index
    %c7_103 = arith.constant 7 : index
    %c0_104 = arith.constant 0 : index
    %c0_105 = arith.constant 0 : index
    %147 = vector.load %arg4[%c0_102, %c7_103, %c0_104, %c0_105] : memref<1x13x40x128xf32, #tpu.memory_space<vmem>>, vector<1x1x40x128xf32>
    %148 = vector.shape_cast %147 : vector<1x1x40x128xf32> to vector<40x128xf32>
    %149 = arith.mulf %30, %148 : vector<40x128xf32>
    %150 = arith.mulf %108, %117 : vector<40x128xf32>
    %151 = arith.addf %149, %150 : vector<40x128xf32>
    %c0_106 = arith.constant 0 : index
    %c8_107 = arith.constant 8 : index
    %c0_108 = arith.constant 0 : index
    %c0_109 = arith.constant 0 : index
    %152 = vector.load %arg4[%c0_106, %c8_107, %c0_108, %c0_109] : memref<1x13x40x128xf32, #tpu.memory_space<vmem>>, vector<1x1x40x128xf32>
    %153 = vector.shape_cast %152 : vector<1x1x40x128xf32> to vector<40x128xf32>
    %154 = arith.mulf %32, %153 : vector<40x128xf32>
    %155 = arith.mulf %110, %146 : vector<40x128xf32>
    %156 = arith.addf %154, %155 : vector<40x128xf32>
    %c0_110 = arith.constant 0 : index
    %c9 = arith.constant 9 : index
    %c0_111 = arith.constant 0 : index
    %c0_112 = arith.constant 0 : index
    %157 = vector.load %arg4[%c0_110, %c9, %c0_111, %c0_112] : memref<1x13x40x128xf32, #tpu.memory_space<vmem>>, vector<1x1x40x128xf32>
    %158 = vector.shape_cast %157 : vector<1x1x40x128xf32> to vector<40x128xf32>
    %159 = arith.mulf %30, %158 : vector<40x128xf32>
    %160 = arith.mulf %112, %117 : vector<40x128xf32>
    %161 = arith.addf %159, %160 : vector<40x128xf32>
    %c0_113 = arith.constant 0 : index
    %c10 = arith.constant 10 : index
    %c0_114 = arith.constant 0 : index
    %c0_115 = arith.constant 0 : index
    %162 = vector.load %arg4[%c0_113, %c10, %c0_114, %c0_115] : memref<1x13x40x128xf32, #tpu.memory_space<vmem>>, vector<1x1x40x128xf32>
    %163 = vector.shape_cast %162 : vector<1x1x40x128xf32> to vector<40x128xf32>
    %164 = arith.mulf %32, %163 : vector<40x128xf32>
    %165 = arith.mulf %114, %146 : vector<40x128xf32>
    %166 = arith.addf %164, %165 : vector<40x128xf32>
    %c0_116 = arith.constant 0 : index
    %c11 = arith.constant 11 : index
    %c0_117 = arith.constant 0 : index
    %c0_118 = arith.constant 0 : index
    %167 = vector.load %arg4[%c0_116, %c11, %c0_117, %c0_118] : memref<1x13x40x128xf32, #tpu.memory_space<vmem>>, vector<1x1x40x128xf32>
    %168 = vector.shape_cast %167 : vector<1x1x40x128xf32> to vector<40x128xf32>
    %169 = arith.mulf %30, %168 : vector<40x128xf32>
    %170 = arith.mulf %116, %132 : vector<40x128xf32>
    %171 = arith.addf %169, %170 : vector<40x128xf32>
    %c0_119 = arith.constant 0 : index
    %c12 = arith.constant 12 : index
    %c0_120 = arith.constant 0 : index
    %c0_121 = arith.constant 0 : index
    %172 = vector.load %arg4[%c0_119, %c12, %c0_120, %c0_121] : memref<1x13x40x128xf32, #tpu.memory_space<vmem>>, vector<1x1x40x128xf32>
    %173 = vector.shape_cast %172 : vector<1x1x40x128xf32> to vector<40x128xf32>
    %174 = arith.mulf %32, %173 : vector<40x128xf32>
    %175 = arith.mulf %116, %118 : vector<40x128xf32>
    %176 = arith.addf %174, %175 : vector<40x128xf32>
    %177 = arith.addf %151, %156 : vector<40x128xf32>
    %c0_122 = arith.constant 0 : index
    %c4_123 = arith.constant 4 : index
    %c0_124 = arith.constant 0 : index
    %c0_125 = arith.constant 0 : index
    %178 = vector.load %arg8[%c0_122, %c4_123, %c0_124, %c0_125] : memref<1x13x40x128xf32, #tpu.memory_space<vmem>>, vector<1x1x40x128xf32>
    %179 = vector.shape_cast %178 : vector<1x1x40x128xf32> to vector<40x128xf32>
    %180 = vector.shape_cast %177 : vector<40x128xf32> to vector<1x1x40x128xf32>
    tpu.vector_store %arg8[%c0_122, %c4_123, %c0_124, %c0_125], %180 {strides = array<i32>} : memref<1x13x40x128xf32, #tpu.memory_space<vmem>>, vector<1x1x40x128xf32>,
    %181 = arith.addf %161, %166 : vector<40x128xf32>
    %c0_126 = arith.constant 0 : index
    %c5_127 = arith.constant 5 : index
    %c0_128 = arith.constant 0 : index
    %c0_129 = arith.constant 0 : index
    %182 = vector.load %arg8[%c0_126, %c5_127, %c0_128, %c0_129] : memref<1x13x40x128xf32, #tpu.memory_space<vmem>>, vector<1x1x40x128xf32>
    %183 = vector.shape_cast %182 : vector<1x1x40x128xf32> to vector<40x128xf32>
    %184 = vector.shape_cast %181 : vector<40x128xf32> to vector<1x1x40x128xf32>
    tpu.vector_store %arg8[%c0_126, %c5_127, %c0_128, %c0_129], %184 {strides = array<i32>} : memref<1x13x40x128xf32, #tpu.memory_space<vmem>>, vector<1x1x40x128xf32>,
    %185 = arith.addf %171, %176 : vector<40x128xf32>
    %c0_130 = arith.constant 0 : index
    %c6_131 = arith.constant 6 : index
    %c0_132 = arith.constant 0 : index
    %c0_133 = arith.constant 0 : index
    %186 = vector.load %arg8[%c0_130, %c6_131, %c0_132, %c0_133] : memref<1x13x40x128xf32, #tpu.memory_space<vmem>>, vector<1x1x40x128xf32>
    %187 = vector.shape_cast %186 : vector<1x1x40x128xf32> to vector<40x128xf32>
    %188 = vector.shape_cast %185 : vector<40x128xf32> to vector<1x1x40x128xf32>
    tpu.vector_store %arg8[%c0_130, %c6_131, %c0_132, %c0_133], %188 {strides = array<i32>} : memref<1x13x40x128xf32, #tpu.memory_space<vmem>>, vector<1x1x40x128xf32>,
    %c0_134 = arith.constant 0 : index
    %c7_135 = arith.constant 7 : index
    %c0_136 = arith.constant 0 : index
    %c0_137 = arith.constant 0 : index
    %189 = vector.load %arg8[%c0_134, %c7_135, %c0_136, %c0_137] : memref<1x13x40x128xf32, #tpu.memory_space<vmem>>, vector<1x1x40x128xf32>
    %190 = vector.shape_cast %189 : vector<1x1x40x128xf32> to vector<40x128xf32>
    %191 = vector.shape_cast %151 : vector<40x128xf32> to vector<1x1x40x128xf32>
    tpu.vector_store %arg8[%c0_134, %c7_135, %c0_136, %c0_137], %191 {strides = array<i32>} : memref<1x13x40x128xf32, #tpu.memory_space<vmem>>, vector<1x1x40x128xf32>,
    %c0_138 = arith.constant 0 : index
    %c8_139 = arith.constant 8 : index
    %c0_140 = arith.constant 0 : index
    %c0_141 = arith.constant 0 : index
    %192 = vector.load %arg8[%c0_138, %c8_139, %c0_140, %c0_141] : memref<1x13x40x128xf32, #tpu.memory_space<vmem>>, vector<1x1x40x128xf32>
    %193 = vector.shape_cast %192 : vector<1x1x40x128xf32> to vector<40x128xf32>
    %194 = vector.shape_cast %156 : vector<40x128xf32> to vector<1x1x40x128xf32>
    tpu.vector_store %arg8[%c0_138, %c8_139, %c0_140, %c0_141], %194 {strides = array<i32>} : memref<1x13x40x128xf32, #tpu.memory_space<vmem>>, vector<1x1x40x128xf32>,
    %c0_142 = arith.constant 0 : index
    %c9_143 = arith.constant 9 : index
    %c0_144 = arith.constant 0 : index
    %c0_145 = arith.constant 0 : index
    %195 = vector.load %arg8[%c0_142, %c9_143, %c0_144, %c0_145] : memref<1x13x40x128xf32, #tpu.memory_space<vmem>>, vector<1x1x40x128xf32>
    %196 = vector.shape_cast %195 : vector<1x1x40x128xf32> to vector<40x128xf32>
    %197 = vector.shape_cast %161 : vector<40x128xf32> to vector<1x1x40x128xf32>
    tpu.vector_store %arg8[%c0_142, %c9_143, %c0_144, %c0_145], %197 {strides = array<i32>} : memref<1x13x40x128xf32, #tpu.memory_space<vmem>>, vector<1x1x40x128xf32>,
    %c0_146 = arith.constant 0 : index
    %c10_147 = arith.constant 10 : index
    %c0_148 = arith.constant 0 : index
    %c0_149 = arith.constant 0 : index
    %198 = vector.load %arg8[%c0_146, %c10_147, %c0_148, %c0_149] : memref<1x13x40x128xf32, #tpu.memory_space<vmem>>, vector<1x1x40x128xf32>
    %199 = vector.shape_cast %198 : vector<1x1x40x128xf32> to vector<40x128xf32>
    %200 = vector.shape_cast %166 : vector<40x128xf32> to vector<1x1x40x128xf32>
    tpu.vector_store %arg8[%c0_146, %c10_147, %c0_148, %c0_149], %200 {strides = array<i32>} : memref<1x13x40x128xf32, #tpu.memory_space<vmem>>, vector<1x1x40x128xf32>,
    %c0_150 = arith.constant 0 : index
    %c11_151 = arith.constant 11 : index
    %c0_152 = arith.constant 0 : index
    %c0_153 = arith.constant 0 : index
    %201 = vector.load %arg8[%c0_150, %c11_151, %c0_152, %c0_153] : memref<1x13x40x128xf32, #tpu.memory_space<vmem>>, vector<1x1x40x128xf32>
    %202 = vector.shape_cast %201 : vector<1x1x40x128xf32> to vector<40x128xf32>
    %203 = vector.shape_cast %171 : vector<40x128xf32> to vector<1x1x40x128xf32>
    tpu.vector_store %arg8[%c0_150, %c11_151, %c0_152, %c0_153], %203 {strides = array<i32>} : memref<1x13x40x128xf32, #tpu.memory_space<vmem>>, vector<1x1x40x128xf32>,
    %c0_154 = arith.constant 0 : index
    %c12_155 = arith.constant 12 : index
    %c0_156 = arith.constant 0 : index
    %c0_157 = arith.constant 0 : index
    %204 = vector.load %arg8[%c0_154, %c12_155, %c0_156, %c0_157] : memref<1x13x40x128xf32, #tpu.memory_space<vmem>>, vector<1x1x40x128xf32>
    %205 = vector.shape_cast %204 : vector<1x1x40x128xf32> to vector<40x128xf32>
    %206 = vector.shape_cast %176 : vector<40x128xf32> to vector<1x1x40x128xf32>
    tpu.vector_store %arg8[%c0_154, %c12_155, %c0_156, %c0_157], %206 {strides = array<i32>} : memref<1x13x40x128xf32, #tpu.memory_space<vmem>>, vector<1x1x40x128xf32>,
    return
  }
  func.func @transform_0(%arg0: i32, %arg1: memref<1xf32, #tpu.memory_space<smem>>, %arg2: memref<4xi32, #tpu.memory_space<smem>>, %arg3: memref<4xi32, #tpu.memory_space<smem>>) -> (i32, i32, i32, i32) {
    %c0_i32 = arith.constant 0 : i32
    %c0_i32_0 = arith.constant 0 : i32
    %c0_i32_1 = arith.constant 0 : i32
    %c0_i32_2 = arith.constant 0 : i32
    return %arg0, %c0_i32, %c0_i32_0, %c0_i32_1 : i32, i32, i32, i32
  }
  func.func @transform_1(%arg0: i32, %arg1: memref<1xf32, #tpu.memory_space<smem>>, %arg2: memref<4xi32, #tpu.memory_space<smem>>, %arg3: memref<4xi32, #tpu.memory_space<smem>>) -> (i32, i32, i32) {
    %c0_i32 = arith.constant 0 : i32
    %c0_i32_0 = arith.constant 0 : i32
    %c0_i32_1 = arith.constant 0 : i32
    %c0_i32_2 = arith.constant 0 : i32
    return %c0_i32, %c0_i32_0, %c0_i32_1 : i32, i32, i32
  }
  func.func @transform_2(%arg0: i32, %arg1: memref<1xf32, #tpu.memory_space<smem>>, %arg2: memref<4xi32, #tpu.memory_space<smem>>, %arg3: memref<4xi32, #tpu.memory_space<smem>>) -> (i32, i32) {
    %c0_i32 = arith.constant 0 : i32
    %c0_i32_0 = arith.constant 0 : i32
    %c0_i32_1 = arith.constant 0 : i32
    return %c0_i32, %c0_i32_0 : i32, i32
  }
  func.func @transform_3(%arg0: i32, %arg1: memref<1xf32, #tpu.memory_space<smem>>, %arg2: memref<4xi32, #tpu.memory_space<smem>>, %arg3: memref<4xi32, #tpu.memory_space<smem>>) -> (i32, i32) {
    %c0_i32 = arith.constant 0 : i32
    %c0_i32_0 = arith.constant 0 : i32
    %c0_i32_1 = arith.constant 0 : i32
    return %c0_i32, %c0_i32_0 : i32, i32
  }
  func.func @transform_4(%arg0: i32, %arg1: memref<1xf32, #tpu.memory_space<smem>>, %arg2: memref<4xi32, #tpu.memory_space<smem>>, %arg3: memref<4xi32, #tpu.memory_space<smem>>) -> (i32, i32, i32, i32) {
    %c0_i32 = arith.constant 0 : i32
    %c0_i32_0 = arith.constant 0 : i32
    %c0_i32_1 = arith.constant 0 : i32
    %c0_i32_2 = arith.constant 0 : i32
    return %arg0, %c0_i32, %c0_i32_0, %c0_i32_1 : i32, i32, i32, i32
  }
  func.func @transform_5(%arg0: i32, %arg1: memref<1xf32, #tpu.memory_space<smem>>, %arg2: memref<4xi32, #tpu.memory_space<smem>>, %arg3: memref<4xi32, #tpu.memory_space<smem>>) -> (i32, i32, i32, i32) {
    %c0_i32 = arith.constant 0 : i32
    %c0_i32_0 = arith.constant 0 : i32
    %c0_i32_1 = arith.constant 0 : i32
    %c0_i32_2 = arith.constant 0 : i32
    return %arg0, %c0_i32, %c0_i32_0, %c0_i32_1 : i32, i32, i32, i32
  }
}

module attributes {stable_mosaic.version = 11 : i64} {
  func.func @kernel(%arg0: i32, %arg1: memref<1xf32, #tpu.memory_space<smem>>, %arg2: memref<4xi32, #tpu.memory_space<smem>>, %arg3: memref<4xi32, #tpu.memory_space<smem>>, %arg4: memref<1x13x40x128xf32, #tpu.memory_space<vmem>>, %arg5: memref<9x40x128xf32, #tpu.memory_space<vmem>>, %arg6: memref<128x128xf32, #tpu.memory_space<vmem>>, %arg7: memref<128x128xf32, #tpu.memory_space<vmem>>, %arg8: memref<1x13x40x128xf32, #tpu.memory_space<vmem>>, %arg9: memref<1x2x40x128xf32, #tpu.memory_space<vmem>>) attributes {dimension_semantics = [#tpu.dimension_semantics<parallel>], iteration_bounds = array<i64: 4>, scalar_prefetch = 3 : i64, scratch_operands = 0 : i64, tpu.core_type = #tpu.core_type<tc>, window_params = [{transform_indices = @transform_0, window_bounds = array<i64: 1, 13, 40, 128>}, {pipeline_mode = #tpu.pipeline_mode<synchronous>, transform_indices = @transform_1, window_bounds = array<i64: 9, 40, 128>}, {pipeline_mode = #tpu.pipeline_mode<synchronous>, transform_indices = @transform_2, window_bounds = array<i64: 128, 128>}, {pipeline_mode = #tpu.pipeline_mode<synchronous>, transform_indices = @transform_3, window_bounds = array<i64: 128, 128>}, {transform_indices = @transform_4, window_bounds = array<i64: 1, 13, 40, 128>}, {transform_indices = @transform_5, window_bounds = array<i64: 1, 2, 40, 128>}]} {
    %c4_i32 = arith.constant 4 : i32
    %0 = arith.divsi %arg0, %c4_i32 : i32
    %c4_i32_0 = arith.constant 4 : i32
    %1 = arith.remsi %arg0, %c4_i32_0 : i32
    %2 = arith.index_cast %0 : i32 to index
    %3 = memref.load %arg1[%2] : memref<1xf32, #tpu.memory_space<smem>>
    %4 = arith.index_cast %1 : i32 to index
    %5 = memref.load %arg2[%4] : memref<4xi32, #tpu.memory_space<smem>>
    %6 = arith.index_cast %1 : i32 to index
    %7 = memref.load %arg3[%6] : memref<4xi32, #tpu.memory_space<smem>>
    %8 = tpu.iota {dimensions = array<i32: 0>} : vector<40x1xi32>
    %9 = vector.broadcast %5 : i32 to vector<40x1xi32>
    %10 = arith.cmpi eq, %8, %9 : vector<40x1xi32>
    %11 = tpu.iota {dimensions = array<i32: 1>} : vector<1x128xi32>
    %12 = vector.broadcast %7 : i32 to vector<1x128xi32>
    %13 = arith.cmpi eq, %11, %12 : vector<1x128xi32>
    %14 = vector.broadcast %10 : vector<40x1xi1> to vector<40x128xi1>
    %15 = vector.broadcast %13 : vector<1x128xi1> to vector<40x128xi1>
    %16 = arith.andi %14, %15 : vector<40x128xi1>
    %c0 = arith.constant 0 : index
    %c4 = arith.constant 4 : index
    %c0_1 = arith.constant 0 : index
    %c0_2 = arith.constant 0 : index
    %17 = vector.load %arg4[%c0, %c4, %c0_1, %c0_2] : memref<1x13x40x128xf32, #tpu.memory_space<vmem>>, vector<1x1x40x128xf32>
    %18 = vector.shape_cast %17 : vector<1x1x40x128xf32> to vector<40x128xf32>
    %c0_3 = arith.constant 0 : index
    %c5 = arith.constant 5 : index
    %c0_4 = arith.constant 0 : index
    %c0_5 = arith.constant 0 : index
    %19 = vector.load %arg4[%c0_3, %c5, %c0_4, %c0_5] : memref<1x13x40x128xf32, #tpu.memory_space<vmem>>, vector<1x1x40x128xf32>
    %20 = vector.shape_cast %19 : vector<1x1x40x128xf32> to vector<40x128xf32>
    %c0_6 = arith.constant 0 : index
    %c6 = arith.constant 6 : index
    %c0_7 = arith.constant 0 : index
    %c0_8 = arith.constant 0 : index
    %21 = vector.load %arg4[%c0_6, %c6, %c0_7, %c0_8] : memref<1x13x40x128xf32, #tpu.memory_space<vmem>>, vector<1x1x40x128xf32>
    %22 = vector.shape_cast %21 : vector<1x1x40x128xf32> to vector<40x128xf32>
    %23 = vector.broadcast %3 : f32 to vector<40x128xf32>
    %24 = arith.select %16, %23, %18 : vector<40x128xi1>, vector<40x128xf32>
    %25 = vector.broadcast %3 : f32 to vector<40x128xf32>
    %26 = arith.select %16, %25, %20 : vector<40x128xi1>, vector<40x128xf32>
    %c0_9 = arith.constant 0 : index
    %c0_10 = arith.constant 0 : index
    %27 = vector.load %arg6[%c0_9, %c0_10] : memref<128x128xf32, #tpu.memory_space<vmem>>, vector<128x128xf32>
    %c0_11 = arith.constant 0 : index
    %c0_12 = arith.constant 0 : index
    %28 = vector.load %arg7[%c0_11, %c0_12] : memref<128x128xf32, #tpu.memory_space<vmem>>, vector<128x128xf32>
    %c0_13 = arith.constant 0 : index
    %c0_14 = arith.constant 0 : index
    %c0_15 = arith.constant 0 : index
    %29 = vector.load %arg5[%c0_13, %c0_14, %c0_15] : memref<9x40x128xf32, #tpu.memory_space<vmem>>, vector<1x40x128xf32>
    %30 = vector.shape_cast %29 : vector<1x40x128xf32> to vector<40x128xf32>
    %c1 = arith.constant 1 : index
    %c0_16 = arith.constant 0 : index
    %c0_17 = arith.constant 0 : index
    %31 = vector.load %arg5[%c1, %c0_16, %c0_17] : memref<9x40x128xf32, #tpu.memory_space<vmem>>, vector<1x40x128xf32>
    %32 = vector.shape_cast %31 : vector<1x40x128xf32> to vector<40x128xf32>
    %c2 = arith.constant 2 : index
    %c0_18 = arith.constant 0 : index
    %c0_19 = arith.constant 0 : index
    %33 = vector.load %arg5[%c2, %c0_18, %c0_19] : memref<9x40x128xf32, #tpu.memory_space<vmem>>, vector<1x40x128xf32>
    %34 = vector.shape_cast %33 : vector<1x40x128xf32> to vector<40x128xf32>
    %c3 = arith.constant 3 : index
    %c0_20 = arith.constant 0 : index
    %c0_21 = arith.constant 0 : index
    %35 = vector.load %arg5[%c3, %c0_20, %c0_21] : memref<9x40x128xf32, #tpu.memory_space<vmem>>, vector<1x40x128xf32>
    %36 = vector.shape_cast %35 : vector<1x40x128xf32> to vector<40x128xf32>
    %cst = arith.constant dense<0.000000e+00> : vector<40x128xf32>
    %37 = tpu.matmul %24, %27, %cst {dimension_numbers = #tpu.dot_dimension_numbers<[1], [0], [0], [1], [0, 0, 1, 1], [], []>} : vector<40x128xf32>, vector<128x128xf32>, vector<40x128xf32> -> vector<40x128xf32>
    %cst_22 = arith.constant dense<0.000000e+00> : vector<40x128xf32>
    %38 = tpu.matmul %22, %28, %cst_22 {dimension_numbers = #tpu.dot_dimension_numbers<[1], [0], [0], [1], [0, 0, 1, 1], [], []>} : vector<40x128xf32>, vector<128x128xf32>, vector<40x128xf32> -> vector<40x128xf32>
    %c2_i32 = arith.constant 2 : i32
    %39 = tpu.dynamic_rotate %22 by %c2_i32 dim 0 : vector<40x128xf32>, i32 -> vector<40x128xf32>
    %cst_23 = arith.constant 0.00416666688 : f32
    %40 = vector.broadcast %cst_23 : f32 to vector<40x128xf32>
    %41 = arith.mulf %40, %39 : vector<40x128xf32>
    %c1_i32 = arith.constant 1 : i32
    %42 = tpu.dynamic_rotate %22 by %c1_i32 dim 0 : vector<40x128xf32>, i32 -> vector<40x128xf32>
    %cst_24 = arith.constant -1.125000e-01 : f32
    %43 = vector.broadcast %cst_24 : f32 to vector<40x128xf32>
    %44 = arith.mulf %43, %42 : vector<40x128xf32>
    %45 = arith.addf %41, %44 : vector<40x128xf32>
    %cst_25 = arith.constant 1.125000e-01 : f32
    %46 = vector.broadcast %cst_25 : f32 to vector<40x128xf32>
    %47 = arith.mulf %46, %22 : vector<40x128xf32>
    %48 = arith.addf %45, %47 : vector<40x128xf32>
    %c39_i32 = arith.constant 39 : i32
    %49 = tpu.dynamic_rotate %22 by %c39_i32 dim 0 : vector<40x128xf32>, i32 -> vector<40x128xf32>
    %cst_26 = arith.constant -0.00416666688 : f32
    %50 = vector.broadcast %cst_26 : f32 to vector<40x128xf32>
    %51 = arith.mulf %50, %49 : vector<40x128xf32>
    %52 = arith.addf %48, %51 : vector<40x128xf32>
    %c1_i32_27 = arith.constant 1 : i32
    %53 = tpu.dynamic_rotate %26 by %c1_i32_27 dim 0 : vector<40x128xf32>, i32 -> vector<40x128xf32>
    %cst_28 = arith.constant 0.00416666688 : f32
    %54 = vector.broadcast %cst_28 : f32 to vector<40x128xf32>
    %55 = arith.mulf %54, %53 : vector<40x128xf32>
    %cst_29 = arith.constant -1.125000e-01 : f32
    %56 = vector.broadcast %cst_29 : f32 to vector<40x128xf32>
    %57 = arith.mulf %56, %26 : vector<40x128xf32>
    %58 = arith.addf %55, %57 : vector<40x128xf32>
    %c39_i32_30 = arith.constant 39 : i32
    %59 = tpu.dynamic_rotate %26 by %c39_i32_30 dim 0 : vector<40x128xf32>, i32 -> vector<40x128xf32>
    %cst_31 = arith.constant 1.125000e-01 : f32
    %60 = vector.broadcast %cst_31 : f32 to vector<40x128xf32>
    %61 = arith.mulf %60, %59 : vector<40x128xf32>
    %62 = arith.addf %58, %61 : vector<40x128xf32>
    %c38_i32 = arith.constant 38 : i32
    %63 = tpu.dynamic_rotate %26 by %c38_i32 dim 0 : vector<40x128xf32>, i32 -> vector<40x128xf32>
    %cst_32 = arith.constant -0.00416666688 : f32
    %64 = vector.broadcast %cst_32 : f32 to vector<40x128xf32>
    %65 = arith.mulf %64, %63 : vector<40x128xf32>
    %66 = arith.addf %62, %65 : vector<40x128xf32>
    %c0_33 = arith.constant 0 : index
    %c0_34 = arith.constant 0 : index
    %c0_35 = arith.constant 0 : index
    %c0_36 = arith.constant 0 : index
    %67 = vector.load %arg4[%c0_33, %c0_34, %c0_35, %c0_36] : memref<1x13x40x128xf32, #tpu.memory_space<vmem>>, vector<1x1x40x128xf32>
    %68 = vector.shape_cast %67 : vector<1x1x40x128xf32> to vector<40x128xf32>
    %69 = arith.mulf %30, %68 : vector<40x128xf32>
    %70 = arith.mulf %34, %37 : vector<40x128xf32>
    %71 = arith.addf %69, %70 : vector<40x128xf32>
    %c0_37 = arith.constant 0 : index
    %c1_38 = arith.constant 1 : index
    %c0_39 = arith.constant 0 : index
    %c0_40 = arith.constant 0 : index
    %72 = vector.load %arg4[%c0_37, %c1_38, %c0_39, %c0_40] : memref<1x13x40x128xf32, #tpu.memory_space<vmem>>, vector<1x1x40x128xf32>
    %73 = vector.shape_cast %72 : vector<1x1x40x128xf32> to vector<40x128xf32>
    %74 = arith.mulf %32, %73 : vector<40x128xf32>
    %75 = arith.mulf %34, %52 : vector<40x128xf32>
    %76 = arith.addf %74, %75 : vector<40x128xf32>
    %c0_41 = arith.constant 0 : index
    %c2_42 = arith.constant 2 : index
    %c0_43 = arith.constant 0 : index
    %c0_44 = arith.constant 0 : index
    %77 = vector.load %arg4[%c0_41, %c2_42, %c0_43, %c0_44] : memref<1x13x40x128xf32, #tpu.memory_space<vmem>>, vector<1x1x40x128xf32>
    %78 = vector.shape_cast %77 : vector<1x1x40x128xf32> to vector<40x128xf32>
    %79 = arith.mulf %30, %78 : vector<40x128xf32>
    %80 = arith.mulf %36, %38 : vector<40x128xf32>
    %81 = arith.addf %79, %80 : vector<40x128xf32>
    %c0_45 = arith.constant 0 : index
    %c3_46 = arith.constant 3 : index
    %c0_47 = arith.constant 0 : index
    %c0_48 = arith.constant 0 : index
    %82 = vector.load %arg4[%c0_45, %c3_46, %c0_47, %c0_48] : memref<1x13x40x128xf32, #tpu.memory_space<vmem>>, vector<1x1x40x128xf32>
    %83 = vector.shape_cast %82 : vector<1x1x40x128xf32> to vector<40x128xf32>
    %84 = arith.mulf %32, %83 : vector<40x128xf32>
    %85 = arith.mulf %36, %66 : vector<40x128xf32>
    %86 = arith.addf %84, %85 : vector<40x128xf32>
    %87 = arith.addf %71, %76 : vector<40x128xf32>
    %88 = arith.addf %81, %86 : vector<40x128xf32>
    %c0_49 = arith.constant 0 : index
    %c0_50 = arith.constant 0 : index
    %c0_51 = arith.constant 0 : index
    %c0_52 = arith.constant 0 : index
    %89 = vector.load %arg9[%c0_49, %c0_50, %c0_51, %c0_52] : memref<1x2x40x128xf32, #tpu.memory_space<vmem>>, vector<1x1x40x128xf32>
    %90 = vector.shape_cast %89 : vector<1x1x40x128xf32> to vector<40x128xf32>
    %91 = vector.shape_cast %87 : vector<40x128xf32> to vector<1x1x40x128xf32>
    tpu.vector_store %arg9[%c0_49, %c0_50, %c0_51, %c0_52], %91 {strides = array<i32>} : memref<1x2x40x128xf32, #tpu.memory_space<vmem>>, vector<1x1x40x128xf32>,
    %c0_53 = arith.constant 0 : index
    %c1_54 = arith.constant 1 : index
    %c0_55 = arith.constant 0 : index
    %c0_56 = arith.constant 0 : index
    %92 = vector.load %arg9[%c0_53, %c1_54, %c0_55, %c0_56] : memref<1x2x40x128xf32, #tpu.memory_space<vmem>>, vector<1x1x40x128xf32>
    %93 = vector.shape_cast %92 : vector<1x1x40x128xf32> to vector<40x128xf32>
    %94 = vector.shape_cast %88 : vector<40x128xf32> to vector<1x1x40x128xf32>
    tpu.vector_store %arg9[%c0_53, %c1_54, %c0_55, %c0_56], %94 {strides = array<i32>} : memref<1x2x40x128xf32, #tpu.memory_space<vmem>>, vector<1x1x40x128xf32>,
    %c0_57 = arith.constant 0 : index
    %c0_58 = arith.constant 0 : index
    %c0_59 = arith.constant 0 : index
    %c0_60 = arith.constant 0 : index
    %95 = vector.load %arg8[%c0_57, %c0_58, %c0_59, %c0_60] : memref<1x13x40x128xf32, #tpu.memory_space<vmem>>, vector<1x1x40x128xf32>
    %96 = vector.shape_cast %95 : vector<1x1x40x128xf32> to vector<40x128xf32>
    %97 = vector.shape_cast %71 : vector<40x128xf32> to vector<1x1x40x128xf32>
    tpu.vector_store %arg8[%c0_57, %c0_58, %c0_59, %c0_60], %97 {strides = array<i32>} : memref<1x13x40x128xf32, #tpu.memory_space<vmem>>, vector<1x1x40x128xf32>,
    %c0_61 = arith.constant 0 : index
    %c1_62 = arith.constant 1 : index
    %c0_63 = arith.constant 0 : index
    %c0_64 = arith.constant 0 : index
    %98 = vector.load %arg8[%c0_61, %c1_62, %c0_63, %c0_64] : memref<1x13x40x128xf32, #tpu.memory_space<vmem>>, vector<1x1x40x128xf32>
    %99 = vector.shape_cast %98 : vector<1x1x40x128xf32> to vector<40x128xf32>
    %100 = vector.shape_cast %76 : vector<40x128xf32> to vector<1x1x40x128xf32>
    tpu.vector_store %arg8[%c0_61, %c1_62, %c0_63, %c0_64], %100 {strides = array<i32>} : memref<1x13x40x128xf32, #tpu.memory_space<vmem>>, vector<1x1x40x128xf32>,
    %c0_65 = arith.constant 0 : index
    %c2_66 = arith.constant 2 : index
    %c0_67 = arith.constant 0 : index
    %c0_68 = arith.constant 0 : index
    %101 = vector.load %arg8[%c0_65, %c2_66, %c0_67, %c0_68] : memref<1x13x40x128xf32, #tpu.memory_space<vmem>>, vector<1x1x40x128xf32>
    %102 = vector.shape_cast %101 : vector<1x1x40x128xf32> to vector<40x128xf32>
    %103 = vector.shape_cast %81 : vector<40x128xf32> to vector<1x1x40x128xf32>
    tpu.vector_store %arg8[%c0_65, %c2_66, %c0_67, %c0_68], %103 {strides = array<i32>} : memref<1x13x40x128xf32, #tpu.memory_space<vmem>>, vector<1x1x40x128xf32>,
    %c0_69 = arith.constant 0 : index
    %c3_70 = arith.constant 3 : index
    %c0_71 = arith.constant 0 : index
    %c0_72 = arith.constant 0 : index
    %104 = vector.load %arg8[%c0_69, %c3_70, %c0_71, %c0_72] : memref<1x13x40x128xf32, #tpu.memory_space<vmem>>, vector<1x1x40x128xf32>
    %105 = vector.shape_cast %104 : vector<1x1x40x128xf32> to vector<40x128xf32>
    %106 = vector.shape_cast %86 : vector<40x128xf32> to vector<1x1x40x128xf32>
    tpu.vector_store %arg8[%c0_69, %c3_70, %c0_71, %c0_72], %106 {strides = array<i32>} : memref<1x13x40x128xf32, #tpu.memory_space<vmem>>, vector<1x1x40x128xf32>,
    %c4_73 = arith.constant 4 : index
    %c0_74 = arith.constant 0 : index
    %c0_75 = arith.constant 0 : index
    %107 = vector.load %arg5[%c4_73, %c0_74, %c0_75] : memref<9x40x128xf32, #tpu.memory_space<vmem>>, vector<1x40x128xf32>
    %108 = vector.shape_cast %107 : vector<1x40x128xf32> to vector<40x128xf32>
    %c5_76 = arith.constant 5 : index
    %c0_77 = arith.constant 0 : index
    %c0_78 = arith.constant 0 : index
    %109 = vector.load %arg5[%c5_76, %c0_77, %c0_78] : memref<9x40x128xf32, #tpu.memory_space<vmem>>, vector<1x40x128xf32>
    %110 = vector.shape_cast %109 : vector<1x40x128xf32> to vector<40x128xf32>
    %c6_79 = arith.constant 6 : index
    %c0_80 = arith.constant 0 : index
    %c0_81 = arith.constant 0 : index
    %111 = vector.load %arg5[%c6_79, %c0_80, %c0_81] : memref<9x40x128xf32, #tpu.memory_space<vmem>>, vector<1x40x128xf32>
    %112 = vector.shape_cast %111 : vector<1x40x128xf32> to vector<40x128xf32>
    %c7 = arith.constant 7 : index
    %c0_82 = arith.constant 0 : index
    %c0_83 = arith.constant 0 : index
    %113 = vector.load %arg5[%c7, %c0_82, %c0_83] : memref<9x40x128xf32, #tpu.memory_space<vmem>>, vector<1x40x128xf32>
    %114 = vector.shape_cast %113 : vector<1x40x128xf32> to vector<40x128xf32>
    %c8 = arith.constant 8 : index
    %c0_84 = arith.constant 0 : index
    %c0_85 = arith.constant 0 : index
    %115 = vector.load %arg5[%c8, %c0_84, %c0_85] : memref<9x40x128xf32, #tpu.memory_space<vmem>>, vector<1x40x128xf32>
    %116 = vector.shape_cast %115 : vector<1x40x128xf32> to vector<40x128xf32>
    %cst_86 = arith.constant dense<0.000000e+00> : vector<40x128xf32>
    %117 = tpu.matmul %87, %28, %cst_86 {dimension_numbers = #tpu.dot_dimension_numbers<[1], [0], [0], [1], [0, 0, 1, 1], [], []>} : vector<40x128xf32>, vector<128x128xf32>, vector<40x128xf32> -> vector<40x128xf32>
    %cst_87 = arith.constant dense<0.000000e+00> : vector<40x128xf32>
    %118 = tpu.matmul %88, %27, %cst_87 {dimension_numbers = #tpu.dot_dimension_numbers<[1], [0], [0], [1], [0, 0, 1, 1], [], []>} : vector<40x128xf32>, vector<128x128xf32>, vector<40x128xf32> -> vector<40x128xf32>
    %c1_i32_88 = arith.constant 1 : i32
    %119 = tpu.dynamic_rotate %87 by %c1_i32_88 dim 0 : vector<40x128xf32>, i32 -> vector<40x128xf32>
    %cst_89 = arith.constant 0.00416666688 : f32
    %120 = vector.broadcast %cst_89 : f32 to vector<40x128xf32>
    %121 = arith.mulf %120, %119 : vector<40x128xf32>
    %cst_90 = arith.constant -1.125000e-01 : f32
    %122 = vector.broadcast %cst_90 : f32 to vector<40x128xf32>
    %123 = arith.mulf %122, %87 : vector<40x128xf32>
    %124 = arith.addf %121, %123 : vector<40x128xf32>
    %c39_i32_91 = arith.constant 39 : i32
    %125 = tpu.dynamic_rotate %87 by %c39_i32_91 dim 0 : vector<40x128xf32>, i32 -> vector<40x128xf32>
    %cst_92 = arith.constant 1.125000e-01 : f32
    %126 = vector.broadcast %cst_92 : f32 to vector<40x128xf32>
    %127 = arith.mulf %126, %125 : vector<40x128xf32>
    %128 = arith.addf %124, %127 : vector<40x128xf32>
    %c38_i32_93 = arith.constant 38 : i32
    %129 = tpu.dynamic_rotate %87 by %c38_i32_93 dim 0 : vector<40x128xf32>, i32 -> vector<40x128xf32>
    %cst_94 = arith.constant -0.00416666688 : f32
    %130 = vector.broadcast %cst_94 : f32 to vector<40x128xf32>
    %131 = arith.mulf %130, %129 : vector<40x128xf32>
    %132 = arith.addf %128, %131 : vector<40x128xf32>
    %c2_i32_95 = arith.constant 2 : i32
    %133 = tpu.dynamic_rotate %88 by %c2_i32_95 dim 0 : vector<40x128xf32>, i32 -> vector<40x128xf32>
    %cst_96 = arith.constant 0.00416666688 : f32
    %134 = vector.broadcast %cst_96 : f32 to vector<40x128xf32>
    %135 = arith.mulf %134, %133 : vector<40x128xf32>
    %c1_i32_97 = arith.constant 1 : i32
    %136 = tpu.dynamic_rotate %88 by %c1_i32_97 dim 0 : vector<40x128xf32>, i32 -> vector<40x128xf32>
    %cst_98 = arith.constant -1.125000e-01 : f32
    %137 = vector.broadcast %cst_98 : f32 to vector<40x128xf32>
    %138 = arith.mulf %137, %136 : vector<40x128xf32>
    %139 = arith.addf %135, %138 : vector<40x128xf32>
    %cst_99 = arith.constant 1.125000e-01 : f32
    %140 = vector.broadcast %cst_99 : f32 to vector<40x128xf32>
    %141 = arith.mulf %140, %88 : vector<40x128xf32>
    %142 = arith.addf %139, %141 : vector<40x128xf32>
    %c39_i32_100 = arith.constant 39 : i32
    %143 = tpu.dynamic_rotate %88 by %c39_i32_100 dim 0 : vector<40x128xf32>, i32 -> vector<40x128xf32>
    %cst_101 = arith.constant -0.00416666688 : f32
    %144 = vector.broadcast %cst_101 : f32 to vector<40x128xf32>
    %145 = arith.mulf %144, %143 : vector<40x128xf32>
    %146 = arith.addf %142, %145 : vector<40x128xf32>
    %c0_102 = arith.constant 0 : index
    %c7_103 = arith.constant 7 : index
    %c0_104 = arith.constant 0 : index
    %c0_105 = arith.constant 0 : index
    %147 = vector.load %arg4[%c0_102, %c7_103, %c0_104, %c0_105] : memref<1x13x40x128xf32, #tpu.memory_space<vmem>>, vector<1x1x40x128xf32>
    %148 = vector.shape_cast %147 : vector<1x1x40x128xf32> to vector<40x128xf32>
    %149 = arith.mulf %30, %148 : vector<40x128xf32>
    %150 = arith.mulf %108, %117 : vector<40x128xf32>
    %151 = arith.addf %149, %150 : vector<40x128xf32>
    %c0_106 = arith.constant 0 : index
    %c8_107 = arith.constant 8 : index
    %c0_108 = arith.constant 0 : index
    %c0_109 = arith.constant 0 : index
    %152 = vector.load %arg4[%c0_106, %c8_107, %c0_108, %c0_109] : memref<1x13x40x128xf32, #tpu.memory_space<vmem>>, vector<1x1x40x128xf32>
    %153 = vector.shape_cast %152 : vector<1x1x40x128xf32> to vector<40x128xf32>
    %154 = arith.mulf %32, %153 : vector<40x128xf32>
    %155 = arith.mulf %110, %146 : vector<40x128xf32>
    %156 = arith.addf %154, %155 : vector<40x128xf32>
    %c0_110 = arith.constant 0 : index
    %c9 = arith.constant 9 : index
    %c0_111 = arith.constant 0 : index
    %c0_112 = arith.constant 0 : index
    %157 = vector.load %arg4[%c0_110, %c9, %c0_111, %c0_112] : memref<1x13x40x128xf32, #tpu.memory_space<vmem>>, vector<1x1x40x128xf32>
    %158 = vector.shape_cast %157 : vector<1x1x40x128xf32> to vector<40x128xf32>
    %159 = arith.mulf %30, %158 : vector<40x128xf32>
    %160 = arith.mulf %112, %117 : vector<40x128xf32>
    %161 = arith.addf %159, %160 : vector<40x128xf32>
    %c0_113 = arith.constant 0 : index
    %c10 = arith.constant 10 : index
    %c0_114 = arith.constant 0 : index
    %c0_115 = arith.constant 0 : index
    %162 = vector.load %arg4[%c0_113, %c10, %c0_114, %c0_115] : memref<1x13x40x128xf32, #tpu.memory_space<vmem>>, vector<1x1x40x128xf32>
    %163 = vector.shape_cast %162 : vector<1x1x40x128xf32> to vector<40x128xf32>
    %164 = arith.mulf %32, %163 : vector<40x128xf32>
    %165 = arith.mulf %114, %146 : vector<40x128xf32>
    %166 = arith.addf %164, %165 : vector<40x128xf32>
    %c0_116 = arith.constant 0 : index
    %c11 = arith.constant 11 : index
    %c0_117 = arith.constant 0 : index
    %c0_118 = arith.constant 0 : index
    %167 = vector.load %arg4[%c0_116, %c11, %c0_117, %c0_118] : memref<1x13x40x128xf32, #tpu.memory_space<vmem>>, vector<1x1x40x128xf32>
    %168 = vector.shape_cast %167 : vector<1x1x40x128xf32> to vector<40x128xf32>
    %169 = arith.mulf %30, %168 : vector<40x128xf32>
    %170 = arith.mulf %116, %132 : vector<40x128xf32>
    %171 = arith.addf %169, %170 : vector<40x128xf32>
    %c0_119 = arith.constant 0 : index
    %c12 = arith.constant 12 : index
    %c0_120 = arith.constant 0 : index
    %c0_121 = arith.constant 0 : index
    %172 = vector.load %arg4[%c0_119, %c12, %c0_120, %c0_121] : memref<1x13x40x128xf32, #tpu.memory_space<vmem>>, vector<1x1x40x128xf32>
    %173 = vector.shape_cast %172 : vector<1x1x40x128xf32> to vector<40x128xf32>
    %174 = arith.mulf %32, %173 : vector<40x128xf32>
    %175 = arith.mulf %116, %118 : vector<40x128xf32>
    %176 = arith.addf %174, %175 : vector<40x128xf32>
    %177 = arith.addf %151, %156 : vector<40x128xf32>
    %c0_122 = arith.constant 0 : index
    %c4_123 = arith.constant 4 : index
    %c0_124 = arith.constant 0 : index
    %c0_125 = arith.constant 0 : index
    %178 = vector.load %arg8[%c0_122, %c4_123, %c0_124, %c0_125] : memref<1x13x40x128xf32, #tpu.memory_space<vmem>>, vector<1x1x40x128xf32>
    %179 = vector.shape_cast %178 : vector<1x1x40x128xf32> to vector<40x128xf32>
    %180 = vector.shape_cast %177 : vector<40x128xf32> to vector<1x1x40x128xf32>
    tpu.vector_store %arg8[%c0_122, %c4_123, %c0_124, %c0_125], %180 {strides = array<i32>} : memref<1x13x40x128xf32, #tpu.memory_space<vmem>>, vector<1x1x40x128xf32>,
    %181 = arith.addf %161, %166 : vector<40x128xf32>
    %c0_126 = arith.constant 0 : index
    %c5_127 = arith.constant 5 : index
    %c0_128 = arith.constant 0 : index
    %c0_129 = arith.constant 0 : index
    %182 = vector.load %arg8[%c0_126, %c5_127, %c0_128, %c0_129] : memref<1x13x40x128xf32, #tpu.memory_space<vmem>>, vector<1x1x40x128xf32>
    %183 = vector.shape_cast %182 : vector<1x1x40x128xf32> to vector<40x128xf32>
    %184 = vector.shape_cast %181 : vector<40x128xf32> to vector<1x1x40x128xf32>
    tpu.vector_store %arg8[%c0_126, %c5_127, %c0_128, %c0_129], %184 {strides = array<i32>} : memref<1x13x40x128xf32, #tpu.memory_space<vmem>>, vector<1x1x40x128xf32>,
    %185 = arith.addf %171, %176 : vector<40x128xf32>
    %c0_130 = arith.constant 0 : index
    %c6_131 = arith.constant 6 : index
    %c0_132 = arith.constant 0 : index
    %c0_133 = arith.constant 0 : index
    %186 = vector.load %arg8[%c0_130, %c6_131, %c0_132, %c0_133] : memref<1x13x40x128xf32, #tpu.memory_space<vmem>>, vector<1x1x40x128xf32>
    %187 = vector.shape_cast %186 : vector<1x1x40x128xf32> to vector<40x128xf32>
    %188 = vector.shape_cast %185 : vector<40x128xf32> to vector<1x1x40x128xf32>
    tpu.vector_store %arg8[%c0_130, %c6_131, %c0_132, %c0_133], %188 {strides = array<i32>} : memref<1x13x40x128xf32, #tpu.memory_space<vmem>>, vector<1x1x40x128xf32>,
    %c0_134 = arith.constant 0 : index
    %c7_135 = arith.constant 7 : index
    %c0_136 = arith.constant 0 : index
    %c0_137 = arith.constant 0 : index
    %189 = vector.load %arg8[%c0_134, %c7_135, %c0_136, %c0_137] : memref<1x13x40x128xf32, #tpu.memory_space<vmem>>, vector<1x1x40x128xf32>
    %190 = vector.shape_cast %189 : vector<1x1x40x128xf32> to vector<40x128xf32>
    %191 = vector.shape_cast %151 : vector<40x128xf32> to vector<1x1x40x128xf32>
    tpu.vector_store %arg8[%c0_134, %c7_135, %c0_136, %c0_137], %191 {strides = array<i32>} : memref<1x13x40x128xf32, #tpu.memory_space<vmem>>, vector<1x1x40x128xf32>,
    %c0_138 = arith.constant 0 : index
    %c8_139 = arith.constant 8 : index
    %c0_140 = arith.constant 0 : index
    %c0_141 = arith.constant 0 : index
    %192 = vector.load %arg8[%c0_138, %c8_139, %c0_140, %c0_141] : memref<1x13x40x128xf32, #tpu.memory_space<vmem>>, vector<1x1x40x128xf32>
    %193 = vector.shape_cast %192 : vector<1x1x40x128xf32> to vector<40x128xf32>
    %194 = vector.shape_cast %156 : vector<40x128xf32> to vector<1x1x40x128xf32>
    tpu.vector_store %arg8[%c0_138, %c8_139, %c0_140, %c0_141], %194 {strides = array<i32>} : memref<1x13x40x128xf32, #tpu.memory_space<vmem>>, vector<1x1x40x128xf32>,
    %c0_142 = arith.constant 0 : index
    %c9_143 = arith.constant 9 : index
    %c0_144 = arith.constant 0 : index
    %c0_145 = arith.constant 0 : index
    %195 = vector.load %arg8[%c0_142, %c9_143, %c0_144, %c0_145] : memref<1x13x40x128xf32, #tpu.memory_space<vmem>>, vector<1x1x40x128xf32>
    %196 = vector.shape_cast %195 : vector<1x1x40x128xf32> to vector<40x128xf32>
    %197 = vector.shape_cast %161 : vector<40x128xf32> to vector<1x1x40x128xf32>
    tpu.vector_store %arg8[%c0_142, %c9_143, %c0_144, %c0_145], %197 {strides = array<i32>} : memref<1x13x40x128xf32, #tpu.memory_space<vmem>>, vector<1x1x40x128xf32>,
    %c0_146 = arith.constant 0 : index
    %c10_147 = arith.constant 10 : index
    %c0_148 = arith.constant 0 : index
    %c0_149 = arith.constant 0 : index
    %198 = vector.load %arg8[%c0_146, %c10_147, %c0_148, %c0_149] : memref<1x13x40x128xf32, #tpu.memory_space<vmem>>, vector<1x1x40x128xf32>
    %199 = vector.shape_cast %198 : vector<1x1x40x128xf32> to vector<40x128xf32>
    %200 = vector.shape_cast %166 : vector<40x128xf32> to vector<1x1x40x128xf32>
    tpu.vector_store %arg8[%c0_146, %c10_147, %c0_148, %c0_149], %200 {strides = array<i32>} : memref<1x13x40x128xf32, #tpu.memory_space<vmem>>, vector<1x1x40x128xf32>,
    %c0_150 = arith.constant 0 : index
    %c11_151 = arith.constant 11 : index
    %c0_152 = arith.constant 0 : index
    %c0_153 = arith.constant 0 : index
    %201 = vector.load %arg8[%c0_150, %c11_151, %c0_152, %c0_153] : memref<1x13x40x128xf32, #tpu.memory_space<vmem>>, vector<1x1x40x128xf32>
    %202 = vector.shape_cast %201 : vector<1x1x40x128xf32> to vector<40x128xf32>
    %203 = vector.shape_cast %171 : vector<40x128xf32> to vector<1x1x40x128xf32>
    tpu.vector_store %arg8[%c0_150, %c11_151, %c0_152, %c0_153], %203 {strides = array<i32>} : memref<1x13x40x128xf32, #tpu.memory_space<vmem>>, vector<1x1x40x128xf32>,
    %c0_154 = arith.constant 0 : index
    %c12_155 = arith.constant 12 : index
    %c0_156 = arith.constant 0 : index
    %c0_157 = arith.constant 0 : index
    %204 = vector.load %arg8[%c0_154, %c12_155, %c0_156, %c0_157] : memref<1x13x40x128xf32, #tpu.memory_space<vmem>>, vector<1x1x40x128xf32>
    %205 = vector.shape_cast %204 : vector<1x1x40x128xf32> to vector<40x128xf32>
    %206 = vector.shape_cast %176 : vector<40x128xf32> to vector<1x1x40x128xf32>
    tpu.vector_store %arg8[%c0_154, %c12_155, %c0_156, %c0_157], %206 {strides = array<i32>} : memref<1x13x40x128xf32, #tpu.memory_space<vmem>>, vector<1x1x40x128xf32>,
    return
  }
  func.func @transform_0(%arg0: i32, %arg1: memref<1xf32, #tpu.memory_space<smem>>, %arg2: memref<4xi32, #tpu.memory_space<smem>>, %arg3: memref<4xi32, #tpu.memory_space<smem>>) -> (i32, i32, i32, i32) {
    %c0_i32 = arith.constant 0 : i32
    %c0_i32_0 = arith.constant 0 : i32
    %c0_i32_1 = arith.constant 0 : i32
    %c0_i32_2 = arith.constant 0 : i32
    return %arg0, %c0_i32, %c0_i32_0, %c0_i32_1 : i32, i32, i32, i32
  }
  func.func @transform_1(%arg0: i32, %arg1: memref<1xf32, #tpu.memory_space<smem>>, %arg2: memref<4xi32, #tpu.memory_space<smem>>, %arg3: memref<4xi32, #tpu.memory_space<smem>>) -> (i32, i32, i32) {
    %c0_i32 = arith.constant 0 : i32
    %c0_i32_0 = arith.constant 0 : i32
    %c0_i32_1 = arith.constant 0 : i32
    %c0_i32_2 = arith.constant 0 : i32
    return %c0_i32, %c0_i32_0, %c0_i32_1 : i32, i32, i32
  }
  func.func @transform_2(%arg0: i32, %arg1: memref<1xf32, #tpu.memory_space<smem>>, %arg2: memref<4xi32, #tpu.memory_space<smem>>, %arg3: memref<4xi32, #tpu.memory_space<smem>>) -> (i32, i32) {
    %c0_i32 = arith.constant 0 : i32
    %c0_i32_0 = arith.constant 0 : i32
    %c0_i32_1 = arith.constant 0 : i32
    return %c0_i32, %c0_i32_0 : i32, i32
  }
  func.func @transform_3(%arg0: i32, %arg1: memref<1xf32, #tpu.memory_space<smem>>, %arg2: memref<4xi32, #tpu.memory_space<smem>>, %arg3: memref<4xi32, #tpu.memory_space<smem>>) -> (i32, i32) {
    %c0_i32 = arith.constant 0 : i32
    %c0_i32_0 = arith.constant 0 : i32
    %c0_i32_1 = arith.constant 0 : i32
    return %c0_i32, %c0_i32_0 : i32, i32
  }
  func.func @transform_4(%arg0: i32, %arg1: memref<1xf32, #tpu.memory_space<smem>>, %arg2: memref<4xi32, #tpu.memory_space<smem>>, %arg3: memref<4xi32, #tpu.memory_space<smem>>) -> (i32, i32, i32, i32) {
    %c0_i32 = arith.constant 0 : i32
    %c0_i32_0 = arith.constant 0 : i32
    %c0_i32_1 = arith.constant 0 : i32
    %c0_i32_2 = arith.constant 0 : i32
    return %arg0, %c0_i32, %c0_i32_0, %c0_i32_1 : i32, i32, i32, i32
  }
  func.func @transform_5(%arg0: i32, %arg1: memref<1xf32, #tpu.memory_space<smem>>, %arg2: memref<4xi32, #tpu.memory_space<smem>>, %arg3: memref<4xi32, #tpu.memory_space<smem>>) -> (i32, i32, i32, i32) {
    %c0_i32 = arith.constant 0 : i32
    %c0_i32_0 = arith.constant 0 : i32
    %c0_i32_1 = arith.constant 0 : i32
    %c0_i32_2 = arith.constant 0 : i32
    return %arg0, %c0_i32, %c0_i32_0, %c0_i32_1 : i32, i32, i32, i32
  }
}

</mosaic_0001>

<bundles_post_ra>
// kernel: step.1
= control target key start
LH: loop header
LB: loop body
LE: loop exit
PB: predicated region body
PF: predicated region fallthrough
CT: control target
= control target key end

     0   :  { %s3933_s0 = inlined_call_operand.<no memory space> [shape: f32[1], index: 0, kind: input, shape index: {}]   ;;  %s3934_s1 = inlined_call_operand.hbm [shape: s32[4], index: 1, kind: input, shape index: {}]   ;;  %s3935_s3 = inlined_call_operand.hbm [shape: f32[4,13,40,128], index: 3, kind: input, shape index: {}]   ;;  %s3936_s4 = inlined_call_operand.hbm [shape: f32[9,40,128], index: 4, kind: input, shape index: {}]   ;;  %s3937_s5 = inlined_call_operand.hbm [shape: f32[128,128], index: 5, kind: input, shape index: {}]   ;;  %s3938_s6 = inlined_call_operand.hbm [shape: f32[128,128], index: 6, kind: input, shape index: {}]   ;;  %s3939_s7 = inlined_call_operand.hbm [shape: f32[4,13,40,128], index: 7, kind: output, shape index: {0}]   ;;  %s3940_s8 = inlined_call_operand.hbm [shape: f32[4,2,40,128], index: 8, kind: output, shape index: {1}]   ;;  %s3941_s2 = inlined_call_operand.hbm [shape: s32[4], index: 2, kind: input, shape index: {}]  }
   0x1   :  { %14 = sst [smem:[#allocation3]] %s3933_s0  ;;  %s2192_s9 = scalar_lea.hbm %s3934_s1, 16 }
   0x2   :  { %p2193_p0 = scmp.ne.s32.totalorder %s3934_s1, %s2192_s9  ;;  %p2196_p1 = scmp.lt.u32.totalorder %s2192_s9, %s3934_s1 }
   0x4   :  { %p2198_p2 = pnand %p2196_p1, %p2193_p0 }
   0x6   :  { %2201 = shalt.err (!%p2198_p2)  }
   0x7   :  { %s2436_s14 = smov [#allocation4]   ;;  %s2202_s18 = scalar_lea.hbm %s3941_s2, 16 }
   0x8   :  { %16 = dma.hbm_to_smem %s3934_s1, 16, %s2436_s14, [#allocation2] }
   0x9   :  { %p2203_p3 = scmp.ne.s32.totalorder %s3941_s2, %s2202_s18  ;;  %p2206_p4 = scmp.lt.u32.totalorder %s2202_s18, %s3941_s2 }
   0xb   :  { %p2208_p5 = pnand %p2206_p4, %p2203_p3 }
   0xd   :  { %2211 = shalt.err (!%p2208_p5)  }
   0xe   :  { %s2437_s23 = smov [#allocation5]  }
   0xf   :  { %18 = dma.hbm_to_smem %s3941_s2, 16, %s2437_s23, [#allocation2] }
  0x10   :  { %2398 = dma.done.wait [#allocation2], 32 }
  0x11   :  { %2399 = vsyncadd [#allocation2], 4294967264 }
  0x12   :  { %20 = sfence }
  0x13   :  { %21 = vsyncpa [#allocation7], 0 }
  0x14   :  { %23 = vsyncpa [#allocation7 + $0x1], 0 }
  0x15   :  { %24 = vsyncpa [#allocation10], 0 }
  0x16   :  { %25 = vsyncpa [#allocation13], 0 }
  0x17   :  { %26 = vsyncpa [#allocation8], 0 }
  0x18   :  { %28 = vsyncpa [#allocation8 + $0x1], 0 }
  0x19   :  { %29 = vsyncpa [#allocation16], 0 }
  0x1a   :  { %31 = vsyncpa [#allocation16 + $0x1], 0  ;;  %s2523_s1 = smov 0   ;;  %s2525_s26 = smov 0  }
  0x1b   :  { %s2527_s27 = smov 0   ;;  %s2529_s28 = smov 0  }
  0x1c LB: > { %s2544_s2 = sadd.s32 4294967295, %s2434_s28   ;;  %s1585_s29 = sadd.s32 4294967294, %s2434_s28   ;;  %s2434_s28 = sphi %s2529_s28, %s3987_s28   ;;  %s2430_s27 = sphi %s2527_s27, %s3986_s27   ;;  %s2426_s26 = sphi %s2525_s26, %s3985_s26   ;;  %s2422_s1 = sphi %s2523_s1, %s3984_s1  }
  0x1d   : > { %p57_p6 = scmp.ne.s32.totalorder %s2426_s26, %s2422_s1  ;;  %p3942_p7 = scmp.eq.s32.totalorder %s2544_s2, 0 }
  0x1e   : > { %p150_p9 = scmp.eq.s32.totalorder %s1585_s29, 3  ;;  %p1586_p11 = scmp.ge.s32.totalorder %s2434_s28, 1 }
  0x1f   : > { %p2553_p10 = por %p3942_p7, %p57_p6  ;;  %p183_p13 = scmp.lt.s32.totalorder %s2434_s28, 5 }
  0x20   : > { %p2558_p12 = por %p150_p9, %p57_p6  ;;  %s2438_s11 = smov [#allocation9]  }
  0x21   : > { %s3951_s30 = scalar_select %p2553_p10, 1, 0 }
  0x22   : > { %s3952_s9 = scalar_select %p2558_p12, 1, 0 }
  0x23   : > { %p2563_p0 = pnand %p1586_p11, %p183_p13  ;;  %s195_s12 = sshll.u32 %s2438_s11, 4  ;;  %s2567_s12 = int_to_ptr.vmem [resolvable:$true] %s195_s12 }
  0x24   : > { %s2439_s14 = smov [#allocation11]   ;;  %s2440_s16 = smov [#allocation12]  }
  0x25   : > { %s3953_s10 = scalar_select %p2563_p0, 1, 0 }
  0x26   : > { %p2119_p1 = pneg %p2563_p0  ;;  %s208_s15 = sshll.u32 %s2439_s14, 4  ;;  %s2577_s15 = int_to_ptr.vmem [resolvable:$true] %s208_s15 }
  0x27   : > { %s2579_s0 = sshll.u32 %s2440_s16, 4  ;;  %s2212_s19 = scalar_lea.hbm %s3936_s4, 5760  ;;  %s222_s0 = int_to_ptr.vmem [resolvable:$true] %s2579_s0 }
  0x28   : > { %p2573_p2 = pnand %p2119_p1, %p3942_p7  ;;  %p2213_p3 = scmp.ne.s32.totalorder %s3936_s4, %s2212_s19 }
  0x29   : > { %p2219_p9 = scmp.lt.u32.totalorder %s2212_s19, %s3936_s4 }
  0x2a   : > { %p2589_p4 = pneg %p2573_p2 }
  0x2c   : > { %p2215_p5 = pnand %p2589_p4, %p2213_p3 }
  0x2e   : > { %p2216_p6 = pneg %p2215_p5 }
  0x30   : > { %p2221_p11 = pnand %p2219_p9, %p2216_p6 }
  0x32   : > { %2224 = shalt.err (!%p2221_p11)
}
  0x33   : > { %s2225_s25 = scalar_lea.vmem %s2567_s12, 5760  ;;  %p2233_p8 = scmp.lt.s32.totalorder %s2567_s12, %s2567_s12 }
  0x34   : > { %p2226_p13 = scmp.ne.s32.totalorder %s2567_s12, %s2225_s25  ;;  %p2234_p12 = scmp.lt.s32.totalorder %s2225_s25, %s2225_s25 }
  0x36   : > { %p2228_p1 = pnand %p2226_p13, %p2589_p4  ;;  %p2235_p3 = por %p2234_p12, %p2233_p8 }
  0x38   : > { %p2229_p7 = pneg %p2228_p1 }
  0x3a   : > { %p2236_p5 = pnand %p2235_p3, %p2229_p7 }
  0x3c   : > { %2239 = shalt.err (!%p2236_p5)
}
  0x3d   : > { %s3945_s29 = smov 128   ;;  %s2442_s11 = smov 8  }
  0x3e   : > { %2122 = dma.hbm_to_vmem [thread:$0]  (!%p2573_p2), %s3936_s4, 5760, %s2567_s12, [#allocation10], %s3945_s29, %s3945_s29, %s2442_s11  }
  0x3f   : > { %s2240_s19 = scalar_lea.hbm %s3937_s5, 2048 }
  0x40   : > { %p2241_p7 = scmp.ne.s32.totalorder %s3937_s5, %s2240_s19  ;;  %p2247_p6 = scmp.lt.u32.totalorder %s2240_s19, %s3937_s5 }
  0x42   : > { %p2243_p8 = pnand %p2241_p7, %p2589_p4 }
  0x44   : > { %p2244_p12 = pneg %p2243_p8 }
  0x46   : > { %p2249_p9 = pnand %p2247_p6, %p2244_p12 }
  0x48   : > { %2252 = shalt.err (!%p2249_p9)
}
  0x49   : > { %s2253_s12 = scalar_lea.vmem %s2577_s15, 2048  ;;  %p2261_p3 = scmp.lt.s32.totalorder %s2577_s15, %s2577_s15 }
  0x4a   : > { %p2254_p11 = scmp.ne.s32.totalorder %s2577_s15, %s2253_s12  ;;  %p2262_p5 = scmp.lt.s32.totalorder %s2253_s12, %s2253_s12 }
  0x4c   : > { %p2256_p13 = pnand %p2254_p11, %p2589_p4  ;;  %p2263_p7 = por %p2262_p5, %p2261_p3 }
  0x4e   : > { %p2257_p1 = pneg %p2256_p13 }
  0x50   : > { %p2264_p8 = pnand %p2263_p7, %p2257_p1 }
  0x52   : > { %2267 = shalt.err (!%p2264_p8)
}
  0x53   : > { %2125 = dma.hbm_to_vmem [thread:$0]  (!%p2573_p2), %s3937_s5, 2048, %s2577_s15, [#allocation10], %s3945_s29, %s3945_s29, %s2442_s11  }
  0x54   : > { %s2268_s18 = scalar_lea.hbm %s3938_s6, 2048 }
  0x55   : > { %p2269_p12 = scmp.ne.s32.totalorder %s3938_s6, %s2268_s18  ;;  %p2275_p11 = scmp.lt.u32.totalorder %s2268_s18, %s3938_s6 }
  0x57   : > { %p2271_p6 = pnand %p2269_p12, %p2589_p4 }
  0x59   : > { %p2272_p9 = pneg %p2271_p6 }
  0x5b   : > { %p2277_p13 = pnand %p2275_p11, %p2272_p9 }
  0x5d   : > { %2280 = shalt.err (!%p2277_p13)
}
  0x5e   : > { %s2281_s24 = scalar_lea.vmem %s222_s0, 2048  ;;  %p2289_p7 = scmp.lt.s32.totalorder %s222_s0, %s222_s0 }
  0x5f   : > { %p2282_p1 = scmp.ne.s32.totalorder %s222_s0, %s2281_s24  ;;  %p2290_p8 = scmp.lt.s32.totalorder %s2281_s24, %s2281_s24 }
  0x61   : > { %p2284_p3 = pnand %p2282_p1, %p2589_p4  ;;  %p2291_p10 = por %p2290_p8, %p2289_p7 }
  0x63   : > { %p2285_p5 = pneg %p2284_p3 }
  0x65   : > { %p2292_p0 = pnand %p2291_p10, %p2285_p5 }
  0x67   : > { %2295 = shalt.err (!%p2292_p0)
}
  0x68   : > { %2128 = dma.hbm_to_vmem [thread:$0]  (!%p2573_p2), %s3938_s6, 2048, %s222_s0, [#allocation13], %s3945_s29, %s3945_s29, %s2442_s11  }
  0x69   : > { %s2662_s22 = sadd.s32 1, %s2434_s28   ;;  %s44_s25 = sadd.s32 1, %s2430_s27 }
  0x6a   : > { %s41_s13 = ssub.s32 %s2434_s28, %s2662_s22  ;;  %p51_p0 = scmp.ne.s32.totalorder %s2430_s27, %s2426_s26 }
  0x6b   : > { %p42_p10 = scmp.eq.s32.totalorder %s41_s13, 0  ;;  %p52_p4 = scmp.eq.s32.totalorder %s2434_s28, 0 }
  0x6c   : > { %p2143_p12 = scmp.lt.s32.totalorder %s2434_s28, 4  ;;  %p3956_p9 = scmp.eq.s32.totalorder %s2544_s2, 3 }
  0x6d   : > { %s2672_s14 = scalar_select %p42_p10, %s2430_s27, %s44_s25  }
  0x6e   : > { %p53_p6 = por %p52_p4, %p51_p0  ;;  %p2676_p11 = por %p3956_p9, %p51_p0 }
  0x6f   : > { %s235_s17 = sand.u32 1, %s2430_s27   ;;  %s2096_s18 = smul.u32 8320, %s2434_s28 }
  0x70   : > { %s2095_s0 = smul.u32 520, %s235_s17  ;;  %p2682_p2 = pnand %p2143_p12, %p53_p6 }
  0x71   : > { %s2689_s23 = scalar_lea.hbm %s3935_s3, %s2096_s18  ;;  %s2693_s12 = scalar_lea.sflag [#allocation7], %s235_s17 }
  0x72   : > { %s239_s24 = scalar_lea.vmem [#allocation6], %s2095_s0  ;;  %s2296_s13 = scalar_lea.hbm %s2689_s23, 8320 }
  0x73   : > { %s246_s15 = sshll.u32 %s239_s24, 4  ;;  %p2297_p13 = scmp.ne.s32.totalorder %s2689_s23, %s2296_s13  ;;  %s2691_s15 = int_to_ptr.vmem [resolvable:$true] %s246_s15 }
  0x74   : > { %p2298_p1 = pneg %p2682_p2  ;;  %s2301_s20 = scalar_lea.hbm %s3935_s3, 33280 }
  0x75   : > { %p2302_p7 = scmp.lt.u32.totalorder %s2689_s23, %s3935_s3  ;;  %p2303_p8 = scmp.lt.u32.totalorder %s2301_s20, %s2296_s13 }
  0x76   : > { %p2299_p3 = pnand %p2298_p1, %p2297_p13  ;;  %p2305_p0 = scmp.lt.u32.totalorder %s2296_s13, %s2689_s23 }
  0x77   : > { %p2304_p10 = por %p2303_p8, %p2302_p7 }
  0x78   : > { %p2300_p5 = pneg %p2299_p3 }
  0x79   : > { %p2306_p4 = por %p2305_p0, %p2304_p10 }
  0x7b   : > { %p2307_p12 = pnand %p2306_p4, %p2300_p5 }
  0x7d   : > { %2310 = shalt.err (!%p2307_p12)
}
  0x7e   : > { %s2311_s17 = scalar_lea.vmem %s2691_s15, 8320  ;;  %s2443_s0 = smov [#allocation6]  }
  0x7f   : > { %p2312_p6 = scmp.ne.s32.totalorder %s2691_s15, %s2311_s17  ;;  %s2316_s24 = sshll.u32 %s2443_s0, 4  ;;  %s2317_s24 = int_to_ptr.vmem [resolvable:$false] %s2316_s24 }
  0x80   : > { %s2318_s29 = scalar_lea.vmem %s2317_s24, 16640  ;;  %p2319_p3 = scmp.lt.s32.totalorder %s2691_s15, %s2317_s24 }
  0x81   : > { %p2314_p9 = pnand %p2312_p6, %p2298_p1  ;;  %p2320_p7 = scmp.lt.s32.totalorder %s2318_s29, %s2311_s17 }
  0x83   : > { %p2315_p13 = pneg %p2314_p9  ;;  %p2321_p8 = por %p2320_p7, %p2319_p3 }
  0x85   : > { %p2322_p10 = pnand %p2321_p8, %p2315_p13 }
  0x87   : > { %2325 = shalt.err (!%p2322_p10)
}
  0x88   : > { %s3959_s13 = smov 128   ;;  %p3960_p1 = scmp.ne.s32.totalorder %s3953_s10, 0 }
  0x89   : > { %2132 = dma.hbm_to_vmem [thread:$0]  (!%p2682_p2), %s2689_s23, 8320, %s2691_s15, %s2693_s12, %s3959_s13, %s3959_s13, %s2442_s11  }
  0x8a   : > { %258 = sbr.rel (%p3960_p1) target bundleno = 655 (0x28f), region = 36  ;;  %s2727_s25 = sand.u32 (!%p3960_p1), 1, %s2426_s26  }
  0x8b   : > { %s2097_s18 = smul.u32 (!%p3960_p1), 520, %s2727_s25  ;;  %s261_s20 = scalar_lea.sflag (!%p3960_p1), [#allocation7], %s2727_s25 }
  0x8c   : > { %p3961_p5 = scmp.ne.s32.totalorder (!%p3960_p1), %s3951_s30, 0 }
  0x8d   : > { %s2733_s19 = scalar_lea.vmem (!%p3960_p1), [#allocation6], %s2097_s18 }
  0x91   : > { %2401 = dma.done.wait (%p3961_p5), %s261_s20, 8320  }
  0x92   : > { %2403 = vsyncadd (%p3961_p5), %s261_s20, 4294958976  ;;  %p3962_p2 = scmp.eq.s32.totalorder %s2544_s2, 0 }
  0x94   : > { %2405 = dma.done.wait (%p3962_p2), [#allocation10], 7808   ;;  %p3963_p0 = pmov %p3962_p2 }
  0x96   : > { %2407 = vsyncadd (%p3963_p0), [#allocation10], 4294959488  ;;  %p3964_p4 = pmov %p3963_p0 }
  0x97   : > { %p3965_p12 = pmov %p3963_p0 }
  0x98   : > { %2409 = dma.done.wait (%p3964_p4), [#allocation13], 2048  }
  0x99   : > { %2411 = vsyncadd (%p3965_p12), [#allocation13], 4294965248  ;;  %v2444_v0 = vmov 0.0|0.0   ;;  %s309_s30 = ssub.s32 0, %s2544_s2  ;;  %vm2445_vm0 = vmmov 0   ;;  %v2446_v1 = vmov 0.0   ;;  %v323_v5 = vlaneseq }
  0x9a   : > { %1999 = vmatprep.subr.bf16.mxu0 %v2444_v0  ;;  %2023 = vmatprep.subr.bf16.mxu1 %v2444_v0  ;;  %p308_p6 = scmp.lt.s32.totalorder %s2544_s2, 0  ;;  %s1596_s10 = smin.u32 %s2544_s2, %s309_s30  ;;  %v385_v2 = vld [vmem:[#allocation11] sm:$0xff]  ;;  %v386_v3 = vld [vmem:[#allocation11 + $0x8] sm:$0xff]  ;;  %v387_v8 = vld [vmem:[#allocation11 + $0x10] sm:$0xff] }
  0x9b   : > { %1843 = vmatprep.mubr.msk.f32.mxu0 %vm2445_vm0, %v2446_v1  ;;  %1890 = vmatprep.mubr.msk.f32.mxu1 %vm2445_vm0, %v2446_v1  ;;  %s311_s11 = sshrl.u32 %s1596_s10, 2  ;;  %s317_s23 = sand.u32 3, %s1596_s10   ;;  %v401_v4 = vld [vmem:[#allocation12] sm:$0xff]  ;;  %v2756_v6 = vpack.c.bf16 %v386_v3, %v385_v2  ;;  %v402_v7 = vld [vmem:[#allocation12 + $0x8] sm:$0xff]  ;;  %v388_v9 = vld [vmem:[#allocation11 + $0x18] sm:$0xff]  ;;  %v2771_v17 = vshrl.u32 %v323_v5, 7 }
  0x9c   : > { %s312_s15 = ssub.s32 0, %s311_s11  ;;  %s318_s12 = ssub.s32 0, %s317_s23  ;;  %v2760_v10 = vpack.c.bf16 %v402_v7, %v401_v4  ;;  %v403_v11 = vld [vmem:[#allocation12 + $0x10] sm:$0xff]  ;;  %v404_v12 = vld [vmem:[#allocation12 + $0x18] sm:$0xff]  ;;  %v2763_v13 = vpack.c.bf16 %v388_v9, %v387_v8  ;;  %v389_v15 = vld [vmem:[#allocation11 + $0x20] sm:$0xff]  ;;  %v336_v20 = vand.u32 127, %v323_v5 }
  0x9d   : > { %s3989_s15 = smov (!%p308_p6, %s312_s15), %s311_s11  ;;  %s3991_s12 = smov (!%p308_p6, %s318_s12), %s317_s23  ;;  %2001 = vmatpush3.bf16.msra.mxu0 %v2756_v6  ;;  %v2769_v14 = vpack.c.bf16 %v404_v12, %v403_v11  ;;  %v390_v16 = vld [vmem:[#allocation11 + $0x28] sm:$0xff]  ;;  %v405_v18 = vld [vmem:[#allocation12 + $0x20] sm:$0xff]  ;;  %v325_v21 = vadd.s32 8, %v2771_v17  ;;  %v391_v26 = vld [vmem:[#allocation11 + $0x30] sm:$0xff]  ;;  %v326_v28 = vadd.s32 16, %v2771_v17  ;;  %v327_v32 = vadd.s32 24, %v2771_v17 }
  0x9e   : > { %s321_s21 = sld [smem:[#allocation4 + %s3991_s12]]  ;;  %2025 = vmatpush3.bf16.msra.mxu1 %v2760_v10  ;;  %2002 = vmatprep.subr.bf16.mxu0 %v2444_v0  ;;  %v406_v19 = vld [vmem:[#allocation12 + $0x28] sm:$0xff]  ;;  %v2776_v22 = vpack.c.bf16 %v390_v16, %v389_v15  ;;  %v392_v27 = vld [vmem:[#allocation11 + $0x38] sm:$0xff]  ;;  %v407_v29 = vld [vmem:[#allocation12 + $0x30] sm:$0xff]  ;;  %vm641_vm12 = vcmp.lt.s32.totalorder %v2771_v17, 1  ;;  %vm672_vm13 = vcmp.lt.s32.totalorder %v2771_v17, 7 }
  0x9f   : > { %s2758_s17 = sld [smem:[#allocation5 + %s3991_s12]]  ;;  %2026 = vmatprep.subr.bf16.mxu1 %v2444_v0  ;;  %v2783_v25 = vpack.c.bf16 %v406_v19, %v405_v18  ;;  %v408_v30 = vld [vmem:[#allocation12 + $0x38] sm:$0xff]  ;;  %v2796_v33 = vpack.c.bf16 %v392_v27, %v391_v26  ;;  %v393_v38 = vld [vmem:[#allocation11 + $0x40] sm:$0xff]  ;;  %v394_v39 = vld [vmem:[#allocation11 + $0x48] sm:$0xff]  ;;  %vm625_vm14 = vcmp.lt.s32.totalorder %v2771_v17, 2  ;;  %vm738_vm15 = vcmp.lt.s32.totalorder %v2771_v17, 6 }
  0xa0   : > { %s2765_s0 = sld [smem:[#allocation3 + %s3989_s15]]  ;;  %v1603_v35 = vld [vmem:[%s2733_s19 + $0xc8] sm:$0xff]  ;;  %v2810_v37 = vpack.c.bf16 %v408_v30, %v407_v29  ;;  %v1604_v41 = vld [vmem:[%s2733_s19 + $0xd0] sm:$0xff]  ;;  %v410_v43 = vld [vmem:[#allocation12 + $0x48] sm:$0xff]  ;;  %v2836_v47 = vpack.c.bf16 %v394_v39, %v393_v38  ;;  %s3106_s24 = scalar_lea.vmem [#allocation14], %s2097_s18 }
  0xa1   : > { %2004 = vmatpush3.bf16.msra.mxu0 %v2763_v13  ;;  %v409_v42 = vld [vmem:[#allocation12 + $0x40] sm:$0xff]  ;;  %v395_v50 = vld [vmem:[#allocation11 + $0x50] sm:$0xff]  ;;  %v396_v51 = vld [vmem:[#allocation11 + $0x58] sm:$0xff]  ;;  %s2098_s29 = smul.u32 80, %s2727_s25  ;;  %s1422_s23 = scalar_lea.sflag [#allocation16], %s2727_s25 }
  0xa2   : > { %2028 = vmatpush3.bf16.msra.mxu1 %v2769_v14  ;;  %2005 = vmatprep.subr.bf16.mxu0 %v2444_v0  ;;  %v1605_v46 = vld [vmem:[%s2733_s19 + $0xd8] sm:$0xff]  ;;  %v2846_v49 = vpack.c.bf16 %v410_v43, %v409_v42  ;;  %v1606_v53 = vld [vmem:[%s2733_s19 + $0xe0] sm:$0xff]  ;;  %v412_v55 = vld [vmem:[#allocation12 + $0x58] sm:$0xff]  ;;  %v2867_v58 = vpack.c.bf16 %v396_v51, %v395_v50  ;;  %s2100_s18 = smul.u32 1280, %s2544_s2  ;;  %s2447_s12 = smov [#allocation15]  }
  0xa3   : > { %2029 = vmatprep.subr.bf16.mxu1 %v2444_v0  ;;  %v411_v54 = vld [vmem:[#allocation12 + $0x50] sm:$0xff]  ;;  %v397_v60 = vld [vmem:[#allocation11 + $0x60] sm:$0xff]  ;;  %v398_v61 = vld [vmem:[#allocation11 + $0x68] sm:$0xff]  ;;  %s3376_s13 = scalar_lea.vmem [#allocation15], %s2098_s29 }
  0xa4   : > { %v2778_v23 = vstv %s321_s21  ;;  %v2871_v59 = vpack.c.bf16 %v412_v55, %v411_v54  ;;  %v413_v62 = vld [vmem:[#allocation12 + $0x60] sm:$0xff]  ;;  %v414_v63 = vld [vmem:[#allocation12 + $0x68] sm:$0xff]  ;;  %v2875_v2 = vpack.c.bf16 %v398_v61, %v397_v60  ;;  %v399_v4 = vld [vmem:[#allocation11 + $0x70] sm:$0xff]  ;;  %s1451_s20 = sshll.u32 %s3376_s13, 4  ;;  %s3771_s11 = scalar_lea.hbm %s3940_s8, %s2100_s18  ;;  %s3766_s20 = int_to_ptr.vmem [resolvable:$true] %s1451_s20 }
  0xa5   : > { %v337_v24 = vstv %s2758_s17  ;;  %vm330_vm1 = vcmp.eq.s32.totalorder %v2771_v17, %v2778_v23  ;;  %vm331_vm3 = vcmp.eq.s32.totalorder %v325_v21, %v2778_v23  ;;  %2007 = vmatpush3.bf16.msra.mxu0 %v2776_v22  ;;  %vm332_vm5 = vcmp.eq.s32.totalorder %v326_v28, %v2778_v23  ;;  %v400_v5 = vld [vmem:[#allocation11 + $0x78] sm:$0xff]  ;;  %v415_v7 = vld [vmem:[#allocation12 + $0x70] sm:$0xff]  ;;  %s2326_s15 = scalar_lea.vmem %s3766_s20, 1280  ;;  %s2330_s21 = sshll.u32 %s2447_s12, 4  ;;  %s2331_s21 = int_to_ptr.vmem [resolvable:$false] %s2330_s21 }
  0xa6   : > { %vm2789_vm2 = vcmp.eq.s32.totalorder %v336_v20, %v337_v24  ;;  %v2806_v36 = vstv %s2765_s0  ;;  %2031 = vmatpush3.bf16.msra.mxu1 %v2783_v25  ;;  %2008 = vmatprep.subr.bf16.mxu0 %v2444_v0  ;;  %vm333_vm7 = vcmp.eq.s32.totalorder %v327_v32, %v2778_v23  ;;  %v2879_v3 = vpack.c.bf16 %v414_v63, %v413_v62  ;;  %v416_v8 = vld [vmem:[#allocation12 + $0x78] sm:$0xff]  ;;  %v1598_v12 = vld [vmem:[%s2733_s19 + $0xa0] sm:$0xff]  ;;  %v2911_v20 = vld [vmem:[%s2733_s19 + $0xf8] sm:$0xff]  ;;  %p2327_p9 = scmp.ne.s32.totalorder %s3766_s20, %s2326_s15  ;;  %s2332_s17 = scalar_lea.vmem %s2331_s21, 2560 }
  0xa7   : > { %vm2800_vm4 = vmand %vm330_vm1, %vm2789_vm2  ;;  %2032 = vmatprep.subr.bf16.mxu1 %v2444_v0  ;;  %v2883_v9 = vpack.c.bf16 %v400_v5, %v399_v4  ;;  %v2887_v11 = vpack.c.bf16 %v416_v8, %v415_v7  ;;  %v2897_v16 = vld [vmem:[%s2733_s19 + $0xf0] sm:$0xff]  ;;  %v1599_v18 = vld [vmem:[%s2733_s19 + $0xa8] sm:$0xff]  ;;  %v328_v24 = vadd.s32 32, %v2771_v17  ;;  %v621_v39 = vrot.slane %v2911_v20, 6  ;;  %p2333_p7 = scmp.lt.s32.totalorder %s3766_s20, %s2331_s21  ;;  %p2334_p8 = scmp.lt.s32.totalorder %s2332_s17, %s2326_s15 }
  0xa8   : > { %v2815_v40 = vsel %vm2800_vm4, %v2806_v36, %v1603_v35  ;;  %vm2824_vm6 = vmand %vm331_vm3, %vm2789_vm2  ;;  %v375_v15 = vsel %vm2800_vm4, %v2806_v36, %v1598_v12  ;;  %v1600_v21 = vld [vmem:[%s2733_s19 + $0xb0] sm:$0xff]  ;;  %v636_v32 = vrot.slane %v2897_v16, 7  ;;  %v667_v60 = vrot.slane %v2897_v16, 1  ;;  %p2328_p13 = pnand %p2327_p9, %p2676_p11 }
  0xa9   : > { %v2831_v45 = vsel %vm2824_vm6, %v2806_v36, %v1604_v41  ;;  %2010 = vmatpush3.bf16.msra.mxu0 %v2796_v33  ;;  %vm2840_vm8 = vmand %vm332_vm5, %vm2789_vm2  ;;  %v376_v19 = vsel %vm2824_vm6, %v2806_v36, %v1599_v18  ;;  %vm334_vm10 = vcmp.eq.s32.totalorder %v328_v24, %v2778_v23  ;;  %v1602_v23 = vld [vmem:[%s2733_s19 + $0xc0] sm:$0xff]  ;;  %v688_v30 = vrot.slane %v2815_v40, 7  ;;  %p2335_p10 = por %p2334_p8, %p2333_p7 }
  0xaa   : > { %2034 = vmatpush3.bf16.msra.mxu1 %v2810_v37  ;;  %2011 = vmatprep.subr.bf16.mxu0 %v2444_v0  ;;  %v2851_v52 = vsel %vm2840_vm8, %v2806_v36, %v1605_v46  ;;  %vm2857_vm9 = vmand %vm333_vm7, %vm2789_vm2  ;;  %v377_v26 = vsel %vm2840_vm8, %v2806_v36, %v1600_v21  ;;  %v703_v31 = vmul.f32 -0.1125, %v2815_v40  ;;  %v689_v38 = vrot.slane %v2831_v45, 7  ;;  %p2329_p3 = pneg %p2328_p13 }
  0xab   : > { %2035 = vmatprep.subr.bf16.mxu1 %v2444_v0  ;;  %v2864_v57 = vsel %vm2857_vm9, %v2806_v36, %v1606_v53  ;;  %vm2949_vm11 = vmand %vm334_vm10, %vm2789_vm2  ;;  %v637_v41 = vrot.slane %v2911_v20, 7  ;;  %v704_v42 = vmul.f32 -0.1125, %v2831_v45  ;;  %v714_v43 = vrot.slane %v2831_v45, 1 }
  0xac   : > { %v379_v28 = vsel %vm2949_vm11, %v2806_v36, %v1602_v23  ;;  %v734_v44 = vrot.slane %v2831_v45, 2  ;;  %v3018_v48 = vmul.f32 -0.1125, %v2851_v52  ;;  %v715_v50 = vrot.slane %v2851_v52, 1  ;;  %p2336_p1 = pnand %p2335_p10, %p2329_p3 }
  0xad   : > { %2013 = vmatpush3.bf16.msra.mxu0 %v2836_v47  ;;  %v668_v61 = vrot.slane %v2911_v20, 1  ;;  %v645_v8 = vsel %vm641_vm12, %v636_v32, %v637_v41 }
  0xae   : > { %2037 = vmatpush3.bf16.msra.mxu1 %v2846_v49  ;;  %2014 = vmatprep.subr.bf16.mxu0 %v2444_v0 }
  0xaf   : > { %2038 = vmatprep.subr.bf16.mxu1 %v2444_v0  ;;  %v676_v5 = vsel %vm672_vm13, %v667_v60, %v668_v61 }
  0xb1   : > { %2016 = vmatpush3.bf16.msra.mxu0 %v2867_v58 }
  0xb2   : > { %2040 = vmatpush3.bf16.msra.mxu1 %v2871_v59  ;;  %2017 = vmatprep.subr.bf16.mxu0 %v2444_v0 }
  0xb3   : > { %2041 = vmatprep.subr.bf16.mxu1 %v2444_v0 }
  0xb5   : > { %2019 = vmatpush3.bf16.msra.mxu0 %v2875_v2 }
  0xb6   : > { %2043 = vmatpush3.bf16.msra.mxu1 %v2879_v3  ;;  %2020 = vmatprep.subr.bf16.mxu0 %v2444_v0 }
  0xb7   : > { %2044 = vmatprep.subr.bf16.mxu1 %v2444_v0 }
  0xb9   : > { %2022 = vmatpush3.bf16.msra.mxu0 %v2883_v9 }
  0xba   : > { %2046 = vmatpush3.bf16.msra.mxu1 %v2887_v11  ;;  %2047 = vmatprep.subr.bf16.mxu0 %v2444_v0 }
  0xbb   : > { %2071 = vmatprep.subr.bf16.mxu1 %v2444_v0 }
  0xbc   : > { %1844 = vmatmul.mubr.f32.vlgmr.msra.gmra.mrb[0].mxu0 %v375_v15  ;;  %v678_v15 = vmul.f32 -0.004166667, %v676_v5 }
  0xbd   : > { %1891 = vmatmul.mubr.f32.vlgmr.msra.gmra.mrb[0].mxu1 %v2897_v16  ;;  %1846 = vmatprep.mubr.msk.f32.mxu0 %vm2445_vm0, %v2446_v1 }
  0xbe   : > { %1893 = vmatprep.mubr.msk.f32.mxu1 %vm2445_vm0, %v2446_v1  ;;  %2049 = vmatpush3.bf16.msra.mxu0 %v2760_v10  ;;  %v1601_v10 = vld [vmem:[%s2733_s19 + $0xb8] sm:$0xff] }
  0xbf   : > { %2073 = vmatpush3.bf16.msra.mxu1 %v2756_v6  ;;  %2050 = vmatprep.subr.bf16.mxu0 %v2444_v0  ;;  %v2928_v6 = vld [vmem:[%s2733_s19 + $0x100] sm:$0xff]  ;;  %v378_v27 = vsel %vm2857_vm9, %v2806_v36, %v1601_v10  ;;  %v696_v10 = vsel %vm641_vm12, %v688_v30, %v689_v38 }
  0xc0   : > { %1847 = vmatmul.mubr.f32.gmra.mrb[2].mxu0 %v376_v19  ;;  %2074 = vmatprep.subr.bf16.mxu1 %v2444_v0  ;;  %v622_v46 = vrot.slane %v2928_v6, 6  ;;  %v669_v23 = vrot.slane %v2928_v6, 1 }
  0xc1   : > { %1894 = vmatmul.mubr.f32.gmra.mrb[2].mxu1 %v2911_v20  ;;  %1849 = vmatprep.mubr.msk.f32.mxu0 %vm2445_vm0, %v2446_v1 }
  0xc2   : > { %1896 = vmatprep.mubr.msk.f32.mxu1 %vm2445_vm0, %v2446_v1  ;;  %2052 = vmatpush3.bf16.msra.mxu0 %v2769_v14  ;;  %v2945_v14 = vld [vmem:[%s2733_s19 + $0x108] sm:$0xff] }
  0xc3   : > { %2076 = vmatpush3.bf16.msra.mxu1 %v2763_v13  ;;  %2053 = vmatprep.subr.bf16.mxu0 %v2444_v0  ;;  %v658_v13 = vmul.f32 0.1125, %v2911_v20  ;;  %v639_v20 = vrot.slane %v2945_v14, 7 }
  0xc4   : > { %1850 = vmatmul.mubr.f32.gmra.mrb[4].mxu0 %v377_v26  ;;  %2077 = vmatprep.subr.bf16.mxu1 %v2444_v0  ;;  %v648_v26 = vmul.f32 -0.1125, %v645_v8 }
  0xc5   : > { %1897 = vmatmul.mubr.f32.gmra.mrb[4].mxu1 %v2928_v6  ;;  %1852 = vmatprep.mubr.msk.f32.mxu0 %vm2445_vm0, %v2446_v1 }
  0xc6   : > { %1899 = vmatprep.mubr.msk.f32.mxu1 %vm2445_vm0, %v2446_v1  ;;  %2055 = vmatpush3.bf16.msra.mxu0 %v2783_v25  ;;  %v2967_v25 = vld [vmem:[%s2733_s19 + $0x110] sm:$0xff] }
  0xc7   : > { %2079 = vmatpush3.bf16.msra.mxu1 %v2776_v22  ;;  %2056 = vmatprep.subr.bf16.mxu0 %v2444_v0  ;;  %v1607_v22 = vld [vmem:[%s2733_s19 + $0xe8] sm:$0xff]  ;;  %v624_v35 = vrot.slane %v2967_v25, 6 }
  0xc8   : > { %1853 = vmatmul.mubr.f32.gmra.mrb[6].mxu0 %v378_v27  ;;  %2080 = vmatprep.subr.bf16.mxu1 %v2444_v0  ;;  %v2996_v29 = vsel %vm2949_vm11, %v2806_v36, %v1607_v22  ;;  %v640_v36 = vrot.slane %v2967_v25, 7  ;;  %v716_v22 = vrot.slane %v2864_v57, 1 }
  0xc9   : > { %1900 = vmatmul.mubr.f32.gmra.mrb[6].mxu1 %v2945_v14  ;;  %1855 = vmatprep.mubr.msk.f32.mxu0 %vm2445_vm0, %v2446_v1  ;;  %v692_v34 = vrot.slane %v2996_v29, 7 }
  0xca   : > { %1902 = vmatprep.mubr.msk.f32.mxu1 %vm2445_vm0, %v2446_v1  ;;  %2058 = vmatpush3.bf16.msra.mxu0 %v2810_v37  ;;  %v733_v37 = vrot.slane %v2815_v40, 2  ;;  %v646_v53 = vsel %vm641_vm12, %v640_v36, %v636_v32 }
  0xcb   : > { %2082 = vmatpush3.bf16.msra.mxu1 %v2796_v33  ;;  %2059 = vmatprep.subr.bf16.mxu0 %v2444_v0  ;;  %v713_v33 = vrot.slane %v2815_v40, 1  ;;  %v697_v54 = vsel %vm641_vm12, %v692_v34, %v688_v30  ;;  %v647_v56 = vmul.f32 -0.1125, %v646_v53  ;;  %v720_v53 = vsel %vm672_vm13, %v714_v43, %v715_v50 }
  0xcc   : > { %1856 = vmatmul.mubr.f32.gmra.mrb[8].mxu0 %v379_v28  ;;  %2083 = vmatprep.subr.bf16.mxu1 %v2444_v0  ;;  %v742_v19 = vsel %vm738_vm15, %v733_v37, %v734_v44  ;;  %v699_v28 = vmul.f32 0.004166667, %v696_v10  ;;  %v736_v30 = vrot.slane %v2864_v57, 2  ;;  %v724_v5 = vmul.f32 0.1125, %v720_v53 }
  0xcd   : > { %1903 = vmatmul.mubr.f32.gmra.mrb[8].mxu1 %v2967_v25  ;;  %1937 = vmatprep.mubr.msk.f32.mxu0 %vm2445_vm0, %v2446_v1  ;;  %v721_v62 = vsel %vm672_vm13, %v713_v33, %v714_v43  ;;  %v744_v21 = vmul.f32 -0.004166667, %v742_v19 }
  0xce   : > { %2061 = vmatpush3.bf16.msra.mxu0 %v2846_v49  ;;  %1984 = vmatprep.mubr.msk.f32.mxu1 %vm2445_vm0, %v2446_v1  ;;  %v638_v49 = vrot.slane %v2928_v6, 7  ;;  %v723_v4 = vmul.f32 0.1125, %v721_v62  ;;  %v709_v43 = vadd.f32 %v704_v42, %v699_v28  ;;  %v628_v42 = vsel %vm625_vm14, %v621_v39, %v622_v46  ;;  %v1624_v28 = vld [vmem:[%s2733_s19 + $0x80] sm:$0xff] }
  0xcf   : > { %2085 = vmatpush3.bf16.msra.mxu1 %v2836_v47  ;;  %2062 = vmatprep.subr.bf16.mxu0 %v2444_v0  ;;  %v690_v47 = vrot.slane %v2851_v52, 7 }
  0xd0   : > { %2086 = vmatprep.subr.bf16.mxu1 %v2444_v0  ;;  %v729_v19 = vadd.f32 %v724_v5, %v709_v43 }
  0xd2   : > { %2064 = vmatpush3.bf16.msra.mxu0 %v2871_v59  ;;  %v735_v59 = vrot.slane %v2851_v52, 2 }
  0xd3   : > { %2088 = vmatpush3.bf16.msra.mxu1 %v2867_v58  ;;  %2065 = vmatprep.subr.bf16.mxu0 %v2444_v0  ;;  %v698_v58 = vmul.f32 0.004166667, %v697_v54 }
  0xd4   : > { %2089 = vmatprep.subr.bf16.mxu1 %v2444_v0  ;;  %v740_v45 = vsel %vm738_vm15, %v735_v59, %v736_v30 }
  0xd6   : > { %2067 = vmatpush3.bf16.msra.mxu0 %v2879_v3  ;;  %v708_v3 = vadd.f32 %v703_v31, %v698_v58  ;;  %v1613_v31 = vld [vmem:[%s2733_s19 + $0x28] sm:$0xff]  ;;  %v675_v58 = vsel %vm672_vm13, %v668_v61, %v669_v23 }
  0xd7   : > { %2091 = vmatpush3.bf16.msra.mxu1 %v2875_v2  ;;  %2068 = vmatprep.subr.bf16.mxu0 %v2444_v0  ;;  %v657_v2 = vmul.f32 0.1125, %v2897_v16  ;;  %v3096_v61 = vld [vmem:[#allocation9 + $0x58] sm:$0xff] }
  0xd8   : > { %2092 = vmatprep.subr.bf16.mxu1 %v2444_v0  ;;  %v620_v0 = vrot.slane %v2897_v16, 6  ;;  %v728_v18 = vadd.f32 %v723_v4, %v708_v3  ;;  %v679_v3 = vmul.f32 -0.004166667, %v675_v58  ;;  %v695_v58 = vsel %vm641_vm12, %v689_v38, %v690_v47 }
  0xd9   : > { %v691_v38 = vrot.slane %v2864_v57, 7  ;;  %v700_v5 = vmul.f32 0.004166667, %v695_v58 }
  0xda   : > { %2070 = vmatpush3.bf16.msra.mxu0 %v2887_v11  ;;  %v630_v51 = vsel %vm625_vm14, %v624_v35, %v620_v0  ;;  %v629_v7 = vsel %vm625_vm14, %v620_v0, %v621_v39  ;;  %v3058_v11 = vld [vmem:[#allocation9 + $0x50] sm:$0xff]  ;;  %v3072_v0 = vld [vmem:[#allocation9 + $0x78] sm:$0xff]  ;;  %v749_v32 = vadd.f32 %v744_v21, %v728_v18  ;;  %v633_v21 = vmul.f32 0.004166667, %v628_v42 }
  0xdb   : > { %2094 = vmatpush3.bf16.msra.mxu1 %v2883_v9  ;;  %v631_v55 = vmul.f32 0.004166667, %v630_v51  ;;  %v3056_v9 = vld [vmem:[#allocation9 + $0x28] sm:$0xff]  ;;  %v632_v24 = vmul.f32 0.004166667, %v629_v7  ;;  %v741_v7 = vsel %vm738_vm15, %v734_v44, %v735_v59  ;;  %v623_v39 = vrot.slane %v2945_v14, 6 }
  0xdc   : > { %v780_v54 = vmul.f32 %v1613_v31, %v3056_v9  ;;  %v745_v18 = vmul.f32 -0.004166667, %v741_v7  ;;  %v1614_v44 = vld [vmem:[%s2733_s19 + $0x30] sm:$0xff]  ;;  %v717_v7 = vrot.slane %v2996_v29, 1  ;;  %v710_v59 = vadd.f32 %v3018_v48, %v700_v5 }
  0xdd   : > { %v652_v63 = vadd.f32 %v647_v56, %v631_v55  ;;  %v653_v51 = vadd.f32 %v648_v26, %v632_v24  ;;  %v1623_v56 = vld [vmem:[%s2733_s19 + $0x78] sm:$0xff]  ;;  %v644_v24 = vsel %vm641_vm12, %v637_v41, %v638_v49  ;;  %v670_v26 = vrot.slane %v2945_v14, 1 }
  0xde   : > { %v822_v62 = vmul.f32 %v1623_v56, %v3056_v9  ;;  %v649_v31 = vmul.f32 -0.1125, %v644_v24  ;;  %v627_v24 = vsel %vm625_vm14, %v622_v46, %v623_v39  ;;  %v643_v48 = vsel %vm641_vm12, %v638_v49, %v639_v20  ;;  %v3183_v46 = vld [vmem:[#allocation9 + $0x88] sm:$0xff]  ;;  %v1616_v49 = vld [vmem:[%s2733_s19 + $0x40] sm:$0xff] }
  0xdf   : > { %v662_v12 = vadd.f32 %v657_v2, %v652_v63  ;;  %v827_v63 = vmul.f32 %v749_v32, %v3072_v0  ;;  %v663_v2 = vadd.f32 %v658_v13, %v653_v51  ;;  %v3123_v13 = vld [vmem:[#allocation9 + $0x80] sm:$0xff]  ;;  %v750_v32 = vadd.f32 %v745_v18, %v729_v19 }
  0xe0   : > { %v659_v51 = vmul.f32 0.1125, %v2928_v6  ;;  %v674_v56 = vsel %vm672_vm13, %v669_v23, %v670_v26  ;;  %v706_v23 = vmul.f32 -0.1125, %v2864_v57  ;;  %v746_v19 = vmul.f32 -0.004166667, %v740_v45 }
  0xe1   : > { %v683_v27 = vadd.f32 %v678_v15, %v662_v12  ;;  %v3092_v8 = vadd.f32 %v827_v63, %v822_v62  ;;  %v3094_v12 = vld [vmem:[#allocation9 + $0x30] sm:$0xff]  ;;  %v684_v15 = vadd.f32 %v679_v3, %v663_v2  ;;  %v828_v62 = vmul.f32 %v750_v32, %v3123_v13 }
  0xe2   : > { %v781_v10 = vmul.f32 %v1614_v44, %v3094_v12  ;;  %v823_v41 = vmul.f32 %v1624_v28, %v3094_v12  ;;  %v680_v63 = vmul.f32 -0.004166667, %v674_v56  ;;  %v1615_v2 = vld [vmem:[%s2733_s19 + $0x38] sm:$0xff]  ;;  %v719_v3 = vsel %vm672_vm13, %v715_v50, %v716_v22  ;;  %v3162_v50 = vld [vmem:[#allocation9 + $0x60] sm:$0xff] }
  0xe3   : > { %v785_v55 = vmul.f32 %v683_v27, %v3058_v11  ;;  %1643 = vst [vmem:[%s3106_s24 + $0x78] sm:$0xff] %v3092_v8  ;;  %v786_v27 = vmul.f32 %v684_v15, %v3096_v61  ;;  %v725_v42 = vmul.f32 0.1125, %v719_v3  ;;  %v671_v28 = vrot.slane %v2967_v25, 1  ;;  %v3186_v56 = vld [vmem:[#allocation9 + $0x40] sm:$0xff] }
  0xe4   : > { %v3160_v15 = vadd.f32 %v828_v62, %v823_v41  ;;  %v650_v41 = vmul.f32 -0.1125, %v643_v48  ;;  %v694_v58 = vsel %vm641_vm12, %v690_v47, %v691_v38  ;;  %v718_v62 = vsel %vm672_vm13, %v716_v22, %v717_v7 }
  0xe5   : > { %v3086_v4 = vadd.f32 %v785_v55, %v780_v54  ;;  %v3129_v53 = vadd.f32 %v786_v27, %v781_v10  ;;  %v3131_v54 = vld [vmem:[#allocation9 + $0x38] sm:$0xff]  ;;  %v654_v55 = vadd.f32 %v649_v31, %v633_v21  ;;  %v737_v10 = vrot.slane %v2996_v29, 2 }
  0xe6   : > { %v782_v18 = vmul.f32 %v1615_v2, %v3131_v54  ;;  %v1625_v21 = vld [vmem:[%s2733_s19 + $0x88] sm:$0xff]  ;;  %1644 = vst [vmem:[%s3106_s24 + $0x80] sm:$0xff] %v3160_v15  ;;  %v634_v27 = vmul.f32 0.004166667, %v627_v24  ;;  %v730_v32 = vadd.f32 %v725_v42, %v710_v59  ;;  %v673_v6 = vsel %vm672_vm13, %v670_v26, %v671_v28 }
  0xe7   : > { %1633 = vst [vmem:[%s3106_s24 + $0x28] sm:$0xff] %v3086_v4  ;;  %1634 = vst [vmem:[%s3106_s24 + $0x30] sm:$0xff] %v3129_v53  ;;  %v664_v43 = vadd.f32 %v659_v51, %v654_v55  ;;  %v660_v51 = vmul.f32 0.1125, %v2945_v14  ;;  %v824_v55 = vmul.f32 %v1625_v21, %v3131_v54  ;;  %v681_v3 = vmul.f32 -0.004166667, %v673_v6 }
  0xe8   : > { %v751_v2 = vadd.f32 %v746_v19, %v730_v32  ;;  %v655_v26 = vadd.f32 %v650_v41, %v634_v27  ;;  %v701_v45 = vmul.f32 0.004166667, %v694_v58  ;;  %v739_v52 = vsel %vm738_vm15, %v736_v30, %v737_v10  ;;  %v3262_v58 = vld [vmem:[#allocation9 + $0x70] sm:$0xff] }
  0xe9   : > { %v685_v44 = vadd.f32 %v680_v63, %v664_v43  ;;  %v726_v43 = vmul.f32 0.1125, %v718_v62  ;;  %v783_v42 = vmul.f32 %v1616_v49, %v3186_v56  ;;  %v747_v22 = vmul.f32 -0.004166667, %v739_v52 }
  0xea   : > { %v829_v47 = vmul.f32 %v751_v2, %v3183_v46  ;;  %v665_v5 = vadd.f32 %v660_v51, %v655_v26  ;;  %v711_v59 = vadd.f32 %v706_v23, %v701_v45  ;;  %v626_v30 = vsel %vm625_vm14, %v623_v39, %v624_v35  ;;  %v3246_v51 = vld [vmem:[#allocation9 + $0x48] sm:$0xff]  ;;  %v3271_v26 = vld [vmem:[#allocation9 + $0x98] sm:$0xff] }
  0xeb   : > { %v787_v31 = vmul.f32 %v685_v44, %v3162_v50  ;;  %v3214_v44 = vld [vmem:[#allocation9 + $0x68] sm:$0xff]  ;;  %v642_v19 = vsel %vm641_vm12, %v639_v20, %v640_v36  ;;  %v661_v21 = vmul.f32 0.1125, %v2967_v25  ;;  %v635_v48 = vmul.f32 0.004166667, %v626_v30  ;;  %v3238_v36 = vld [vmem:[#allocation9 + $0x90] sm:$0xff] }
  0xec   : > { %v3227_v24 = vadd.f32 %v829_v47, %v824_v55  ;;  %v686_v27 = vadd.f32 %v681_v3, %v665_v5  ;;  %v651_v23 = vmul.f32 -0.1125, %v642_v19  ;;  %v731_v32 = vadd.f32 %v726_v43, %v711_v59  ;;  %v3285_v5 = vld [vmem:[#allocation9] sm:$0xff]  ;;  %v1619_v30 = vld [vmem:[%s2733_s19 + $0x58] sm:$0xff] }
  0xed   : > { %v3203_v63 = vadd.f32 %v787_v31, %v782_v18  ;;  %v1626_v18 = vld [vmem:[%s2733_s19 + $0x90] sm:$0xff]  ;;  %v707_v31 = vmul.f32 -0.1125, %v2996_v29  ;;  %v677_v35 = vsel %vm672_vm13, %v671_v28, %v667_v60  ;;  %v693_v41 = vsel %vm641_vm12, %v691_v38, %v692_v34  ;;  %v1617_v60 = vld [vmem:[%s2733_s19 + $0x48] sm:$0xff]  ;;  %v3293_v19 = vld [vmem:[#allocation9 + $0x10] sm:$0xff] }
  0xee   : > { %v825_v14 = vmul.f32 %v1626_v18, %v3186_v56  ;;  %1645 = vst [vmem:[%s3106_s24 + $0x88] sm:$0xff] %v3227_v24  ;;  %v788_v25 = vmul.f32 %v686_v27, %v3214_v44  ;;  %v656_v39 = vadd.f32 %v651_v23, %v635_v48  ;;  %v682_v20 = vmul.f32 -0.004166667, %v677_v35  ;;  %v3289_v18 = vld [vmem:[#allocation9 + $0x8] sm:$0xff]  ;;  %v755_v59 = vld [vmem:[%s2733_s19 + $0x8] sm:$0xff]  ;;  %v1620_v27 = vld [vmem:[%s2733_s19 + $0x60] sm:$0xff] }
  0xef   : > { %1635 = vst [vmem:[%s3106_s24 + $0x38] sm:$0xff] %v3203_v63  ;;  %v752_v16 = vadd.f32 %v747_v22, %v731_v32  ;;  %v702_v28 = vmul.f32 0.004166667, %v693_v41  ;;  %v722_v55 = vsel %vm672_vm13, %v717_v7, %v713_v33  ;;  %v743_v57 = vsel %vm738_vm15, %v737_v10, %v733_v37  ;;  %v1627_v37 = vld [vmem:[%s2733_s19 + $0x98] sm:$0xff]  ;;  %v1618_v22 = vld [vmem:[%s2733_s19 + $0x50] sm:$0xff]  ;;  %v3297_v48 = vld [vmem:[#allocation9 + $0x18] sm:$0xff] }
  0xf0   : > { %v3259_v34 = vadd.f32 %v788_v25, %v783_v42  ;;  %v666_v38 = vadd.f32 %v661_v21, %v656_v39  ;;  %v727_v6 = vmul.f32 0.1125, %v722_v55  ;;  %v748_v29 = vmul.f32 -0.004166667, %v743_v57  ;;  %v754_v42 = vld [vmem:[%s2733_s19] sm:$0xff]  ;;  %v756_v21 = vld [vmem:[%s2733_s19 + $0x10] sm:$0xff] }
  0xf1   : > { %v830_v49 = vmul.f32 %v752_v16, %v3238_v36  ;;  %v712_v62 = vadd.f32 %v707_v31, %v702_v28  ;;  %v784_v40 = vmul.f32 %v1617_v60, %v3246_v51  ;;  %v826_v45 = vmul.f32 %v1627_v37, %v3246_v51  ;;  %v757_v31 = vld [vmem:[%s2733_s19 + $0x18] sm:$0xff]  ;;  %v1621_v32 = vld [vmem:[%s2733_s19 + $0x68] sm:$0xff]  ;;  %v758_v39 = vld [vmem:[%s2733_s19 + $0x20] sm:$0xff] }
  0xf2   : > { %1636 = vst [vmem:[%s3106_s24 + $0x40] sm:$0xff] %v3259_v34  ;;  %v687_v33 = vadd.f32 %v682_v20, %v666_v38  ;;  %v759_v23 = vmul.f32 %v754_v42, %v3285_v5  ;;  %v801_v25 = vmul.f32 %v1618_v22, %v3285_v5  ;;  %v1622_v20 = vld [vmem:[%s2733_s19 + $0x70] sm:$0xff]  ;;  %v1654_v41 = vld [vmem:[%s2733_s19 + $0x148] sm:$0xff]  ;;  %v760_v55 = vmul.f32 %v755_v59, %v3289_v18  ;;  %v1665_v22 = vld [vmem:[%s2733_s19 + $0x1a0] sm:$0xff] }
  0xf3   : > { %v3268_v7 = vadd.f32 %v830_v49, %v825_v14  ;;  %v732_v10 = vadd.f32 %v727_v6, %v712_v62  ;;  %v3302_v14 = vld [vmem:[#allocation9 + $0x20] sm:$0xff]  ;;  %v802_v57 = vmul.f32 %v1619_v30, %v3289_v18  ;;  %v3313_v38 = vmul.f32 %v756_v21, %v3293_v19  ;;  %v1653_v6 = vld [vmem:[%s2733_s19 + $0x140] sm:$0xff]  ;;  %v1664_v49 = vld [vmem:[%s2733_s19 + $0x198] sm:$0xff] }
  0xf4   : > { %v789_v2 = vmul.f32 %v687_v33, %v3262_v58  ;;  %v1669_v62 = vld [vmem:[%s2733_s19 + $0x1c0] sm:$0xff]  ;;  %v3326_v37 = vmul.f32 %v1621_v32, %v3297_v48  ;;  %v1655_v42 = vld [vmem:[%s2733_s19 + $0x150] sm:$0xff]  ;;  %v3342_v21 = vmul.f32 %v1653_v6, %v3056_v9  ;;  %v1656_v32 = vld [vmem:[%s2733_s19 + $0x158] sm:$0xff] }
  0xf5   : > { %1646 = vst [vmem:[%s3106_s24 + $0x90] sm:$0xff] %v3268_v7  ;;  %v753_v3 = vadd.f32 %v748_v29, %v732_v10  ;;  %v1663_v10 = vld [vmem:[%s2733_s19 + $0x190] sm:$0xff] }
  0xf6   : > { %v3276_v43 = vadd.f32 %v789_v2, %v784_v40  ;;  %v3320_v40 = vmul.f32 %v1620_v27, %v3293_v19  ;;  %v1668_v2 = vld [vmem:[%s2733_s19 + $0x1b8] sm:$0xff]  ;;  %v3345_v27 = vmul.f32 %v1664_v49, %v3094_v12 }
  0xf7   : > { %v831_v52 = vmul.f32 %v753_v3, %v3271_v26 }
  0xf8   : > { %1637 = vst [vmem:[%s3106_s24 + $0x48] sm:$0xff] %v3276_v43 }
  0xf9   : > { %v3281_v47 = vadd.f32 %v831_v52, %v826_v45  ;;  %v3331_v45 = vmul.f32 %v758_v39, %v3302_v14  ;;  %v3337_v52 = vmul.f32 %v1654_v41, %v3094_v12  ;;  %v3358_v41 = vmul.f32 %v1663_v10, %v3056_v9 }
  0xfb   : > { %1647 = vst [vmem:[%s3106_s24 + $0x98] sm:$0xff] %v3281_v47 }
 0x18f   : > { %v506_v35 = vpop.f32.mrb[0].mxu0 }
 0x190   : > { %v764_v16 = vmul.f32 %v506_v35, %v3058_v11  ;;  %v596_v60 = vpop.f32.mrb[0].mxu1  ;;  %v1845_v28 = vpop.f32.mrb[1].mxu0  ;;  %v3323_v11 = vmul.f32 %v757_v31, %v3297_v48  ;;  %v1670_v31 = vld [vmem:[%s2733_s19 + $0x1c8] sm:$0xff] }
 0x191   : > { %v806_v29 = vmul.f32 %v596_v60, %v3072_v0  ;;  %v1892_v33 = vpop.f32.mrb[1].mxu1  ;;  %v3334_v0 = vmul.f32 %v1622_v20, %v3302_v14  ;;  %v3383_v49 = vmul.f32 %v1670_v31, %v3293_v19 }
 0x192   : > { %v769_v3 = vadd.f32 %v764_v16, %v759_v23  ;;  %v3348_v23 = vmul.f32 %v1669_v62, %v3289_v18  ;;  %v3361_v16 = vmul.f32 %v1668_v2, %v3285_v5  ;;  %v3386_v62 = vmul.f32 %v1656_v32, %v3186_v56 }
 0x193   : > { %v811_v59 = vadd.f32 %v806_v29, %v801_v25  ;;  %v511_v30 = vpop.f32.mrb[2].mxu0 }
 0x194   : > { %v3353_v35 = vadd.f32 %v3086_v4, %v769_v3  ;;  %858 = vst [vmem:[%s3106_s24] sm:$0xff] %v769_v3  ;;  %v765_v39 = vmul.f32 %v511_v30, %v3096_v61  ;;  %v601_v25 = vpop.f32.mrb[2].mxu1  ;;  %v1848_v20 = vpop.f32.mrb[3].mxu0  ;;  %v3369_v4 = vmul.f32 %v1655_v42, %v3131_v54  ;;  %v3372_v61 = vmul.f32 %v1665_v22, %v3131_v54 }
 0x195   : > { %v3364_v60 = vadd.f32 %v3092_v8, %v811_v59  ;;  %1638 = vst [vmem:[%s3106_s24 + $0x50] sm:$0xff] %v811_v59  ;;  %v807_v28 = vmul.f32 %v601_v25, %v3123_v13  ;;  %v1895_v6 = vpop.f32.mrb[3].mxu1 }
 0x196   : > { %847 = vst [vmem:[%s3376_s13] sm:$0xff] %v3353_v35  ;;  %v770_v8 = vadd.f32 %v765_v39, %v760_v55  ;;  %1938 = vmatmul.mubr.f32.vlgmr.msra.gmra.mrb[10].mxu0 %v3353_v35  ;;  %v1091_v13 = vrot.slane %v3353_v35, 7  ;;  %v3395_v10 = vmul.f32 -0.1125, %v3353_v35  ;;  %v3947_v2 = vrot.slane %v3353_v35, 1 }
 0x197   : > { %1628 = vst [vmem:[%s3376_s13 + $0x28] sm:$0xff] %v3364_v60  ;;  %v812_v29 = vadd.f32 %v807_v28, %v802_v57  ;;  %1985 = vmatmul.mubr.f32.vlgmr.msra.gmra.mrb[10].mxu1 %v3364_v60  ;;  %v516_v33 = vpop.f32.mrb[4].mxu0  ;;  %1940 = vmatprep.mubr.msk.f32.mxu0 %vm2445_vm0, %v2446_v1  ;;  %v1156_v55 = vrot.slane %v3364_v60, 6  ;;  %v1171_v59 = vrot.slane %v3364_v60, 7  ;;  %v3407_v30 = vmul.f32 0.1125, %v3364_v60 }
 0x198   : > { %v3399_v3 = vadd.f32 %v3129_v53, %v770_v8  ;;  %859 = vst [vmem:[%s3106_s24 + $0x8] sm:$0xff] %v770_v8  ;;  %v766_v57 = vmul.f32 %v516_v33, %v3162_v50  ;;  %v606_v42 = vpop.f32.mrb[4].mxu1  ;;  %v1851_v22 = vpop.f32.mrb[5].mxu0  ;;  %1987 = vmatprep.mubr.msk.f32.mxu1 %vm2445_vm0, %v2446_v1  ;;  %v3948_v50 = vrot.slane %v3364_v60, 1  ;;  %v3946_v39 = vrot.slane %v3353_v35, 2 }
 0x199   : > { %v3410_v31 = vadd.f32 %v3160_v15, %v812_v29  ;;  %1639 = vst [vmem:[%s3106_s24 + $0x58] sm:$0xff] %v812_v29  ;;  %v808_v53 = vmul.f32 %v606_v42, %v3183_v46  ;;  %v1898_v32 = vpop.f32.mrb[5].mxu1 }
 0x19a   : > { %848 = vst [vmem:[%s3376_s13 + $0x8] sm:$0xff] %v3399_v3  ;;  %v771_v25 = vadd.f32 %v766_v57, %v3313_v38  ;;  %1941 = vmatmul.mubr.f32.gmra.mrb[12].mxu0 %v3399_v3  ;;  %v1117_v20 = vrot.slane %v3399_v3, 1  ;;  %v1137_v15 = vrot.slane %v3399_v3, 2  ;;  %v1092_v28 = vrot.slane %v3399_v3, 7 }
 0x19b   : > { %1629 = vst [vmem:[%s3376_s13 + $0x30] sm:$0xff] %v3410_v31  ;;  %v813_v46 = vadd.f32 %v808_v53, %v3320_v40  ;;  %1988 = vmatmul.mubr.f32.gmra.mrb[12].mxu1 %v3410_v31  ;;  %v521_v6 = vpop.f32.mrb[6].mxu0  ;;  %1943 = vmatprep.mubr.msk.f32.mxu0 %vm2445_vm0, %v2446_v1  ;;  %v1202_v38 = vrot.slane %v3410_v31, 1  ;;  %v1157_v8 = vrot.slane %v3410_v31, 6  ;;  %v1172_v29 = vrot.slane %v3410_v31, 7 }
 0x19c   : > { %v3433_v33 = vadd.f32 %v3203_v63, %v771_v25  ;;  %860 = vst [vmem:[%s3106_s24 + $0x10] sm:$0xff] %v771_v25  ;;  %v767_v40 = vmul.f32 %v521_v6, %v3214_v44  ;;  %v611_v57 = vpop.f32.mrb[6].mxu1  ;;  %v1854_v42 = vpop.f32.mrb[7].mxu0  ;;  %1990 = vmatprep.mubr.msk.f32.mxu1 %vm2445_vm0, %v2446_v1  ;;  %v1124_v22 = vsel %vm672_vm13, %v3947_v2, %v1117_v20 }
 0x19d   : > { %v1144_v63 = vsel %vm738_vm15, %v3946_v39, %v1137_v15  ;;  %v3452_v44 = vadd.f32 %v3227_v24, %v813_v46  ;;  %1640 = vst [vmem:[%s3106_s24 + $0x60] sm:$0xff] %v813_v46  ;;  %v809_v53 = vmul.f32 %v611_v57, %v3238_v36  ;;  %v1901_v32 = vpop.f32.mrb[7].mxu1  ;;  %v1209_v25 = vsel %vm672_vm13, %v3948_v50, %v1202_v38 }
 0x19e   : > { %v3460_v6 = vmul.f32 0.1125, %v1124_v22  ;;  %849 = vst [vmem:[%s3376_s13 + $0x10] sm:$0xff] %v3433_v33  ;;  %v772_v42 = vadd.f32 %v767_v40, %v3323_v11  ;;  %1944 = vmatmul.mubr.f32.gmra.mrb[14].mxu0 %v3433_v33  ;;  %v3466_v24 = vmul.f32 -0.004166667, %v1209_v25  ;;  %v1164_v36 = vsel %vm625_vm14, %v1156_v55, %v1157_v8 }
 0x19f   : > { %v3468_v46 = vmul.f32 -0.004166667, %v1144_v63  ;;  %1630 = vst [vmem:[%s3376_s13 + $0x38] sm:$0xff] %v3452_v44  ;;  %v814_v57 = vadd.f32 %v809_v53, %v3326_v37  ;;  %1991 = vmatmul.mubr.f32.gmra.mrb[14].mxu1 %v3452_v44  ;;  %v526_v11 = vpop.f32.mrb[8].mxu0  ;;  %1946 = vmatprep.mubr.msk.f32.mxu0 %vm2445_vm0, %v2446_v1  ;;  %v1167_v40 = vmul.f32 0.004166667, %v1164_v36  ;;  %v1179_v22 = vsel %vm641_vm12, %v1171_v59, %v1172_v29 }
 0x1a0   : > { %v1192_v63 = vmul.f32 0.1125, %v3410_v31  ;;  %v3490_v37 = vadd.f32 %v3259_v34, %v772_v42  ;;  %861 = vst [vmem:[%s3106_s24 + $0x18] sm:$0xff] %v772_v42  ;;  %v768_v53 = vmul.f32 %v526_v11, %v3262_v58  ;;  %v616_v32 = vpop.f32.mrb[8].mxu1  ;;  %v1857_v25 = vpop.f32.mrb[9].mxu0  ;;  %1993 = vmatprep.mubr.msk.f32.mxu1 %vm2445_vm0, %v2446_v1  ;;  %v1203_v39 = vrot.slane %v3452_v44, 1 }
 0x1a1   : > { %v1182_v36 = vmul.f32 -0.1125, %v1179_v22  ;;  %v3498_v2 = vadd.f32 %v3268_v7, %v814_v57  ;;  %1641 = vst [vmem:[%s3106_s24 + $0x68] sm:$0xff] %v814_v57  ;;  %v810_v50 = vmul.f32 %v616_v32, %v3271_v26  ;;  %v1904_v34 = vpop.f32.mrb[9].mxu1  ;;  %v1099_v58 = vsel %vm641_vm12, %v1091_v13, %v1092_v28 }
 0x1a2   : > { %v1107_v42 = vmul.f32 -0.1125, %v3399_v3  ;;  %850 = vst [vmem:[%s3376_s13 + $0x18] sm:$0xff] %v3490_v37  ;;  %v773_v11 = vadd.f32 %v768_v53, %v3331_v45  ;;  %1947 = vmatmul.mubr.f32.gmra.mrb[16].mxu0 %v3490_v37  ;;  %v1208_v26 = vsel %vm672_vm13, %v1202_v38, %v1203_v39  ;;  %v1102_v57 = vmul.f32 0.004166667, %v1099_v58  ;;  %v901_v34 = vld [vmem:[#allocation9 + $0x120] sm:$0xff] }
 0x1a3   : > { %v1187_v7 = vadd.f32 %v1182_v36, %v1167_v40  ;;  %1631 = vst [vmem:[%s3376_s13 + $0x40] sm:$0xff] %v3498_v2  ;;  %v815_v22 = vadd.f32 %v810_v50, %v3334_v0  ;;  %1994 = vmatmul.mubr.f32.gmra.mrb[16].mxu1 %v3498_v2  ;;  %1949 = vmatprep.mubr.msk.f32.mxu0 %vm2445_vm0, %v2446_v1  ;;  %v1212_v45 = vmul.f32 -0.004166667, %v1208_v26  ;;  %v1118_v40 = vrot.slane %v3433_v33, 1  ;;  %v889_v36 = vld [vmem:[#allocation9 + $0xd0] sm:$0xff] }
 0x1a4   : > { %v1138_v53 = vrot.slane %v3433_v33, 2  ;;  %v3526_v32 = vadd.f32 %v3276_v43, %v773_v11  ;;  %862 = vst [vmem:[%s3106_s24 + $0x20] sm:$0xff] %v773_v11  ;;  %1996 = vmatprep.mubr.msk.f32.mxu1 %vm2445_vm0, %v2446_v1  ;;  %v1112_v0 = vadd.f32 %v1107_v42, %v1102_v57  ;;  %v1158_v50 = vrot.slane %v3452_v44, 6 }
 0x1a5   : > { %v1197_v38 = vadd.f32 %v1192_v63, %v1187_v7  ;;  %v3533_v25 = vadd.f32 %v3281_v47, %v815_v22  ;;  %1642 = vst [vmem:[%s3106_s24 + $0x70] sm:$0xff] %v815_v22  ;;  %v1123_v43 = vsel %vm672_vm13, %v1117_v20, %v1118_v40  ;;  %v1173_v47 = vrot.slane %v3452_v44, 7 }
 0x1a6   : > { %v1143_v1 = vsel %vm738_vm15, %v1137_v15, %v1138_v53  ;;  %851 = vst [vmem:[%s3376_s13 + $0x20] sm:$0xff] %v3526_v32  ;;  %1950 = vmatmul.mubr.f32.gmra.mrb[18].mxu0 %v3526_v32  ;;  %v3949_v63 = vrot.slane %v3526_v32, 7  ;;  %v1127_v42 = vmul.f32 0.1125, %v1123_v43  ;;  %v1163_v15 = vsel %vm625_vm14, %v1157_v8, %v1158_v50 }
 0x1a7   : > { %v1217_v58 = vadd.f32 %v1212_v45, %v1197_v38  ;;  %v1147_v11 = vmul.f32 -0.004166667, %v1143_v1  ;;  %1632 = vst [vmem:[%s3376_s13 + $0x48] sm:$0xff] %v3533_v25  ;;  %1997 = vmatmul.mubr.f32.gmra.mrb[18].mxu1 %v3533_v25  ;;  %v3950_v20 = vrot.slane %v3533_v25, 6  ;;  %v1175_v7 = vrot.slane %v3533_v25, 7  ;;  %v3594_v1 = vld [vmem:[#allocation9 + $0x148] sm:$0xff] }
 0x1a8   : > { %v1178_v26 = vsel %vm641_vm12, %v1172_v29, %v1173_v47  ;;  %v1100_v57 = vsel %vm641_vm12, %v3949_v63, %v1091_v13  ;;  %v1132_v38 = vadd.f32 %v1127_v42, %v1112_v0  ;;  %v1168_v29 = vmul.f32 0.004166667, %v1163_v15 }
 0x1a9   : > { %v1254_v22 = vmul.f32 %v1217_v58, %v889_v36  ;;  %v1296_v45 = vmul.f32 %v1217_v58, %v901_v34  ;;  %v1165_v31 = vsel %vm625_vm14, %v3950_v20, %v1156_v55  ;;  %v1180_v8 = vsel %vm641_vm12, %v1175_v7, %v1171_v59 }
 0x1aa   : > { %v1101_v13 = vmul.f32 0.004166667, %v1100_v57  ;;  %v1166_v36 = vmul.f32 0.004166667, %v1165_v31  ;;  %v1181_v34 = vmul.f32 -0.1125, %v1180_v8  ;;  %v1152_v58 = vadd.f32 %v1147_v11, %v1132_v38 }
 0x1ab   : > { %v3589_v0 = vadd.f32 %v1254_v22, %v3337_v52  ;;  %v3592_v43 = vadd.f32 %v1296_v45, %v3345_v27  ;;  %v1183_v42 = vmul.f32 -0.1125, %v1178_v26  ;;  %v1193_v63 = vmul.f32 0.1125, %v3452_v44  ;;  %v3609_v22 = vld [vmem:[#allocation9 + $0x140] sm:$0xff]  ;;  %v888_v31 = vld [vmem:[#allocation9 + $0xc8] sm:$0xff] }
 0x1ac   : > { %v1111_v55 = vadd.f32 %v3395_v10, %v1101_v13  ;;  %v1186_v20 = vadd.f32 %v1181_v34, %v1166_v36  ;;  %v1204_v59 = vrot.slane %v3498_v2, 1  ;;  %v1093_v52 = vrot.slane %v3433_v33, 7  ;;  %v900_v8 = vld [vmem:[#allocation9 + $0x118] sm:$0xff]  ;;  %v902_v34 = vld [vmem:[#allocation9 + $0x128] sm:$0xff] }
 0x1ad   : > { %1699 = vst [vmem:[%s3106_s24 + $0x148] sm:$0xff] %v3589_v0  ;;  %1709 = vst [vmem:[%s3106_s24 + $0x198] sm:$0xff] %v3592_v43  ;;  %v1108_v27 = vmul.f32 -0.1125, %v3433_v33  ;;  %v1317_v57 = vmul.f32 %v1152_v58, %v3594_v1  ;;  %v1188_v10 = vadd.f32 %v1183_v42, %v1168_v29  ;;  %v1119_v11 = vrot.slane %v3490_v37, 1  ;;  %v890_v36 = vld [vmem:[#allocation9 + $0xd8] sm:$0xff] }
 0x1ae   : > { %v1131_v15 = vadd.f32 %v3460_v6, %v1111_v55  ;;  %v1196_v26 = vadd.f32 %v3407_v30, %v1186_v20  ;;  %v1207_v45 = vsel %vm672_vm13, %v1203_v39, %v1204_v59  ;;  %v1098_v6 = vsel %vm641_vm12, %v1092_v28, %v1093_v52 }
 0x1af   : > { %v1139_v38 = vrot.slane %v3490_v37, 2  ;;  %v3624_v20 = vadd.f32 %v1317_v57, %v3348_v23  ;;  %v1198_v13 = vadd.f32 %v1193_v63, %v1188_v10  ;;  %v1213_v29 = vmul.f32 -0.004166667, %v1207_v45 }
 0x1b0   : > { %v1151_v30 = vadd.f32 %v3468_v46, %v1131_v15  ;;  %v1216_v39 = vadd.f32 %v3466_v24, %v1196_v26  ;;  %v1103_v3 = vmul.f32 0.004166667, %v1098_v6  ;;  %v1122_v28 = vsel %vm672_vm13, %v1118_v40, %v1119_v11 }
 0x1b1   : > { %v1142_v46 = vsel %vm738_vm15, %v1138_v53, %v1139_v38  ;;  %1714 = vst [vmem:[%s3106_s24 + $0x1c0] sm:$0xff] %v3624_v20  ;;  %v1218_v63 = vadd.f32 %v1213_v29, %v1198_v13  ;;  %v1128_v24 = vmul.f32 0.1125, %v1122_v28  ;;  %v1159_v57 = vrot.slane %v3498_v2, 6  ;;  %v1671_v28 = vld [vmem:[%s2733_s19 + $0x1d0] sm:$0xff] }
 0x1b2   : > { %v1316_v23 = vmul.f32 %v1151_v30, %v3609_v22  ;;  %v1148_v55 = vmul.f32 -0.004166667, %v1142_v46  ;;  %v1253_v58 = vmul.f32 %v1216_v39, %v888_v31  ;;  %v1295_v42 = vmul.f32 %v1216_v39, %v900_v8 }
 0x1b3   : > { %v1113_v15 = vadd.f32 %v1108_v27, %v1103_v3  ;;  %v1255_v10 = vmul.f32 %v1218_v63, %v890_v36  ;;  %v1297_v53 = vmul.f32 %v1218_v63, %v902_v34  ;;  %v1174_v26 = vrot.slane %v3498_v2, 7  ;;  %v1666_v3 = vld [vmem:[%s2733_s19 + $0x1a8] sm:$0xff] }
 0x1b4   : > { %v3640_v40 = vadd.f32 %v1316_v23, %v3361_v16  ;;  %v3644_v45 = vadd.f32 %v1253_v58, %v3342_v21  ;;  %v3647_v6 = vadd.f32 %v1295_v42, %v3358_v41  ;;  %v1162_v31 = vsel %vm625_vm14, %v1158_v50, %v1159_v57  ;;  %v3661_v21 = vld [vmem:[#allocation9 + $0x150] sm:$0xff] }
 0x1b5   : > { %v1133_v27 = vadd.f32 %v1128_v24, %v1113_v15  ;;  %v3656_v16 = vadd.f32 %v1255_v10, %v3369_v4  ;;  %v3659_v8 = vadd.f32 %v1297_v53, %v3372_v61  ;;  %v1169_v30 = vmul.f32 0.004166667, %v1162_v31  ;;  %v891_v10 = vld [vmem:[#allocation9 + $0xe0] sm:$0xff] }
 0x1b6   : > { %1713 = vst [vmem:[%s3106_s24 + $0x1b8] sm:$0xff] %v3640_v40  ;;  %v1177_v41 = vsel %vm641_vm12, %v1173_v47, %v1174_v26  ;;  %1698 = vst [vmem:[%s3106_s24 + $0x140] sm:$0xff] %v3644_v45  ;;  %v1194_v13 = vmul.f32 0.1125, %v3498_v2  ;;  %v1205_v61 = vrot.slane %v3533_v25, 1  ;;  %v1094_v44 = vrot.slane %v3490_v37, 7 }
 0x1b7   : > { %1708 = vst [vmem:[%s3106_s24 + $0x190] sm:$0xff] %v3647_v6  ;;  %v1153_v50 = vadd.f32 %v1148_v55, %v1133_v27  ;;  %v1184_v4 = vmul.f32 -0.1125, %v1177_v41  ;;  %1700 = vst [vmem:[%s3106_s24 + $0x150] sm:$0xff] %v3656_v16  ;;  %v1109_v47 = vmul.f32 -0.1125, %v3490_v37  ;;  %v1293_v53 = vmul.f32 %v1666_v3, %v3186_v56 }
 0x1b8   : > { %1710 = vst [vmem:[%s3106_s24 + $0x1a0] sm:$0xff] %v3659_v8  ;;  %v1120_v29 = vrot.slane %v3526_v32, 1  ;;  %v1140_v39 = vrot.slane %v3526_v32, 2  ;;  %v1206_v2 = vsel %vm672_vm13, %v1204_v59, %v1205_v61  ;;  %v3978_v46 = vrot.slane %v3533_v25, 6 }
 0x1b9   : > { %v1318_v36 = vmul.f32 %v1153_v50, %v3661_v21  ;;  %v1189_v34 = vadd.f32 %v1184_v4, %v1169_v30  ;;  %v1214_v63 = vmul.f32 -0.004166667, %v1206_v2  ;;  %v1097_v37 = vsel %vm641_vm12, %v1093_v52, %v1094_v44  ;;  %v1657_v2 = vld [vmem:[%s2733_s19 + $0x160] sm:$0xff] }
 0x1ba   : > { %v1161_v23 = vsel %vm625_vm14, %v1159_v57, %v3978_v46  ;;  %v1121_v24 = vsel %vm672_vm13, %v1119_v11, %v1120_v29  ;;  %v1141_v59 = vsel %vm738_vm15, %v1139_v38, %v1140_v39  ;;  %v1104_v42 = vmul.f32 0.004166667, %v1097_v37  ;;  %v903_v57 = vld [vmem:[#allocation9 + $0x130] sm:$0xff] }
 0x1bb   : > { %v3699_v55 = vadd.f32 %v1318_v36, %v3383_v49  ;;  %v1199_v58 = vadd.f32 %v1194_v13, %v1189_v34  ;;  %v1129_v15 = vmul.f32 0.1125, %v1121_v24  ;;  %v1314_v33 = vmul.f32 %v1671_v28, %v3297_v48  ;;  %v3722_v34 = vld [vmem:[#allocation9 + $0x158] sm:$0xff] }
 0x1bc   : > { %v1170_v27 = vmul.f32 0.004166667, %v1161_v23  ;;  %v1176_v52 = vsel %vm641_vm12, %v1174_v26, %v1175_v7  ;;  %v1114_v11 = vadd.f32 %v1109_v47, %v1104_v42  ;;  %v3979_v31 = vrot.slane %v3364_v60, 1 }
 0x1bd   : > { %1715 = vst [vmem:[%s3106_s24 + $0x1c8] sm:$0xff] %v3699_v55  ;;  %v1219_v49 = vadd.f32 %v1214_v63, %v1199_v58  ;;  %v1185_v38 = vmul.f32 -0.1125, %v1176_v52  ;;  %v1149_v41 = vmul.f32 -0.004166667, %v1141_v59  ;;  %v3980_v4 = vrot.slane %v3526_v32, 7 }
 0x1be   : > { %v1210_v30 = vsel %vm672_vm13, %v1205_v61, %v3979_v31  ;;  %v1195_v50 = vmul.f32 0.1125, %v3533_v25  ;;  %v3981_v7 = vrot.slane %v3353_v35, 1  ;;  %v1134_v60 = vadd.f32 %v1129_v15, %v1114_v11  ;;  %v1667_v25 = vld [vmem:[%s2733_s19 + $0x1b0] sm:$0xff]  ;;  %v904_v58 = vld [vmem:[#allocation9 + $0x138] sm:$0xff] }
 0x1bf   : > { %v1096_v13 = vsel %vm641_vm12, %v1094_v44, %v3980_v4  ;;  %v1256_v47 = vmul.f32 %v1219_v49, %v891_v10  ;;  %v1298_v36 = vmul.f32 %v1219_v49, %v903_v57  ;;  %v1190_v61 = vadd.f32 %v1185_v38, %v1170_v27  ;;  %v892_v59 = vld [vmem:[#allocation9 + $0xe8] sm:$0xff]  ;;  %v3746_v49 = vld [vmem:[#allocation9 + $0x160] sm:$0xff] }
 0x1c0   : > { %v1125_v26 = vsel %vm672_vm13, %v1120_v29, %v3981_v7  ;;  %v1215_v3 = vmul.f32 -0.004166667, %v1210_v30  ;;  %v1105_v28 = vmul.f32 0.004166667, %v1096_v13  ;;  %v1110_v46 = vmul.f32 -0.1125, %v3526_v32 }
 0x1c1   : > { %v3982_v44 = vrot.slane %v3353_v35, 2  ;;  %v3732_v23 = vadd.f32 %v1256_v47, %v3386_v62  ;;  %v3734_v63 = vadd.f32 %v1298_v36, %v1293_v53  ;;  %v1154_v37 = vadd.f32 %v1149_v41, %v1134_v60 }
 0x1c2   : > { %v1200_v24 = vadd.f32 %v1195_v50, %v1190_v61  ;;  %v1115_v42 = vadd.f32 %v1110_v46, %v1105_v28  ;;  %v1130_v15 = vmul.f32 0.1125, %v1125_v26  ;;  %v1252_v62 = vmul.f32 %v1657_v2, %v3246_v51 }
 0x1c3   : > { %v1145_v29 = vsel %vm738_vm15, %v1140_v39, %v3982_v44  ;;  %1701 = vst [vmem:[%s3106_s24 + $0x158] sm:$0xff] %v3732_v23  ;;  %1711 = vst [vmem:[%s3106_s24 + $0x1a8] sm:$0xff] %v3734_v63  ;;  %v1319_v17 = vmul.f32 %v1154_v37, %v3722_v34  ;;  %v1294_v32 = vmul.f32 %v1667_v25, %v3246_v51  ;;  %v1672_v39 = vld [vmem:[%s2733_s19 + $0x1d8] sm:$0xff] }
 0x1c4   : > { %v1220_v35 = vadd.f32 %v1215_v3, %v1200_v24  ;;  %v1135_v10 = vadd.f32 %v1130_v15, %v1115_v42  ;;  %v1150_v57 = vmul.f32 -0.004166667, %v1145_v29  ;;  %v1315_v38 = vmul.f32 %v1672_v39, %v3302_v14 }
 0x1c5   : > { %v3744_v53 = vadd.f32 %v1319_v17, %v1314_v33 }
 0x1c6   : > { %v1257_v27 = vmul.f32 %v1220_v35, %v892_v59  ;;  %v1299_v52 = vmul.f32 %v1220_v35, %v904_v58  ;;  %v1155_v11 = vadd.f32 %v1150_v57, %v1135_v10 }
 0x1c7   : > { %1716 = vst [vmem:[%s3106_s24 + $0x1d0] sm:$0xff] %v3744_v53 }
 0x1c8   : > { %v3751_v31 = vadd.f32 %v1257_v27, %v1252_v62  ;;  %v3753_v30 = vadd.f32 %v1299_v52, %v1294_v32  ;;  %v1320_v41 = vmul.f32 %v1155_v11, %v3746_v49 }
 0x1ca   : > { %1702 = vst [vmem:[%s3106_s24 + $0x160] sm:$0xff] %v3751_v31  ;;  %1712 = vst [vmem:[%s3106_s24 + $0x1b0] sm:$0xff] %v3753_v30  ;;  %v3760_v33 = vadd.f32 %v1320_v41, %v1315_v38 }
 0x1cc   : > { %1717 = vst [vmem:[%s3106_s24 + $0x1d8] sm:$0xff] %v3760_v33 }
 0x1cd   : > { %2339 = shalt.err (!%p2336_p1)
}
 0x1ce   : > { %s2340_s0 = scalar_lea.hbm %s3771_s11, 1280  ;;  %s2344_s18 = scalar_lea.hbm %s3940_s8, 5120 }
 0x1cf   : > { %p2341_p5 = scmp.ne.s32.totalorder %s3771_s11, %s2340_s0  ;;  %p2345_p4 = scmp.lt.u32.totalorder %s3771_s11, %s3940_s8 }
 0x1d0   : > { %p2346_p12 = scmp.lt.u32.totalorder %s2344_s18, %s2340_s0  ;;  %p2348_p9 = scmp.lt.u32.totalorder %s2340_s0, %s3771_s11 }
 0x1d1   : > { %p2342_p2 = pnand %p2341_p5, %p2676_p11 }
 0x1d2   : > { %p2347_p6 = por %p2346_p12, %p2345_p4 }
 0x1d3   : > { %p2343_p0 = pneg %p2342_p2 }
 0x1d4   : > { %p2349_p13 = por %p2348_p9, %p2347_p6 }
 0x1d6   : > { %p2350_p3 = pnand %p2349_p13, %p2343_p0 }
 0x1d8   : > { %2353 = shalt.err (!%p2350_p3)
}
 0x1d9   : > { %s2448_s15 = smov 128   ;;  %s2449_s12 = smov 8   ;;  %v1648_v50 = vld [vmem:[%s2733_s19 + $0x118] sm:$0xff]  ;;  %v1658_v4 = vld [vmem:[%s2733_s19 + $0x168] sm:$0xff]  ;;  %v1673_v13 = vld [vmem:[%s2733_s19 + $0x1e0] sm:$0xff] }
 0x1da   : > { %2116 = dma.vmem_to_hbm [thread:$0]  (%p2676_p11), %s3766_s20, 1280, %s3771_s11, %s1422_s23, %s2448_s15, %s2448_s15, %s2449_s12   ;;  %v882_v7 = vld [vmem:[#allocation9 + $0xa0] sm:$0xff]  ;;  %v894_v26 = vld [vmem:[#allocation9 + $0xf0] sm:$0xff]  ;;  %v1227_v47 = vmul.f32 %v1648_v50, %v3285_v5  ;;  %v1269_v36 = vmul.f32 %v1658_v4, %v3285_v5  ;;  %v1332_v61 = vmul.f32 %v1673_v13, %v3056_v9  ;;  %v883_v59 = vld [vmem:[#allocation9 + $0xa8] sm:$0xff] }
 0x1db   : > { %v1649_v2 = vld [vmem:[%s2733_s19 + $0x120] sm:$0xff]  ;;  %v1659_v25 = vld [vmem:[%s2733_s19 + $0x170] sm:$0xff]  ;;  %v1674_v29 = vld [vmem:[%s2733_s19 + $0x1e8] sm:$0xff]  ;;  %s1435_s20 = sshll.u32 %s3106_s24, 4  ;;  %s1417_s21 = scalar_lea.sflag [#allocation8], %s2727_s25  ;;  %s3884_s20 = int_to_ptr.vmem [resolvable:$true] %s1435_s20 }
 0x1dc   : > { %v895_v58 = vld [vmem:[#allocation9 + $0xf8] sm:$0xff]  ;;  %v1228_v9 = vmul.f32 %v1649_v2, %v3289_v18  ;;  %v1270_v15 = vmul.f32 %v1659_v25, %v3289_v18  ;;  %v1333_v62 = vmul.f32 %v1674_v29, %v3094_v12  ;;  %v1660_v39 = vld [vmem:[%s2733_s19 + $0x178] sm:$0xff]  ;;  %v1675_v11 = vld [vmem:[%s2733_s19 + $0x1f0] sm:$0xff]  ;;  %s2354_s17 = scalar_lea.vmem %s3884_s20, 8320  ;;  %s2450_s0 = smov [#allocation14]  }
 0x1dd   : > { %v1650_v32 = vld [vmem:[%s2733_s19 + $0x128] sm:$0xff]  ;;  %v897_v29 = vld [vmem:[#allocation9 + $0x108] sm:$0xff]  ;;  %p2355_p7 = scmp.ne.s32.totalorder %s3884_s20, %s2354_s17  ;;  %s2358_s29 = sshll.u32 %s2450_s0, 4  ;;  %s2359_s29 = int_to_ptr.vmem [resolvable:$false] %s2358_s29 }
 0x1de   : > { %v896_v50 = vld [vmem:[#allocation9 + $0x100] sm:$0xff]  ;;  %v1229_v13 = vmul.f32 %v1650_v32, %v3293_v19  ;;  %v1677_v32 = vld [vmem:[%s2733_s19 + $0x200] sm:$0xff]  ;;  %s2360_s13 = scalar_lea.vmem %s2359_s29, 16640  ;;  %p2361_p1 = scmp.lt.s32.totalorder %s3884_s20, %s2359_s29 }
 0x1df   : > { %p2356_p8 = pnand %p2355_p7, %p2676_p11  ;;  %p2362_p5 = scmp.lt.s32.totalorder %s2360_s13, %s2354_s17 }
 0x1e1   : > { %p2357_p10 = pneg %p2356_p8  ;;  %p2363_p2 = por %p2362_p5, %p2361_p1 }
 0x1e3   : > { %p2364_p0 = pnand %p2363_p2, %p2357_p10 }
 0x269   : > { %v977_v60 = vpop.f32.mrb[10].mxu0 }
 0x26a   : > { %v1232_v3 = vmul.f32 %v977_v60, %v882_v7  ;;  %v1274_v28 = vmul.f32 %v977_v60, %v894_v26  ;;  %v1067_v46 = vpop.f32.mrb[10].mxu1  ;;  %v1939_v44 = vpop.f32.mrb[11].mxu0  ;;  %v1271_v7 = vmul.f32 %v1660_v39, %v3293_v19 }
 0x26b   : > { %v1337_v37 = vmul.f32 %v1067_v46, %v3609_v22  ;;  %v1986_v24 = vpop.f32.mrb[11].mxu1 }
 0x26c   : > { %v1237_v5 = vadd.f32 %v1232_v3, %v1227_v47  ;;  %v1279_v42 = vadd.f32 %v1274_v28, %v1269_v36  ;;  %v1651_v47 = vld [vmem:[%s2733_s19 + $0x130] sm:$0xff]  ;;  %v1661_v36 = vld [vmem:[%s2733_s19 + $0x180] sm:$0xff]  ;;  %v1676_v28 = vld [vmem:[%s2733_s19 + $0x1f8] sm:$0xff] }
 0x26d   : > { %v1342_v17 = vadd.f32 %v1337_v37, %v1332_v61  ;;  %v982_v35 = vpop.f32.mrb[12].mxu0  ;;  %v1230_v24 = vmul.f32 %v1651_v47, %v3297_v48 }
 0x26e   : > { %v1347_v22 = vadd.f32 %v3644_v45, %v1237_v5  ;;  %v1358_v10 = vadd.f32 %v3647_v6, %v1279_v42  ;;  %1693 = vst [vmem:[%s3106_s24 + $0x118] sm:$0xff] %v1237_v5  ;;  %1703 = vst [vmem:[%s3106_s24 + $0x168] sm:$0xff] %v1279_v42  ;;  %v1233_v57 = vmul.f32 %v982_v35, %v883_v59  ;;  %v1072_v52 = vpop.f32.mrb[12].mxu1  ;;  %v1942_v18 = vpop.f32.mrb[13].mxu0  ;;  %v884_v45 = vld [vmem:[#allocation9 + $0xb0] sm:$0xff]  ;;  %v1662_v42 = vld [vmem:[%s2733_s19 + $0x188] sm:$0xff] }
 0x26f   : > { %v1275_v27 = vmul.f32 %v982_v35, %v895_v58  ;;  %v1369_v38 = vadd.f32 %v1342_v17, %v3640_v40  ;;  %1718 = vst [vmem:[%s3106_s24 + $0x1e0] sm:$0xff] %v1342_v17  ;;  %v1338_v12 = vmul.f32 %v1072_v52, %v3594_v1  ;;  %v1989_v41 = vpop.f32.mrb[13].mxu1  ;;  %v1334_v1 = vmul.f32 %v1675_v11, %v3131_v54  ;;  %v1652_v5 = vld [vmem:[%s2733_s19 + $0x138] sm:$0xff]  ;;  %s2099_s19 = smul.u32 8320, %s2544_s2 }
 0x270   : > { %1678 = vst [vmem:[%s3106_s24 + $0xa0] sm:$0xff] %v1347_v22  ;;  %1683 = vst [vmem:[%s3106_s24 + $0xc8] sm:$0xff] %v1358_v10  ;;  %v1238_v6 = vadd.f32 %v1233_v57, %v1228_v9  ;;  %v1272_v59 = vmul.f32 %v1661_v36, %v3297_v48  ;;  %v898_v10 = vld [vmem:[#allocation9 + $0x110] sm:$0xff]  ;;  %v1273_v52 = vmul.f32 %v1662_v42, %v3302_v14 }
 0x271   : > { %v1280_v4 = vadd.f32 %v1275_v27, %v1270_v15  ;;  %1688 = vst [vmem:[%s3106_s24 + $0xf0] sm:$0xff] %v1369_v38  ;;  %v1343_v40 = vadd.f32 %v1338_v12, %v1333_v62  ;;  %v987_v26 = vpop.f32.mrb[14].mxu0  ;;  %v1231_v27 = vmul.f32 %v1652_v5, %v3302_v14  ;;  %s3882_s23 = scalar_lea.hbm %s3939_s7, %s2099_s19 }
 0x272   : > { %v1348_v60 = vadd.f32 %v3589_v0, %v1238_v6  ;;  %1694 = vst [vmem:[%s3106_s24 + $0x120] sm:$0xff] %v1238_v6  ;;  %v1234_v2 = vmul.f32 %v987_v26, %v884_v45  ;;  %v1276_v25 = vmul.f32 %v987_v26, %v896_v50  ;;  %v1077_v19 = vpop.f32.mrb[14].mxu1  ;;  %v1945_v3 = vpop.f32.mrb[15].mxu0  ;;  %v885_v0 = vld [vmem:[#allocation9 + $0xb8] sm:$0xff] }
 0x273   : > { %v1359_v61 = vadd.f32 %v3592_v43, %v1280_v4  ;;  %1704 = vst [vmem:[%s3106_s24 + $0x170] sm:$0xff] %v1280_v4  ;;  %v1370_v46 = vadd.f32 %v1343_v40, %v3624_v20  ;;  %1719 = vst [vmem:[%s3106_s24 + $0x1e8] sm:$0xff] %v1343_v40  ;;  %v1339_v54 = vmul.f32 %v1077_v19, %v3661_v21  ;;  %v1992_v44 = vpop.f32.mrb[15].mxu1 }
 0x274   : > { %1679 = vst [vmem:[%s3106_s24 + $0xa8] sm:$0xff] %v1348_v60  ;;  %v1239_v43 = vadd.f32 %v1234_v2, %v1229_v13  ;;  %v1281_v37 = vadd.f32 %v1276_v25, %v1271_v7  ;;  %v1335_v21 = vmul.f32 %v1676_v28, %v3186_v56 }
 0x275   : > { %1684 = vst [vmem:[%s3106_s24 + $0xd0] sm:$0xff] %v1359_v61  ;;  %1689 = vst [vmem:[%s3106_s24 + $0xf8] sm:$0xff] %v1370_v46  ;;  %v1344_v20 = vadd.f32 %v1339_v54, %v1334_v1  ;;  %v992_v58 = vpop.f32.mrb[16].mxu0 }
 0x276   : > { %v1349_v9 = vadd.f32 %v3656_v16, %v1239_v43  ;;  %v1360_v15 = vadd.f32 %v3659_v8, %v1281_v37  ;;  %1695 = vst [vmem:[%s3106_s24 + $0x128] sm:$0xff] %v1239_v43  ;;  %1705 = vst [vmem:[%s3106_s24 + $0x178] sm:$0xff] %v1281_v37  ;;  %v1235_v17 = vmul.f32 %v992_v58, %v885_v0  ;;  %v1082_v48 = vpop.f32.mrb[16].mxu1  ;;  %v1948_v62 = vpop.f32.mrb[17].mxu0  ;;  %v886_v16 = vld [vmem:[#allocation9 + $0xc0] sm:$0xff] }
 0x277   : > { %v1277_v35 = vmul.f32 %v992_v58, %v897_v29  ;;  %v1371_v39 = vadd.f32 %v1344_v20, %v3699_v55  ;;  %1720 = vst [vmem:[%s3106_s24 + $0x1f0] sm:$0xff] %v1344_v20  ;;  %v1340_v56 = vmul.f32 %v1082_v48, %v3722_v34  ;;  %v1995_v22 = vpop.f32.mrb[17].mxu1  ;;  %v1336_v34 = vmul.f32 %v1677_v32, %v3246_v51 }
 0x278   : > { %1680 = vst [vmem:[%s3106_s24 + $0xb0] sm:$0xff] %v1349_v9  ;;  %1685 = vst [vmem:[%s3106_s24 + $0xd8] sm:$0xff] %v1360_v15  ;;  %v1240_v8 = vadd.f32 %v1235_v17, %v1230_v24 }
 0x279   : > { %v1282_v57 = vadd.f32 %v1277_v35, %v1272_v59  ;;  %1690 = vst [vmem:[%s3106_s24 + $0x100] sm:$0xff] %v1371_v39  ;;  %v1345_v55 = vadd.f32 %v1340_v56, %v1335_v21  ;;  %v997_v18 = vpop.f32.mrb[18].mxu0 }
 0x27a   : > { %v1350_v11 = vadd.f32 %v3732_v23, %v1240_v8  ;;  %1696 = vst [vmem:[%s3106_s24 + $0x130] sm:$0xff] %v1240_v8  ;;  %v1236_v12 = vmul.f32 %v997_v18, %v886_v16  ;;  %v1278_v41 = vmul.f32 %v997_v18, %v898_v10  ;;  %v1087_v45 = vpop.f32.mrb[18].mxu1  ;;  %v1951_v14 = vpop.f32.mrb[19].mxu0 }
 0x27b   : > { %v1361_v38 = vadd.f32 %v3734_v63, %v1282_v57  ;;  %1706 = vst [vmem:[%s3106_s24 + $0x180] sm:$0xff] %v1282_v57  ;;  %v1372_v50 = vadd.f32 %v1345_v55, %v3744_v53  ;;  %1721 = vst [vmem:[%s3106_s24 + $0x1f8] sm:$0xff] %v1345_v55  ;;  %v1341_v51 = vmul.f32 %v1087_v45, %v3746_v49  ;;  %v1998_v6 = vpop.f32.mrb[19].mxu1 }
 0x27c   : > { %1681 = vst [vmem:[%s3106_s24 + $0xb8] sm:$0xff] %v1350_v11  ;;  %v1241_v23 = vadd.f32 %v1236_v12, %v1231_v27  ;;  %v1283_v63 = vadd.f32 %v1278_v41, %v1273_v52 }
 0x27d   : > { %1686 = vst [vmem:[%s3106_s24 + $0xe0] sm:$0xff] %v1361_v38  ;;  %1691 = vst [vmem:[%s3106_s24 + $0x108] sm:$0xff] %v1372_v50  ;;  %v1346_v4 = vadd.f32 %v1341_v51, %v1336_v34 }
 0x27e   : > { %v1351_v53 = vadd.f32 %v3751_v31, %v1241_v23  ;;  %v1362_v13 = vadd.f32 %v3753_v30, %v1283_v63  ;;  %1697 = vst [vmem:[%s3106_s24 + $0x138] sm:$0xff] %v1241_v23  ;;  %1707 = vst [vmem:[%s3106_s24 + $0x188] sm:$0xff] %v1283_v63 }
 0x27f   : > { %v1373_v49 = vadd.f32 %v1346_v4, %v3760_v33  ;;  %1722 = vst [vmem:[%s3106_s24 + $0x200] sm:$0xff] %v1346_v4 }
 0x280   : > { %1682 = vst [vmem:[%s3106_s24 + $0xc0] sm:$0xff] %v1351_v53  ;;  %1687 = vst [vmem:[%s3106_s24 + $0xe8] sm:$0xff] %v1362_v13 }
 0x281   : > { %1692 = vst [vmem:[%s3106_s24 + $0x110] sm:$0xff] %v1373_v49 }
 0x282   : > { %2367 = shalt.err (!%p2364_p0)
}
 0x283   : > { %s2368_s24 = scalar_lea.hbm %s3882_s23, 8320  ;;  %s2372_s10 = scalar_lea.hbm %s3939_s7, 33280 }
 0x284   : > { %p2369_p4 = scmp.ne.s32.totalorder %s3882_s23, %s2368_s24  ;;  %p2373_p9 = scmp.lt.u32.totalorder %s3882_s23, %s3939_s7 }
 0x285   : > { %p2374_p13 = scmp.lt.u32.totalorder %s2372_s10, %s2368_s24  ;;  %p2376_p7 = scmp.lt.u32.totalorder %s2368_s24, %s3882_s23 }
 0x286   : > { %p2370_p12 = pnand %p2369_p4, %p2676_p11 }
 0x287   : > { %p2375_p3 = por %p2374_p13, %p2373_p9 }
 0x288   : > { %p2371_p6 = pneg %p2370_p12 }
 0x289   : > { %p2377_p8 = por %p2376_p7, %p2375_p3 }
 0x28b   : > { %p2378_p10 = pnand %p2377_p8, %p2371_p6 }
 0x28d   : > { %2381 = shalt.err (!%p2378_p10)
}
 0x28e   : > { %2115 = dma.vmem_to_hbm [thread:$0]  (%p2676_p11), %s3884_s20, 8320, %s3882_s23, %s1417_s21, %s2448_s15, %s2448_s15, %s2449_s12  }
 0x28f PF: > { %p2147_p1 = scmp.ge.s32.totalorder %s2434_s28, 2  ;;  %s1466_s11 = sand.u32 1, %s2422_s1  }
 0x290   : > { %p3983_p5 = scmp.ne.s32.totalorder %s3952_s9, 0  ;;  %s1467_s17 = scalar_lea.sflag [#allocation8], %s1466_s11 }
 0x292   : > { %p2134_p2 = pnand %p2147_p1, %p3983_p5 }
 0x294   : > { %2413 = dma.done.wait (!%p2134_p2), %s1467_s17, 8320  }
 0x295   : > { %2415 = vsyncadd (!%p2134_p2), %s1467_s17, 4294958976  ;;  %s1476_s16 = scalar_lea.sflag [#allocation16], %s1466_s11 }
 0x296   : > { %2417 = dma.done.wait (!%p2134_p2), %s1476_s16, 1280  }
 0x297   : > { %2419 = vsyncadd (!%p2134_p2), %s1476_s16, 4294966016  ;;  %p34_p11 = scmp.ge.s32.totalorder %s2662_s22, 6   ;;  %s3984_s1 = smov %s2426_s26 }
 0x298   : > { %s3985_s26 = smov %s2430_s27  ;;  %s3986_s27 = smov %s2672_s14 }
 0x299   : > { %s3987_s28 = smov %s2662_s22  ;;  %36 = sbr.rel (!%p34_p11) target bundleno = 28 (0x1c), region = 143 }
 0x2a0   :  { %1481 = vsyncpa [#allocation7], 1 }
 0x2a1   :  { %1483 = vsyncpa [#allocation7 + $0x1], 1 }
 0x2a2   :  { %1484 = vsyncpa [#allocation10], 1 }
 0x2a3   :  { %1485 = vsyncpa [#allocation13], 1 }
 0x2a4   :  { %1486 = vsyncpa [#allocation8], 1 }
 0x2a5   :  { %1488 = vsyncpa [#allocation8 + $0x1], 1 }
 0x2a6   :  { %1489 = vsyncpa [#allocation16], 1 }
 0x2a7   :  { %1491 = vsyncpa [#allocation16 + $0x1], 1 }

// kernel: step.1
= control target key start
LH: loop header
LB: loop body
LE: loop exit
PB: predicated region body
PF: predicated region fallthrough
CT: control target
= control target key end

     0   :  { %s3933_s0 = inlined_call_operand.<no memory space> [shape: f32[1], index: 0, kind: input, shape index: {}]   ;;  %s3934_s1 = inlined_call_operand.hbm [shape: s32[4], index: 1, kind: input, shape index: {}]   ;;  %s3935_s3 = inlined_call_operand.hbm [shape: f32[4,13,40,128], index: 3, kind: input, shape index: {}]   ;;  %s3936_s4 = inlined_call_operand.hbm [shape: f32[9,40,128], index: 4, kind: input, shape index: {}]   ;;  %s3937_s5 = inlined_call_operand.hbm [shape: f32[128,128], index: 5, kind: input, shape index: {}]   ;;  %s3938_s6 = inlined_call_operand.hbm [shape: f32[128,128], index: 6, kind: input, shape index: {}]   ;;  %s3939_s7 = inlined_call_operand.hbm [shape: f32[4,13,40,128], index: 7, kind: output, shape index: {0}]   ;;  %s3940_s8 = inlined_call_operand.hbm [shape: f32[4,2,40,128], index: 8, kind: output, shape index: {1}]   ;;  %s3941_s2 = inlined_call_operand.hbm [shape: s32[4], index: 2, kind: input, shape index: {}]  }
   0x1   :  { %14 = sst [smem:[#allocation3]] %s3933_s0  ;;  %s2192_s9 = scalar_lea.hbm %s3934_s1, 16 }
   0x2   :  { %p2193_p0 = scmp.ne.s32.totalorder %s3934_s1, %s2192_s9  ;;  %p2196_p1 = scmp.lt.u32.totalorder %s2192_s9, %s3934_s1 }
   0x4   :  { %p2198_p2 = pnand %p2196_p1, %p2193_p0 }
   0x6   :  { %2201 = shalt.err (!%p2198_p2)  }
   0x7   :  { %s2436_s14 = smov [#allocation4]   ;;  %s2202_s18 = scalar_lea.hbm %s3941_s2, 16 }
   0x8   :  { %16 = dma.hbm_to_smem %s3934_s1, 16, %s2436_s14, [#allocation2] }
   0x9   :  { %p2203_p3 = scmp.ne.s32.totalorder %s3941_s2, %s2202_s18  ;;  %p2206_p4 = scmp.lt.u32.totalorder %s2202_s18, %s3941_s2 }
   0xb   :  { %p2208_p5 = pnand %p2206_p4, %p2203_p3 }
   0xd   :  { %2211 = shalt.err (!%p2208_p5)  }
   0xe   :  { %s2437_s23 = smov [#allocation5]  }
   0xf   :  { %18 = dma.hbm_to_smem %s3941_s2, 16, %s2437_s23, [#allocation2] }
  0x10   :  { %2398 = dma.done.wait [#allocation2], 32 }
  0x11   :  { %2399 = vsyncadd [#allocation2], 4294967264 }
  0x12   :  { %20 = sfence }
  0x13   :  { %21 = vsyncpa [#allocation7], 0 }
  0x14   :  { %23 = vsyncpa [#allocation7 + $0x1], 0 }
  0x15   :  { %24 = vsyncpa [#allocation10], 0 }
  0x16   :  { %25 = vsyncpa [#allocation13], 0 }
  0x17   :  { %26 = vsyncpa [#allocation8], 0 }
  0x18   :  { %28 = vsyncpa [#allocation8 + $0x1], 0 }
  0x19   :  { %29 = vsyncpa [#allocation16], 0 }
  0x1a   :  { %31 = vsyncpa [#allocation16 + $0x1], 0  ;;  %s2523_s1 = smov 0   ;;  %s2525_s26 = smov 0  }
  0x1b   :  { %s2527_s27 = smov 0   ;;  %s2529_s28 = smov 0  }
  0x1c LB: > { %s2544_s2 = sadd.s32 4294967295, %s2434_s28   ;;  %s1585_s29 = sadd.s32 4294967294, %s2434_s28   ;;  %s2434_s28 = sphi %s2529_s28, %s3987_s28   ;;  %s2430_s27 = sphi %s2527_s27, %s3986_s27   ;;  %s2426_s26 = sphi %s2525_s26, %s3985_s26   ;;  %s2422_s1 = sphi %s2523_s1, %s3984_s1  }
  0x1d   : > { %p57_p6 = scmp.ne.s32.totalorder %s2426_s26, %s2422_s1  ;;  %p3942_p7 = scmp.eq.s32.totalorder %s2544_s2, 0 }
  0x1e   : > { %p150_p9 = scmp.eq.s32.totalorder %s1585_s29, 3  ;;  %p1586_p11 = scmp.ge.s32.totalorder %s2434_s28, 1 }
  0x1f   : > { %p2553_p10 = por %p3942_p7, %p57_p6  ;;  %p183_p13 = scmp.lt.s32.totalorder %s2434_s28, 5 }
  0x20   : > { %p2558_p12 = por %p150_p9, %p57_p6  ;;  %s2438_s11 = smov [#allocation9]  }
  0x21   : > { %s3951_s30 = scalar_select %p2553_p10, 1, 0 }
  0x22   : > { %s3952_s9 = scalar_select %p2558_p12, 1, 0 }
  0x23   : > { %p2563_p0 = pnand %p1586_p11, %p183_p13  ;;  %s195_s12 = sshll.u32 %s2438_s11, 4  ;;  %s2567_s12 = int_to_ptr.vmem [resolvable:$true] %s195_s12 }
  0x24   : > { %s2439_s14 = smov [#allocation11]   ;;  %s2440_s16 = smov [#allocation12]  }
  0x25   : > { %s3953_s10 = scalar_select %p2563_p0, 1, 0 }
  0x26   : > { %p2119_p1 = pneg %p2563_p0  ;;  %s208_s15 = sshll.u32 %s2439_s14, 4  ;;  %s2577_s15 = int_to_ptr.vmem [resolvable:$true] %s208_s15 }
  0x27   : > { %s2579_s0 = sshll.u32 %s2440_s16, 4  ;;  %s2212_s19 = scalar_lea.hbm %s3936_s4, 5760  ;;  %s222_s0 = int_to_ptr.vmem [resolvable:$true] %s2579_s0 }
  0x28   : > { %p2573_p2 = pnand %p2119_p1, %p3942_p7  ;;  %p2213_p3 = scmp.ne.s32.totalorder %s3936_s4, %s2212_s19 }
  0x29   : > { %p2219_p9 = scmp.lt.u32.totalorder %s2212_s19, %s3936_s4 }
  0x2a   : > { %p2589_p4 = pneg %p2573_p2 }
  0x2c   : > { %p2215_p5 = pnand %p2589_p4, %p2213_p3 }
  0x2e   : > { %p2216_p6 = pneg %p2215_p5 }
  0x30   : > { %p2221_p11 = pnand %p2219_p9, %p2216_p6 }
  0x32   : > { %2224 = shalt.err (!%p2221_p11)
}
  0x33   : > { %s2225_s25 = scalar_lea.vmem %s2567_s12, 5760  ;;  %p2233_p8 = scmp.lt.s32.totalorder %s2567_s12, %s2567_s12 }
  0x34   : > { %p2226_p13 = scmp.ne.s32.totalorder %s2567_s12, %s2225_s25  ;;  %p2234_p12 = scmp.lt.s32.totalorder %s2225_s25, %s2225_s25 }
  0x36   : > { %p2228_p1 = pnand %p2226_p13, %p2589_p4  ;;  %p2235_p3 = por %p2234_p12, %p2233_p8 }
  0x38   : > { %p2229_p7 = pneg %p2228_p1 }
  0x3a   : > { %p2236_p5 = pnand %p2235_p3, %p2229_p7 }
  0x3c   : > { %2239 = shalt.err (!%p2236_p5)
}
  0x3d   : > { %s3945_s29 = smov 128   ;;  %s2442_s11 = smov 8  }
  0x3e   : > { %2122 = dma.hbm_to_vmem [thread:$0]  (!%p2573_p2), %s3936_s4, 5760, %s2567_s12, [#allocation10], %s3945_s29, %s3945_s29, %s2442_s11  }
  0x3f   : > { %s2240_s19 = scalar_lea.hbm %s3937_s5, 2048 }
  0x40   : > { %p2241_p7 = scmp.ne.s32.totalorder %s3937_s5, %s2240_s19  ;;  %p2247_p6 = scmp.lt.u32.totalorder %s2240_s19, %s3937_s5 }
  0x42   : > { %p2243_p8 = pnand %p2241_p7, %p2589_p4 }
  0x44   : > { %p2244_p12 = pneg %p2243_p8 }
  0x46   : > { %p2249_p9 = pnand %p2247_p6, %p2244_p12 }
  0x48   : > { %2252 = shalt.err (!%p2249_p9)
}
  0x49   : > { %s2253_s12 = scalar_lea.vmem %s2577_s15, 2048  ;;  %p2261_p3 = scmp.lt.s32.totalorder %s2577_s15, %s2577_s15 }
  0x4a   : > { %p2254_p11 = scmp.ne.s32.totalorder %s2577_s15, %s2253_s12  ;;  %p2262_p5 = scmp.lt.s32.totalorder %s2253_s12, %s2253_s12 }
  0x4c   : > { %p2256_p13 = pnand %p2254_p11, %p2589_p4  ;;  %p2263_p7 = por %p2262_p5, %p2261_p3 }
  0x4e   : > { %p2257_p1 = pneg %p2256_p13 }
  0x50   : > { %p2264_p8 = pnand %p2263_p7, %p2257_p1 }
  0x52   : > { %2267 = shalt.err (!%p2264_p8)
}
  0x53   : > { %2125 = dma.hbm_to_vmem [thread:$0]  (!%p2573_p2), %s3937_s5, 2048, %s2577_s15, [#allocation10], %s3945_s29, %s3945_s29, %s2442_s11  }
  0x54   : > { %s2268_s18 = scalar_lea.hbm %s3938_s6, 2048 }
  0x55   : > { %p2269_p12 = scmp.ne.s32.totalorder %s3938_s6, %s2268_s18  ;;  %p2275_p11 = scmp.lt.u32.totalorder %s2268_s18, %s3938_s6 }
  0x57   : > { %p2271_p6 = pnand %p2269_p12, %p2589_p4 }
  0x59   : > { %p2272_p9 = pneg %p2271_p6 }
  0x5b   : > { %p2277_p13 = pnand %p2275_p11, %p2272_p9 }
  0x5d   : > { %2280 = shalt.err (!%p2277_p13)
}
  0x5e   : > { %s2281_s24 = scalar_lea.vmem %s222_s0, 2048  ;;  %p2289_p7 = scmp.lt.s32.totalorder %s222_s0, %s222_s0 }
  0x5f   : > { %p2282_p1 = scmp.ne.s32.totalorder %s222_s0, %s2281_s24  ;;  %p2290_p8 = scmp.lt.s32.totalorder %s2281_s24, %s2281_s24 }
  0x61   : > { %p2284_p3 = pnand %p2282_p1, %p2589_p4  ;;  %p2291_p10 = por %p2290_p8, %p2289_p7 }
  0x63   : > { %p2285_p5 = pneg %p2284_p3 }
  0x65   : > { %p2292_p0 = pnand %p2291_p10, %p2285_p5 }
  0x67   : > { %2295 = shalt.err (!%p2292_p0)
}
  0x68   : > { %2128 = dma.hbm_to_vmem [thread:$0]  (!%p2573_p2), %s3938_s6, 2048, %s222_s0, [#allocation13], %s3945_s29, %s3945_s29, %s2442_s11  }
  0x69   : > { %s2662_s22 = sadd.s32 1, %s2434_s28   ;;  %s44_s25 = sadd.s32 1, %s2430_s27 }
  0x6a   : > { %s41_s13 = ssub.s32 %s2434_s28, %s2662_s22  ;;  %p51_p0 = scmp.ne.s32.totalorder %s2430_s27, %s2426_s26 }
  0x6b   : > { %p42_p10 = scmp.eq.s32.totalorder %s41_s13, 0  ;;  %p52_p4 = scmp.eq.s32.totalorder %s2434_s28, 0 }
  0x6c   : > { %p2143_p12 = scmp.lt.s32.totalorder %s2434_s28, 4  ;;  %p3956_p9 = scmp.eq.s32.totalorder %s2544_s2, 3 }
  0x6d   : > { %s2672_s14 = scalar_select %p42_p10, %s2430_s27, %s44_s25  }
  0x6e   : > { %p53_p6 = por %p52_p4, %p51_p0  ;;  %p2676_p11 = por %p3956_p9, %p51_p0 }
  0x6f   : > { %s235_s17 = sand.u32 1, %s2430_s27   ;;  %s2096_s18 = smul.u32 8320, %s2434_s28 }
  0x70   : > { %s2095_s0 = smul.u32 520, %s235_s17  ;;  %p2682_p2 = pnand %p2143_p12, %p53_p6 }
  0x71   : > { %s2689_s23 = scalar_lea.hbm %s3935_s3, %s2096_s18  ;;  %s2693_s12 = scalar_lea.sflag [#allocation7], %s235_s17 }
  0x72   : > { %s239_s24 = scalar_lea.vmem [#allocation6], %s2095_s0  ;;  %s2296_s13 = scalar_lea.hbm %s2689_s23, 8320 }
  0x73   : > { %s246_s15 = sshll.u32 %s239_s24, 4  ;;  %p2297_p13 = scmp.ne.s32.totalorder %s2689_s23, %s2296_s13  ;;  %s2691_s15 = int_to_ptr.vmem [resolvable:$true] %s246_s15 }
  0x74   : > { %p2298_p1 = pneg %p2682_p2  ;;  %s2301_s20 = scalar_lea.hbm %s3935_s3, 33280 }
  0x75   : > { %p2302_p7 = scmp.lt.u32.totalorder %s2689_s23, %s3935_s3  ;;  %p2303_p8 = scmp.lt.u32.totalorder %s2301_s20, %s2296_s13 }
  0x76   : > { %p2299_p3 = pnand %p2298_p1, %p2297_p13  ;;  %p2305_p0 = scmp.lt.u32.totalorder %s2296_s13, %s2689_s23 }
  0x77   : > { %p2304_p10 = por %p2303_p8, %p2302_p7 }
  0x78   : > { %p2300_p5 = pneg %p2299_p3 }
  0x79   : > { %p2306_p4 = por %p2305_p0, %p2304_p10 }
  0x7b   : > { %p2307_p12 = pnand %p2306_p4, %p2300_p5 }
  0x7d   : > { %2310 = shalt.err (!%p2307_p12)
}
  0x7e   : > { %s2311_s17 = scalar_lea.vmem %s2691_s15, 8320  ;;  %s2443_s0 = smov [#allocation6]  }
  0x7f   : > { %p2312_p6 = scmp.ne.s32.totalorder %s2691_s15, %s2311_s17  ;;  %s2316_s24 = sshll.u32 %s2443_s0, 4  ;;  %s2317_s24 = int_to_ptr.vmem [resolvable:$false] %s2316_s24 }
  0x80   : > { %s2318_s29 = scalar_lea.vmem %s2317_s24, 16640  ;;  %p2319_p3 = scmp.lt.s32.totalorder %s2691_s15, %s2317_s24 }
  0x81   : > { %p2314_p9 = pnand %p2312_p6, %p2298_p1  ;;  %p2320_p7 = scmp.lt.s32.totalorder %s2318_s29, %s2311_s17 }
  0x83   : > { %p2315_p13 = pneg %p2314_p9  ;;  %p2321_p8 = por %p2320_p7, %p2319_p3 }
  0x85   : > { %p2322_p10 = pnand %p2321_p8, %p2315_p13 }
  0x87   : > { %2325 = shalt.err (!%p2322_p10)
}
  0x88   : > { %s3959_s13 = smov 128   ;;  %p3960_p1 = scmp.ne.s32.totalorder %s3953_s10, 0 }
  0x89   : > { %2132 = dma.hbm_to_vmem [thread:$0]  (!%p2682_p2), %s2689_s23, 8320, %s2691_s15, %s2693_s12, %s3959_s13, %s3959_s13, %s2442_s11  }
  0x8a   : > { %258 = sbr.rel (%p3960_p1) target bundleno = 655 (0x28f), region = 36  ;;  %s2727_s25 = sand.u32 (!%p3960_p1), 1, %s2426_s26  }
  0x8b   : > { %s2097_s18 = smul.u32 (!%p3960_p1), 520, %s2727_s25  ;;  %s261_s20 = scalar_lea.sflag (!%p3960_p1), [#allocation7], %s2727_s25 }
  0x8c   : > { %p3961_p5 = scmp.ne.s32.totalorder (!%p3960_p1), %s3951_s30, 0 }
  0x8d   : > { %s2733_s19 = scalar_lea.vmem (!%p3960_p1), [#allocation6], %s2097_s18 }
  0x91   : > { %2401 = dma.done.wait (%p3961_p5), %s261_s20, 8320  }
  0x92   : > { %2403 = vsyncadd (%p3961_p5), %s261_s20, 4294958976  ;;  %p3962_p2 = scmp.eq.s32.totalorder %s2544_s2, 0 }
  0x94   : > { %2405 = dma.done.wait (%p3962_p2), [#allocation10], 7808   ;;  %p3963_p0 = pmov %p3962_p2 }
  0x96   : > { %2407 = vsyncadd (%p3963_p0), [#allocation10], 4294959488  ;;  %p3964_p4 = pmov %p3963_p0 }
  0x97   : > { %p3965_p12 = pmov %p3963_p0 }
  0x98   : > { %2409 = dma.done.wait (%p3964_p4), [#allocation13], 2048  }
  0x99   : > { %2411 = vsyncadd (%p3965_p12), [#allocation13], 4294965248  ;;  %v2444_v0 = vmov 0.0|0.0   ;;  %s309_s30 = ssub.s32 0, %s2544_s2  ;;  %vm2445_vm0 = vmmov 0   ;;  %v2446_v1 = vmov 0.0   ;;  %v323_v5 = vlaneseq }
  0x9a   : > { %1999 = vmatprep.subr.bf16.mxu0 %v2444_v0  ;;  %2023 = vmatprep.subr.bf16.mxu1 %v2444_v0  ;;  %p308_p6 = scmp.lt.s32.totalorder %s2544_s2, 0  ;;  %s1596_s10 = smin.u32 %s2544_s2, %s309_s30  ;;  %v385_v2 = vld [vmem:[#allocation11] sm:$0xff]  ;;  %v386_v3 = vld [vmem:[#allocation11 + $0x8] sm:$0xff]  ;;  %v387_v8 = vld [vmem:[#allocation11 + $0x10] sm:$0xff] }
  0x9b   : > { %1843 = vmatprep.mubr.msk.f32.mxu0 %vm2445_vm0, %v2446_v1  ;;  %1890 = vmatprep.mubr.msk.f32.mxu1 %vm2445_vm0, %v2446_v1  ;;  %s311_s11 = sshrl.u32 %s1596_s10, 2  ;;  %s317_s23 = sand.u32 3, %s1596_s10   ;;  %v401_v4 = vld [vmem:[#allocation12] sm:$0xff]  ;;  %v2756_v6 = vpack.c.bf16 %v386_v3, %v385_v2  ;;  %v402_v7 = vld [vmem:[#allocation12 + $0x8] sm:$0xff]  ;;  %v388_v9 = vld [vmem:[#allocation11 + $0x18] sm:$0xff]  ;;  %v2771_v17 = vshrl.u32 %v323_v5, 7 }
  0x9c   : > { %s312_s15 = ssub.s32 0, %s311_s11  ;;  %s318_s12 = ssub.s32 0, %s317_s23  ;;  %v2760_v10 = vpack.c.bf16 %v402_v7, %v401_v4  ;;  %v403_v11 = vld [vmem:[#allocation12 + $0x10] sm:$0xff]  ;;  %v404_v12 = vld [vmem:[#allocation12 + $0x18] sm:$0xff]  ;;  %v2763_v13 = vpack.c.bf16 %v388_v9, %v387_v8  ;;  %v389_v15 = vld [vmem:[#allocation11 + $0x20] sm:$0xff]  ;;  %v336_v20 = vand.u32 127, %v323_v5 }
  0x9d   : > { %s3989_s15 = smov (!%p308_p6, %s312_s15), %s311_s11  ;;  %s3991_s12 = smov (!%p308_p6, %s318_s12), %s317_s23  ;;  %2001 = vmatpush3.bf16.msra.mxu0 %v2756_v6  ;;  %v2769_v14 = vpack.c.bf16 %v404_v12, %v403_v11  ;;  %v390_v16 = vld [vmem:[#allocation11 + $0x28] sm:$0xff]  ;;  %v405_v18 = vld [vmem:[#allocation12 + $0x20] sm:$0xff]  ;;  %v325_v21 = vadd.s32 8, %v2771_v17  ;;  %v391_v26 = vld [vmem:[#allocation11 + $0x30] sm:$0xff]  ;;  %v326_v28 = vadd.s32 16, %v2771_v17  ;;  %v327_v32 = vadd.s32 24, %v2771_v17 }
  0x9e   : > { %s321_s21 = sld [smem:[#allocation4 + %s3991_s12]]  ;;  %2025 = vmatpush3.bf16.msra.mxu1 %v2760_v10  ;;  %2002 = vmatprep.subr.bf16.mxu0 %v2444_v0  ;;  %v406_v19 = vld [vmem:[#allocation12 + $0x28] sm:$0xff]  ;;  %v2776_v22 = vpack.c.bf16 %v390_v16, %v389_v15  ;;  %v392_v27 = vld [vmem:[#allocation11 + $0x38] sm:$0xff]  ;;  %v407_v29 = vld [vmem:[#allocation12 + $0x30] sm:$0xff]  ;;  %vm641_vm12 = vcmp.lt.s32.totalorder %v2771_v17, 1  ;;  %vm672_vm13 = vcmp.lt.s32.totalorder %v2771_v17, 7 }
  0x9f   : > { %s2758_s17 = sld [smem:[#allocation5 + %s3991_s12]]  ;;  %2026 = vmatprep.subr.bf16.mxu1 %v2444_v0  ;;  %v2783_v25 = vpack.c.bf16 %v406_v19, %v405_v18  ;;  %v408_v30 = vld [vmem:[#allocation12 + $0x38] sm:$0xff]  ;;  %v2796_v33 = vpack.c.bf16 %v392_v27, %v391_v26  ;;  %v393_v38 = vld [vmem:[#allocation11 + $0x40] sm:$0xff]  ;;  %v394_v39 = vld [vmem:[#allocation11 + $0x48] sm:$0xff]  ;;  %vm625_vm14 = vcmp.lt.s32.totalorder %v2771_v17, 2  ;;  %vm738_vm15 = vcmp.lt.s32.totalorder %v2771_v17, 6 }
  0xa0   : > { %s2765_s0 = sld [smem:[#allocation3 + %s3989_s15]]  ;;  %v1603_v35 = vld [vmem:[%s2733_s19 + $0xc8] sm:$0xff]  ;;  %v2810_v37 = vpack.c.bf16 %v408_v30, %v407_v29  ;;  %v1604_v41 = vld [vmem:[%s2733_s19 + $0xd0] sm:$0xff]  ;;  %v410_v43 = vld [vmem:[#allocation12 + $0x48] sm:$0xff]  ;;  %v2836_v47 = vpack.c.bf16 %v394_v39, %v393_v38  ;;  %s3106_s24 = scalar_lea.vmem [#allocation14], %s2097_s18 }
  0xa1   : > { %2004 = vmatpush3.bf16.msra.mxu0 %v2763_v13  ;;  %v409_v42 = vld [vmem:[#allocation12 + $0x40] sm:$0xff]  ;;  %v395_v50 = vld [vmem:[#allocation11 + $0x50] sm:$0xff]  ;;  %v396_v51 = vld [vmem:[#allocation11 + $0x58] sm:$0xff]  ;;  %s2098_s29 = smul.u32 80, %s2727_s25  ;;  %s1422_s23 = scalar_lea.sflag [#allocation16], %s2727_s25 }
  0xa2   : > { %2028 = vmatpush3.bf16.msra.mxu1 %v2769_v14  ;;  %2005 = vmatprep.subr.bf16.mxu0 %v2444_v0  ;;  %v1605_v46 = vld [vmem:[%s2733_s19 + $0xd8] sm:$0xff]  ;;  %v2846_v49 = vpack.c.bf16 %v410_v43, %v409_v42  ;;  %v1606_v53 = vld [vmem:[%s2733_s19 + $0xe0] sm:$0xff]  ;;  %v412_v55 = vld [vmem:[#allocation12 + $0x58] sm:$0xff]  ;;  %v2867_v58 = vpack.c.bf16 %v396_v51, %v395_v50  ;;  %s2100_s18 = smul.u32 1280, %s2544_s2  ;;  %s2447_s12 = smov [#allocation15]  }
  0xa3   : > { %2029 = vmatprep.subr.bf16.mxu1 %v2444_v0  ;;  %v411_v54 = vld [vmem:[#allocation12 + $0x50] sm:$0xff]  ;;  %v397_v60 = vld [vmem:[#allocation11 + $0x60] sm:$0xff]  ;;  %v398_v61 = vld [vmem:[#allocation11 + $0x68] sm:$0xff]  ;;  %s3376_s13 = scalar_lea.vmem [#allocation15], %s2098_s29 }
  0xa4   : > { %v2778_v23 = vstv %s321_s21  ;;  %v2871_v59 = vpack.c.bf16 %v412_v55, %v411_v54  ;;  %v413_v62 = vld [vmem:[#allocation12 + $0x60] sm:$0xff]  ;;  %v414_v63 = vld [vmem:[#allocation12 + $0x68] sm:$0xff]  ;;  %v2875_v2 = vpack.c.bf16 %v398_v61, %v397_v60  ;;  %v399_v4 = vld [vmem:[#allocation11 + $0x70] sm:$0xff]  ;;  %s1451_s20 = sshll.u32 %s3376_s13, 4  ;;  %s3771_s11 = scalar_lea.hbm %s3940_s8, %s2100_s18  ;;  %s3766_s20 = int_to_ptr.vmem [resolvable:$true] %s1451_s20 }
  0xa5   : > { %v337_v24 = vstv %s2758_s17  ;;  %vm330_vm1 = vcmp.eq.s32.totalorder %v2771_v17, %v2778_v23  ;;  %vm331_vm3 = vcmp.eq.s32.totalorder %v325_v21, %v2778_v23  ;;  %2007 = vmatpush3.bf16.msra.mxu0 %v2776_v22  ;;  %vm332_vm5 = vcmp.eq.s32.totalorder %v326_v28, %v2778_v23  ;;  %v400_v5 = vld [vmem:[#allocation11 + $0x78] sm:$0xff]  ;;  %v415_v7 = vld [vmem:[#allocation12 + $0x70] sm:$0xff]  ;;  %s2326_s15 = scalar_lea.vmem %s3766_s20, 1280  ;;  %s2330_s21 = sshll.u32 %s2447_s12, 4  ;;  %s2331_s21 = int_to_ptr.vmem [resolvable:$false] %s2330_s21 }
  0xa6   : > { %vm2789_vm2 = vcmp.eq.s32.totalorder %v336_v20, %v337_v24  ;;  %v2806_v36 = vstv %s2765_s0  ;;  %2031 = vmatpush3.bf16.msra.mxu1 %v2783_v25  ;;  %2008 = vmatprep.subr.bf16.mxu0 %v2444_v0  ;;  %vm333_vm7 = vcmp.eq.s32.totalorder %v327_v32, %v2778_v23  ;;  %v2879_v3 = vpack.c.bf16 %v414_v63, %v413_v62  ;;  %v416_v8 = vld [vmem:[#allocation12 + $0x78] sm:$0xff]  ;;  %v1598_v12 = vld [vmem:[%s2733_s19 + $0xa0] sm:$0xff]  ;;  %v2911_v20 = vld [vmem:[%s2733_s19 + $0xf8] sm:$0xff]  ;;  %p2327_p9 = scmp.ne.s32.totalorder %s3766_s20, %s2326_s15  ;;  %s2332_s17 = scalar_lea.vmem %s2331_s21, 2560 }
  0xa7   : > { %vm2800_vm4 = vmand %vm330_vm1, %vm2789_vm2  ;;  %2032 = vmatprep.subr.bf16.mxu1 %v2444_v0  ;;  %v2883_v9 = vpack.c.bf16 %v400_v5, %v399_v4  ;;  %v2887_v11 = vpack.c.bf16 %v416_v8, %v415_v7  ;;  %v2897_v16 = vld [vmem:[%s2733_s19 + $0xf0] sm:$0xff]  ;;  %v1599_v18 = vld [vmem:[%s2733_s19 + $0xa8] sm:$0xff]  ;;  %v328_v24 = vadd.s32 32, %v2771_v17  ;;  %v621_v39 = vrot.slane %v2911_v20, 6  ;;  %p2333_p7 = scmp.lt.s32.totalorder %s3766_s20, %s2331_s21  ;;  %p2334_p8 = scmp.lt.s32.totalorder %s2332_s17, %s2326_s15 }
  0xa8   : > { %v2815_v40 = vsel %vm2800_vm4, %v2806_v36, %v1603_v35  ;;  %vm2824_vm6 = vmand %vm331_vm3, %vm2789_vm2  ;;  %v375_v15 = vsel %vm2800_vm4, %v2806_v36, %v1598_v12  ;;  %v1600_v21 = vld [vmem:[%s2733_s19 + $0xb0] sm:$0xff]  ;;  %v636_v32 = vrot.slane %v2897_v16, 7  ;;  %v667_v60 = vrot.slane %v2897_v16, 1  ;;  %p2328_p13 = pnand %p2327_p9, %p2676_p11 }
  0xa9   : > { %v2831_v45 = vsel %vm2824_vm6, %v2806_v36, %v1604_v41  ;;  %2010 = vmatpush3.bf16.msra.mxu0 %v2796_v33  ;;  %vm2840_vm8 = vmand %vm332_vm5, %vm2789_vm2  ;;  %v376_v19 = vsel %vm2824_vm6, %v2806_v36, %v1599_v18  ;;  %vm334_vm10 = vcmp.eq.s32.totalorder %v328_v24, %v2778_v23  ;;  %v1602_v23 = vld [vmem:[%s2733_s19 + $0xc0] sm:$0xff]  ;;  %v688_v30 = vrot.slane %v2815_v40, 7  ;;  %p2335_p10 = por %p2334_p8, %p2333_p7 }
  0xaa   : > { %2034 = vmatpush3.bf16.msra.mxu1 %v2810_v37  ;;  %2011 = vmatprep.subr.bf16.mxu0 %v2444_v0  ;;  %v2851_v52 = vsel %vm2840_vm8, %v2806_v36, %v1605_v46  ;;  %vm2857_vm9 = vmand %vm333_vm7, %vm2789_vm2  ;;  %v377_v26 = vsel %vm2840_vm8, %v2806_v36, %v1600_v21  ;;  %v703_v31 = vmul.f32 -0.1125, %v2815_v40  ;;  %v689_v38 = vrot.slane %v2831_v45, 7  ;;  %p2329_p3 = pneg %p2328_p13 }
  0xab   : > { %2035 = vmatprep.subr.bf16.mxu1 %v2444_v0  ;;  %v2864_v57 = vsel %vm2857_vm9, %v2806_v36, %v1606_v53  ;;  %vm2949_vm11 = vmand %vm334_vm10, %vm2789_vm2  ;;  %v637_v41 = vrot.slane %v2911_v20, 7  ;;  %v704_v42 = vmul.f32 -0.1125, %v2831_v45  ;;  %v714_v43 = vrot.slane %v2831_v45, 1 }
  0xac   : > { %v379_v28 = vsel %vm2949_vm11, %v2806_v36, %v1602_v23  ;;  %v734_v44 = vrot.slane %v2831_v45, 2  ;;  %v3018_v48 = vmul.f32 -0.1125, %v2851_v52  ;;  %v715_v50 = vrot.slane %v2851_v52, 1  ;;  %p2336_p1 = pnand %p2335_p10, %p2329_p3 }
  0xad   : > { %2013 = vmatpush3.bf16.msra.mxu0 %v2836_v47  ;;  %v668_v61 = vrot.slane %v2911_v20, 1  ;;  %v645_v8 = vsel %vm641_vm12, %v636_v32, %v637_v41 }
  0xae   : > { %2037 = vmatpush3.bf16.msra.mxu1 %v2846_v49  ;;  %2014 = vmatprep.subr.bf16.mxu0 %v2444_v0 }
  0xaf   : > { %2038 = vmatprep.subr.bf16.mxu1 %v2444_v0  ;;  %v676_v5 = vsel %vm672_vm13, %v667_v60, %v668_v61 }
  0xb1   : > { %2016 = vmatpush3.bf16.msra.mxu0 %v2867_v58 }
  0xb2   : > { %2040 = vmatpush3.bf16.msra.mxu1 %v2871_v59  ;;  %2017 = vmatprep.subr.bf16.mxu0 %v2444_v0 }
  0xb3   : > { %2041 = vmatprep.subr.bf16.mxu1 %v2444_v0 }
  0xb5   : > { %2019 = vmatpush3.bf16.msra.mxu0 %v2875_v2 }
  0xb6   : > { %2043 = vmatpush3.bf16.msra.mxu1 %v2879_v3  ;;  %2020 = vmatprep.subr.bf16.mxu0 %v2444_v0 }
  0xb7   : > { %2044 = vmatprep.subr.bf16.mxu1 %v2444_v0 }
  0xb9   : > { %2022 = vmatpush3.bf16.msra.mxu0 %v2883_v9 }
  0xba   : > { %2046 = vmatpush3.bf16.msra.mxu1 %v2887_v11  ;;  %2047 = vmatprep.subr.bf16.mxu0 %v2444_v0 }
  0xbb   : > { %2071 = vmatprep.subr.bf16.mxu1 %v2444_v0 }
  0xbc   : > { %1844 = vmatmul.mubr.f32.vlgmr.msra.gmra.mrb[0].mxu0 %v375_v15  ;;  %v678_v15 = vmul.f32 -0.004166667, %v676_v5 }
  0xbd   : > { %1891 = vmatmul.mubr.f32.vlgmr.msra.gmra.mrb[0].mxu1 %v2897_v16  ;;  %1846 = vmatprep.mubr.msk.f32.mxu0 %vm2445_vm0, %v2446_v1 }
  0xbe   : > { %1893 = vmatprep.mubr.msk.f32.mxu1 %vm2445_vm0, %v2446_v1  ;;  %2049 = vmatpush3.bf16.msra.mxu0 %v2760_v10  ;;  %v1601_v10 = vld [vmem:[%s2733_s19 + $0xb8] sm:$0xff] }
  0xbf   : > { %2073 = vmatpush3.bf16.msra.mxu1 %v2756_v6  ;;  %2050 = vmatprep.subr.bf16.mxu0 %v2444_v0  ;;  %v2928_v6 = vld [vmem:[%s2733_s19 + $0x100] sm:$0xff]  ;;  %v378_v27 = vsel %vm2857_vm9, %v2806_v36, %v1601_v10  ;;  %v696_v10 = vsel %vm641_vm12, %v688_v30, %v689_v38 }
  0xc0   : > { %1847 = vmatmul.mubr.f32.gmra.mrb[2].mxu0 %v376_v19  ;;  %2074 = vmatprep.subr.bf16.mxu1 %v2444_v0  ;;  %v622_v46 = vrot.slane %v2928_v6, 6  ;;  %v669_v23 = vrot.slane %v2928_v6, 1 }
  0xc1   : > { %1894 = vmatmul.mubr.f32.gmra.mrb[2].mxu1 %v2911_v20  ;;  %1849 = vmatprep.mubr.msk.f32.mxu0 %vm2445_vm0, %v2446_v1 }
  0xc2   : > { %1896 = vmatprep.mubr.msk.f32.mxu1 %vm2445_vm0, %v2446_v1  ;;  %2052 = vmatpush3.bf16.msra.mxu0 %v2769_v14  ;;  %v2945_v14 = vld [vmem:[%s2733_s19 + $0x108] sm:$0xff] }
  0xc3   : > { %2076 = vmatpush3.bf16.msra.mxu1 %v2763_v13  ;;  %2053 = vmatprep.subr.bf16.mxu0 %v2444_v0  ;;  %v658_v13 = vmul.f32 0.1125, %v2911_v20  ;;  %v639_v20 = vrot.slane %v2945_v14, 7 }
  0xc4   : > { %1850 = vmatmul.mubr.f32.gmra.mrb[4].mxu0 %v377_v26  ;;  %2077 = vmatprep.subr.bf16.mxu1 %v2444_v0  ;;  %v648_v26 = vmul.f32 -0.1125, %v645_v8 }
  0xc5   : > { %1897 = vmatmul.mubr.f32.gmra.mrb[4].mxu1 %v2928_v6  ;;  %1852 = vmatprep.mubr.msk.f32.mxu0 %vm2445_vm0, %v2446_v1 }
  0xc6   : > { %1899 = vmatprep.mubr.msk.f32.mxu1 %vm2445_vm0, %v2446_v1  ;;  %2055 = vmatpush3.bf16.msra.mxu0 %v2783_v25  ;;  %v2967_v25 = vld [vmem:[%s2733_s19 + $0x110] sm:$0xff] }
  0xc7   : > { %2079 = vmatpush3.bf16.msra.mxu1 %v2776_v22  ;;  %2056 = vmatprep.subr.bf16.mxu0 %v2444_v0  ;;  %v1607_v22 = vld [vmem:[%s2733_s19 + $0xe8] sm:$0xff]  ;;  %v624_v35 = vrot.slane %v2967_v25, 6 }
  0xc8   : > { %1853 = vmatmul.mubr.f32.gmra.mrb[6].mxu0 %v378_v27  ;;  %2080 = vmatprep.subr.bf16.mxu1 %v2444_v0  ;;  %v2996_v29 = vsel %vm2949_vm11, %v2806_v36, %v1607_v22  ;;  %v640_v36 = vrot.slane %v2967_v25, 7  ;;  %v716_v22 = vrot.slane %v2864_v57, 1 }
  0xc9   : > { %1900 = vmatmul.mubr.f32.gmra.mrb[6].mxu1 %v2945_v14  ;;  %1855 = vmatprep.mubr.msk.f32.mxu0 %vm2445_vm0, %v2446_v1  ;;  %v692_v34 = vrot.slane %v2996_v29, 7 }
  0xca   : > { %1902 = vmatprep.mubr.msk.f32.mxu1 %vm2445_vm0, %v2446_v1  ;;  %2058 = vmatpush3.bf16.msra.mxu0 %v2810_v37  ;;  %v733_v37 = vrot.slane %v2815_v40, 2  ;;  %v646_v53 = vsel %vm641_vm12, %v640_v36, %v636_v32 }
  0xcb   : > { %2082 = vmatpush3.bf16.msra.mxu1 %v2796_v33  ;;  %2059 = vmatprep.subr.bf16.mxu0 %v2444_v0  ;;  %v713_v33 = vrot.slane %v2815_v40, 1  ;;  %v697_v54 = vsel %vm641_vm12, %v692_v34, %v688_v30  ;;  %v647_v56 = vmul.f32 -0.1125, %v646_v53  ;;  %v720_v53 = vsel %vm672_vm13, %v714_v43, %v715_v50 }
  0xcc   : > { %1856 = vmatmul.mubr.f32.gmra.mrb[8].mxu0 %v379_v28  ;;  %2083 = vmatprep.subr.bf16.mxu1 %v2444_v0  ;;  %v742_v19 = vsel %vm738_vm15, %v733_v37, %v734_v44  ;;  %v699_v28 = vmul.f32 0.004166667, %v696_v10  ;;  %v736_v30 = vrot.slane %v2864_v57, 2  ;;  %v724_v5 = vmul.f32 0.1125, %v720_v53 }
  0xcd   : > { %1903 = vmatmul.mubr.f32.gmra.mrb[8].mxu1 %v2967_v25  ;;  %1937 = vmatprep.mubr.msk.f32.mxu0 %vm2445_vm0, %v2446_v1  ;;  %v721_v62 = vsel %vm672_vm13, %v713_v33, %v714_v43  ;;  %v744_v21 = vmul.f32 -0.004166667, %v742_v19 }
  0xce   : > { %2061 = vmatpush3.bf16.msra.mxu0 %v2846_v49  ;;  %1984 = vmatprep.mubr.msk.f32.mxu1 %vm2445_vm0, %v2446_v1  ;;  %v638_v49 = vrot.slane %v2928_v6, 7  ;;  %v723_v4 = vmul.f32 0.1125, %v721_v62  ;;  %v709_v43 = vadd.f32 %v704_v42, %v699_v28  ;;  %v628_v42 = vsel %vm625_vm14, %v621_v39, %v622_v46  ;;  %v1624_v28 = vld [vmem:[%s2733_s19 + $0x80] sm:$0xff] }
  0xcf   : > { %2085 = vmatpush3.bf16.msra.mxu1 %v2836_v47  ;;  %2062 = vmatprep.subr.bf16.mxu0 %v2444_v0  ;;  %v690_v47 = vrot.slane %v2851_v52, 7 }
  0xd0   : > { %2086 = vmatprep.subr.bf16.mxu1 %v2444_v0  ;;  %v729_v19 = vadd.f32 %v724_v5, %v709_v43 }
  0xd2   : > { %2064 = vmatpush3.bf16.msra.mxu0 %v2871_v59  ;;  %v735_v59 = vrot.slane %v2851_v52, 2 }
  0xd3   : > { %2088 = vmatpush3.bf16.msra.mxu1 %v2867_v58  ;;  %2065 = vmatprep.subr.bf16.mxu0 %v2444_v0  ;;  %v698_v58 = vmul.f32 0.004166667, %v697_v54 }
  0xd4   : > { %2089 = vmatprep.subr.bf16.mxu1 %v2444_v0  ;;  %v740_v45 = vsel %vm738_vm15, %v735_v59, %v736_v30 }
  0xd6   : > { %2067 = vmatpush3.bf16.msra.mxu0 %v2879_v3  ;;  %v708_v3 = vadd.f32 %v703_v31, %v698_v58  ;;  %v1613_v31 = vld [vmem:[%s2733_s19 + $0x28] sm:$0xff]  ;;  %v675_v58 = vsel %vm672_vm13, %v668_v61, %v669_v23 }
  0xd7   : > { %2091 = vmatpush3.bf16.msra.mxu1 %v2875_v2  ;;  %2068 = vmatprep.subr.bf16.mxu0 %v2444_v0  ;;  %v657_v2 = vmul.f32 0.1125, %v2897_v16  ;;  %v3096_v61 = vld [vmem:[#allocation9 + $0x58] sm:$0xff] }
  0xd8   : > { %2092 = vmatprep.subr.bf16.mxu1 %v2444_v0  ;;  %v620_v0 = vrot.slane %v2897_v16, 6  ;;  %v728_v18 = vadd.f32 %v723_v4, %v708_v3  ;;  %v679_v3 = vmul.f32 -0.004166667, %v675_v58  ;;  %v695_v58 = vsel %vm641_vm12, %v689_v38, %v690_v47 }
  0xd9   : > { %v691_v38 = vrot.slane %v2864_v57, 7  ;;  %v700_v5 = vmul.f32 0.004166667, %v695_v58 }
  0xda   : > { %2070 = vmatpush3.bf16.msra.mxu0 %v2887_v11  ;;  %v630_v51 = vsel %vm625_vm14, %v624_v35, %v620_v0  ;;  %v629_v7 = vsel %vm625_vm14, %v620_v0, %v621_v39  ;;  %v3058_v11 = vld [vmem:[#allocation9 + $0x50] sm:$0xff]  ;;  %v3072_v0 = vld [vmem:[#allocation9 + $0x78] sm:$0xff]  ;;  %v749_v32 = vadd.f32 %v744_v21, %v728_v18  ;;  %v633_v21 = vmul.f32 0.004166667, %v628_v42 }
  0xdb   : > { %2094 = vmatpush3.bf16.msra.mxu1 %v2883_v9  ;;  %v631_v55 = vmul.f32 0.004166667, %v630_v51  ;;  %v3056_v9 = vld [vmem:[#allocation9 + $0x28] sm:$0xff]  ;;  %v632_v24 = vmul.f32 0.004166667, %v629_v7  ;;  %v741_v7 = vsel %vm738_vm15, %v734_v44, %v735_v59  ;;  %v623_v39 = vrot.slane %v2945_v14, 6 }
  0xdc   : > { %v780_v54 = vmul.f32 %v1613_v31, %v3056_v9  ;;  %v745_v18 = vmul.f32 -0.004166667, %v741_v7  ;;  %v1614_v44 = vld [vmem:[%s2733_s19 + $0x30] sm:$0xff]  ;;  %v717_v7 = vrot.slane %v2996_v29, 1  ;;  %v710_v59 = vadd.f32 %v3018_v48, %v700_v5 }
  0xdd   : > { %v652_v63 = vadd.f32 %v647_v56, %v631_v55  ;;  %v653_v51 = vadd.f32 %v648_v26, %v632_v24  ;;  %v1623_v56 = vld [vmem:[%s2733_s19 + $0x78] sm:$0xff]  ;;  %v644_v24 = vsel %vm641_vm12, %v637_v41, %v638_v49  ;;  %v670_v26 = vrot.slane %v2945_v14, 1 }
  0xde   : > { %v822_v62 = vmul.f32 %v1623_v56, %v3056_v9  ;;  %v649_v31 = vmul.f32 -0.1125, %v644_v24  ;;  %v627_v24 = vsel %vm625_vm14, %v622_v46, %v623_v39  ;;  %v643_v48 = vsel %vm641_vm12, %v638_v49, %v639_v20  ;;  %v3183_v46 = vld [vmem:[#allocation9 + $0x88] sm:$0xff]  ;;  %v1616_v49 = vld [vmem:[%s2733_s19 + $0x40] sm:$0xff] }
  0xdf   : > { %v662_v12 = vadd.f32 %v657_v2, %v652_v63  ;;  %v827_v63 = vmul.f32 %v749_v32, %v3072_v0  ;;  %v663_v2 = vadd.f32 %v658_v13, %v653_v51  ;;  %v3123_v13 = vld [vmem:[#allocation9 + $0x80] sm:$0xff]  ;;  %v750_v32 = vadd.f32 %v745_v18, %v729_v19 }
  0xe0   : > { %v659_v51 = vmul.f32 0.1125, %v2928_v6  ;;  %v674_v56 = vsel %vm672_vm13, %v669_v23, %v670_v26  ;;  %v706_v23 = vmul.f32 -0.1125, %v2864_v57  ;;  %v746_v19 = vmul.f32 -0.004166667, %v740_v45 }
  0xe1   : > { %v683_v27 = vadd.f32 %v678_v15, %v662_v12  ;;  %v3092_v8 = vadd.f32 %v827_v63, %v822_v62  ;;  %v3094_v12 = vld [vmem:[#allocation9 + $0x30] sm:$0xff]  ;;  %v684_v15 = vadd.f32 %v679_v3, %v663_v2  ;;  %v828_v62 = vmul.f32 %v750_v32, %v3123_v13 }
  0xe2   : > { %v781_v10 = vmul.f32 %v1614_v44, %v3094_v12  ;;  %v823_v41 = vmul.f32 %v1624_v28, %v3094_v12  ;;  %v680_v63 = vmul.f32 -0.004166667, %v674_v56  ;;  %v1615_v2 = vld [vmem:[%s2733_s19 + $0x38] sm:$0xff]  ;;  %v719_v3 = vsel %vm672_vm13, %v715_v50, %v716_v22  ;;  %v3162_v50 = vld [vmem:[#allocation9 + $0x60] sm:$0xff] }
  0xe3   : > { %v785_v55 = vmul.f32 %v683_v27, %v3058_v11  ;;  %1643 = vst [vmem:[%s3106_s24 + $0x78] sm:$0xff] %v3092_v8  ;;  %v786_v27 = vmul.f32 %v684_v15, %v3096_v61  ;;  %v725_v42 = vmul.f32 0.1125, %v719_v3  ;;  %v671_v28 = vrot.slane %v2967_v25, 1  ;;  %v3186_v56 = vld [vmem:[#allocation9 + $0x40] sm:$0xff] }
  0xe4   : > { %v3160_v15 = vadd.f32 %v828_v62, %v823_v41  ;;  %v650_v41 = vmul.f32 -0.1125, %v643_v48  ;;  %v694_v58 = vsel %vm641_vm12, %v690_v47, %v691_v38  ;;  %v718_v62 = vsel %vm672_vm13, %v716_v22, %v717_v7 }
  0xe5   : > { %v3086_v4 = vadd.f32 %v785_v55, %v780_v54  ;;  %v3129_v53 = vadd.f32 %v786_v27, %v781_v10  ;;  %v3131_v54 = vld [vmem:[#allocation9 + $0x38] sm:$0xff]  ;;  %v654_v55 = vadd.f32 %v649_v31, %v633_v21  ;;  %v737_v10 = vrot.slane %v2996_v29, 2 }
  0xe6   : > { %v782_v18 = vmul.f32 %v1615_v2, %v3131_v54  ;;  %v1625_v21 = vld [vmem:[%s2733_s19 + $0x88] sm:$0xff]  ;;  %1644 = vst [vmem:[%s3106_s24 + $0x80] sm:$0xff] %v3160_v15  ;;  %v634_v27 = vmul.f32 0.004166667, %v627_v24  ;;  %v730_v32 = vadd.f32 %v725_v42, %v710_v59  ;;  %v673_v6 = vsel %vm672_vm13, %v670_v26, %v671_v28 }
  0xe7   : > { %1633 = vst [vmem:[%s3106_s24 + $0x28] sm:$0xff] %v3086_v4  ;;  %1634 = vst [vmem:[%s3106_s24 + $0x30] sm:$0xff] %v3129_v53  ;;  %v664_v43 = vadd.f32 %v659_v51, %v654_v55  ;;  %v660_v51 = vmul.f32 0.1125, %v2945_v14  ;;  %v824_v55 = vmul.f32 %v1625_v21, %v3131_v54  ;;  %v681_v3 = vmul.f32 -0.004166667, %v673_v6 }
  0xe8   : > { %v751_v2 = vadd.f32 %v746_v19, %v730_v32  ;;  %v655_v26 = vadd.f32 %v650_v41, %v634_v27  ;;  %v701_v45 = vmul.f32 0.004166667, %v694_v58  ;;  %v739_v52 = vsel %vm738_vm15, %v736_v30, %v737_v10  ;;  %v3262_v58 = vld [vmem:[#allocation9 + $0x70] sm:$0xff] }
  0xe9   : > { %v685_v44 = vadd.f32 %v680_v63, %v664_v43  ;;  %v726_v43 = vmul.f32 0.1125, %v718_v62  ;;  %v783_v42 = vmul.f32 %v1616_v49, %v3186_v56  ;;  %v747_v22 = vmul.f32 -0.004166667, %v739_v52 }
  0xea   : > { %v829_v47 = vmul.f32 %v751_v2, %v3183_v46  ;;  %v665_v5 = vadd.f32 %v660_v51, %v655_v26  ;;  %v711_v59 = vadd.f32 %v706_v23, %v701_v45  ;;  %v626_v30 = vsel %vm625_vm14, %v623_v39, %v624_v35  ;;  %v3246_v51 = vld [vmem:[#allocation9 + $0x48] sm:$0xff]  ;;  %v3271_v26 = vld [vmem:[#allocation9 + $0x98] sm:$0xff] }
  0xeb   : > { %v787_v31 = vmul.f32 %v685_v44, %v3162_v50  ;;  %v3214_v44 = vld [vmem:[#allocation9 + $0x68] sm:$0xff]  ;;  %v642_v19 = vsel %vm641_vm12, %v639_v20, %v640_v36  ;;  %v661_v21 = vmul.f32 0.1125, %v2967_v25  ;;  %v635_v48 = vmul.f32 0.004166667, %v626_v30  ;;  %v3238_v36 = vld [vmem:[#allocation9 + $0x90] sm:$0xff] }
  0xec   : > { %v3227_v24 = vadd.f32 %v829_v47, %v824_v55  ;;  %v686_v27 = vadd.f32 %v681_v3, %v665_v5  ;;  %v651_v23 = vmul.f32 -0.1125, %v642_v19  ;;  %v731_v32 = vadd.f32 %v726_v43, %v711_v59  ;;  %v3285_v5 = vld [vmem:[#allocation9] sm:$0xff]  ;;  %v1619_v30 = vld [vmem:[%s2733_s19 + $0x58] sm:$0xff] }
  0xed   : > { %v3203_v63 = vadd.f32 %v787_v31, %v782_v18  ;;  %v1626_v18 = vld [vmem:[%s2733_s19 + $0x90] sm:$0xff]  ;;  %v707_v31 = vmul.f32 -0.1125, %v2996_v29  ;;  %v677_v35 = vsel %vm672_vm13, %v671_v28, %v667_v60  ;;  %v693_v41 = vsel %vm641_vm12, %v691_v38, %v692_v34  ;;  %v1617_v60 = vld [vmem:[%s2733_s19 + $0x48] sm:$0xff]  ;;  %v3293_v19 = vld [vmem:[#allocation9 + $0x10] sm:$0xff] }
  0xee   : > { %v825_v14 = vmul.f32 %v1626_v18, %v3186_v56  ;;  %1645 = vst [vmem:[%s3106_s24 + $0x88] sm:$0xff] %v3227_v24  ;;  %v788_v25 = vmul.f32 %v686_v27, %v3214_v44  ;;  %v656_v39 = vadd.f32 %v651_v23, %v635_v48  ;;  %v682_v20 = vmul.f32 -0.004166667, %v677_v35  ;;  %v3289_v18 = vld [vmem:[#allocation9 + $0x8] sm:$0xff]  ;;  %v755_v59 = vld [vmem:[%s2733_s19 + $0x8] sm:$0xff]  ;;  %v1620_v27 = vld [vmem:[%s2733_s19 + $0x60] sm:$0xff] }
  0xef   : > { %1635 = vst [vmem:[%s3106_s24 + $0x38] sm:$0xff] %v3203_v63  ;;  %v752_v16 = vadd.f32 %v747_v22, %v731_v32  ;;  %v702_v28 = vmul.f32 0.004166667, %v693_v41  ;;  %v722_v55 = vsel %vm672_vm13, %v717_v7, %v713_v33  ;;  %v743_v57 = vsel %vm738_vm15, %v737_v10, %v733_v37  ;;  %v1627_v37 = vld [vmem:[%s2733_s19 + $0x98] sm:$0xff]  ;;  %v1618_v22 = vld [vmem:[%s2733_s19 + $0x50] sm:$0xff]  ;;  %v3297_v48 = vld [vmem:[#allocation9 + $0x18] sm:$0xff] }
  0xf0   : > { %v3259_v34 = vadd.f32 %v788_v25, %v783_v42  ;;  %v666_v38 = vadd.f32 %v661_v21, %v656_v39  ;;  %v727_v6 = vmul.f32 0.1125, %v722_v55  ;;  %v748_v29 = vmul.f32 -0.004166667, %v743_v57  ;;  %v754_v42 = vld [vmem:[%s2733_s19] sm:$0xff]  ;;  %v756_v21 = vld [vmem:[%s2733_s19 + $0x10] sm:$0xff] }
  0xf1   : > { %v830_v49 = vmul.f32 %v752_v16, %v3238_v36  ;;  %v712_v62 = vadd.f32 %v707_v31, %v702_v28  ;;  %v784_v40 = vmul.f32 %v1617_v60, %v3246_v51  ;;  %v826_v45 = vmul.f32 %v1627_v37, %v3246_v51  ;;  %v757_v31 = vld [vmem:[%s2733_s19 + $0x18] sm:$0xff]  ;;  %v1621_v32 = vld [vmem:[%s2733_s19 + $0x68] sm:$0xff]  ;;  %v758_v39 = vld [vmem:[%s2733_s19 + $0x20] sm:$0xff] }
  0xf2   : > { %1636 = vst [vmem:[%s3106_s24 + $0x40] sm:$0xff] %v3259_v34  ;;  %v687_v33 = vadd.f32 %v682_v20, %v666_v38  ;;  %v759_v23 = vmul.f32 %v754_v42, %v3285_v5  ;;  %v801_v25 = vmul.f32 %v1618_v22, %v3285_v5  ;;  %v1622_v20 = vld [vmem:[%s2733_s19 + $0x70] sm:$0xff]  ;;  %v1654_v41 = vld [vmem:[%s2733_s19 + $0x148] sm:$0xff]  ;;  %v760_v55 = vmul.f32 %v755_v59, %v3289_v18  ;;  %v1665_v22 = vld [vmem:[%s2733_s19 + $0x1a0] sm:$0xff] }
  0xf3   : > { %v3268_v7 = vadd.f32 %v830_v49, %v825_v14  ;;  %v732_v10 = vadd.f32 %v727_v6, %v712_v62  ;;  %v3302_v14 = vld [vmem:[#allocation9 + $0x20] sm:$0xff]  ;;  %v802_v57 = vmul.f32 %v1619_v30, %v3289_v18  ;;  %v3313_v38 = vmul.f32 %v756_v21, %v3293_v19  ;;  %v1653_v6 = vld [vmem:[%s2733_s19 + $0x140] sm:$0xff]  ;;  %v1664_v49 = vld [vmem:[%s2733_s19 + $0x198] sm:$0xff] }
  0xf4   : > { %v789_v2 = vmul.f32 %v687_v33, %v3262_v58  ;;  %v1669_v62 = vld [vmem:[%s2733_s19 + $0x1c0] sm:$0xff]  ;;  %v3326_v37 = vmul.f32 %v1621_v32, %v3297_v48  ;;  %v1655_v42 = vld [vmem:[%s2733_s19 + $0x150] sm:$0xff]  ;;  %v3342_v21 = vmul.f32 %v1653_v6, %v3056_v9  ;;  %v1656_v32 = vld [vmem:[%s2733_s19 + $0x158] sm:$0xff] }
  0xf5   : > { %1646 = vst [vmem:[%s3106_s24 + $0x90] sm:$0xff] %v3268_v7  ;;  %v753_v3 = vadd.f32 %v748_v29, %v732_v10  ;;  %v1663_v10 = vld [vmem:[%s2733_s19 + $0x190] sm:$0xff] }
  0xf6   : > { %v3276_v43 = vadd.f32 %v789_v2, %v784_v40  ;;  %v3320_v40 = vmul.f32 %v1620_v27, %v3293_v19  ;;  %v1668_v2 = vld [vmem:[%s2733_s19 + $0x1b8] sm:$0xff]  ;;  %v3345_v27 = vmul.f32 %v1664_v49, %v3094_v12 }
  0xf7   : > { %v831_v52 = vmul.f32 %v753_v3, %v3271_v26 }
  0xf8   : > { %1637 = vst [vmem:[%s3106_s24 + $0x48] sm:$0xff] %v3276_v43 }
  0xf9   : > { %v3281_v47 = vadd.f32 %v831_v52, %v826_v45  ;;  %v3331_v45 = vmul.f32 %v758_v39, %v3302_v14  ;;  %v3337_v52 = vmul.f32 %v1654_v41, %v3094_v12  ;;  %v3358_v41 = vmul.f32 %v1663_v10, %v3056_v9 }
  0xfb   : > { %1647 = vst [vmem:[%s3106_s24 + $0x98] sm:$0xff] %v3281_v47 }
 0x18f   : > { %v506_v35 = vpop.f32.mrb[0].mxu0 }
 0x190   : > { %v764_v16 = vmul.f32 %v506_v35, %v3058_v11  ;;  %v596_v60 = vpop.f32.mrb[0].mxu1  ;;  %v1845_v28 = vpop.f32.mrb[1].mxu0  ;;  %v3323_v11 = vmul.f32 %v757_v31, %v3297_v48  ;;  %v1670_v31 = vld [vmem:[%s2733_s19 + $0x1c8] sm:$0xff] }
 0x191   : > { %v806_v29 = vmul.f32 %v596_v60, %v3072_v0  ;;  %v1892_v33 = vpop.f32.mrb[1].mxu1  ;;  %v3334_v0 = vmul.f32 %v1622_v20, %v3302_v14  ;;  %v3383_v49 = vmul.f32 %v1670_v31, %v3293_v19 }
 0x192   : > { %v769_v3 = vadd.f32 %v764_v16, %v759_v23  ;;  %v3348_v23 = vmul.f32 %v1669_v62, %v3289_v18  ;;  %v3361_v16 = vmul.f32 %v1668_v2, %v3285_v5  ;;  %v3386_v62 = vmul.f32 %v1656_v32, %v3186_v56 }
 0x193   : > { %v811_v59 = vadd.f32 %v806_v29, %v801_v25  ;;  %v511_v30 = vpop.f32.mrb[2].mxu0 }
 0x194   : > { %v3353_v35 = vadd.f32 %v3086_v4, %v769_v3  ;;  %858 = vst [vmem:[%s3106_s24] sm:$0xff] %v769_v3  ;;  %v765_v39 = vmul.f32 %v511_v30, %v3096_v61  ;;  %v601_v25 = vpop.f32.mrb[2].mxu1  ;;  %v1848_v20 = vpop.f32.mrb[3].mxu0  ;;  %v3369_v4 = vmul.f32 %v1655_v42, %v3131_v54  ;;  %v3372_v61 = vmul.f32 %v1665_v22, %v3131_v54 }
 0x195   : > { %v3364_v60 = vadd.f32 %v3092_v8, %v811_v59  ;;  %1638 = vst [vmem:[%s3106_s24 + $0x50] sm:$0xff] %v811_v59  ;;  %v807_v28 = vmul.f32 %v601_v25, %v3123_v13  ;;  %v1895_v6 = vpop.f32.mrb[3].mxu1 }
 0x196   : > { %847 = vst [vmem:[%s3376_s13] sm:$0xff] %v3353_v35  ;;  %v770_v8 = vadd.f32 %v765_v39, %v760_v55  ;;  %1938 = vmatmul.mubr.f32.vlgmr.msra.gmra.mrb[10].mxu0 %v3353_v35  ;;  %v1091_v13 = vrot.slane %v3353_v35, 7  ;;  %v3395_v10 = vmul.f32 -0.1125, %v3353_v35  ;;  %v3947_v2 = vrot.slane %v3353_v35, 1 }
 0x197   : > { %1628 = vst [vmem:[%s3376_s13 + $0x28] sm:$0xff] %v3364_v60  ;;  %v812_v29 = vadd.f32 %v807_v28, %v802_v57  ;;  %1985 = vmatmul.mubr.f32.vlgmr.msra.gmra.mrb[10].mxu1 %v3364_v60  ;;  %v516_v33 = vpop.f32.mrb[4].mxu0  ;;  %1940 = vmatprep.mubr.msk.f32.mxu0 %vm2445_vm0, %v2446_v1  ;;  %v1156_v55 = vrot.slane %v3364_v60, 6  ;;  %v1171_v59 = vrot.slane %v3364_v60, 7  ;;  %v3407_v30 = vmul.f32 0.1125, %v3364_v60 }
 0x198   : > { %v3399_v3 = vadd.f32 %v3129_v53, %v770_v8  ;;  %859 = vst [vmem:[%s3106_s24 + $0x8] sm:$0xff] %v770_v8  ;;  %v766_v57 = vmul.f32 %v516_v33, %v3162_v50  ;;  %v606_v42 = vpop.f32.mrb[4].mxu1  ;;  %v1851_v22 = vpop.f32.mrb[5].mxu0  ;;  %1987 = vmatprep.mubr.msk.f32.mxu1 %vm2445_vm0, %v2446_v1  ;;  %v3948_v50 = vrot.slane %v3364_v60, 1  ;;  %v3946_v39 = vrot.slane %v3353_v35, 2 }
 0x199   : > { %v3410_v31 = vadd.f32 %v3160_v15, %v812_v29  ;;  %1639 = vst [vmem:[%s3106_s24 + $0x58] sm:$0xff] %v812_v29  ;;  %v808_v53 = vmul.f32 %v606_v42, %v3183_v46  ;;  %v1898_v32 = vpop.f32.mrb[5].mxu1 }
 0x19a   : > { %848 = vst [vmem:[%s3376_s13 + $0x8] sm:$0xff] %v3399_v3  ;;  %v771_v25 = vadd.f32 %v766_v57, %v3313_v38  ;;  %1941 = vmatmul.mubr.f32.gmra.mrb[12].mxu0 %v3399_v3  ;;  %v1117_v20 = vrot.slane %v3399_v3, 1  ;;  %v1137_v15 = vrot.slane %v3399_v3, 2  ;;  %v1092_v28 = vrot.slane %v3399_v3, 7 }
 0x19b   : > { %1629 = vst [vmem:[%s3376_s13 + $0x30] sm:$0xff] %v3410_v31  ;;  %v813_v46 = vadd.f32 %v808_v53, %v3320_v40  ;;  %1988 = vmatmul.mubr.f32.gmra.mrb[12].mxu1 %v3410_v31  ;;  %v521_v6 = vpop.f32.mrb[6].mxu0  ;;  %1943 = vmatprep.mubr.msk.f32.mxu0 %vm2445_vm0, %v2446_v1  ;;  %v1202_v38 = vrot.slane %v3410_v31, 1  ;;  %v1157_v8 = vrot.slane %v3410_v31, 6  ;;  %v1172_v29 = vrot.slane %v3410_v31, 7 }
 0x19c   : > { %v3433_v33 = vadd.f32 %v3203_v63, %v771_v25  ;;  %860 = vst [vmem:[%s3106_s24 + $0x10] sm:$0xff] %v771_v25  ;;  %v767_v40 = vmul.f32 %v521_v6, %v3214_v44  ;;  %v611_v57 = vpop.f32.mrb[6].mxu1  ;;  %v1854_v42 = vpop.f32.mrb[7].mxu0  ;;  %1990 = vmatprep.mubr.msk.f32.mxu1 %vm2445_vm0, %v2446_v1  ;;  %v1124_v22 = vsel %vm672_vm13, %v3947_v2, %v1117_v20 }
 0x19d   : > { %v1144_v63 = vsel %vm738_vm15, %v3946_v39, %v1137_v15  ;;  %v3452_v44 = vadd.f32 %v3227_v24, %v813_v46  ;;  %1640 = vst [vmem:[%s3106_s24 + $0x60] sm:$0xff] %v813_v46  ;;  %v809_v53 = vmul.f32 %v611_v57, %v3238_v36  ;;  %v1901_v32 = vpop.f32.mrb[7].mxu1  ;;  %v1209_v25 = vsel %vm672_vm13, %v3948_v50, %v1202_v38 }
 0x19e   : > { %v3460_v6 = vmul.f32 0.1125, %v1124_v22  ;;  %849 = vst [vmem:[%s3376_s13 + $0x10] sm:$0xff] %v3433_v33  ;;  %v772_v42 = vadd.f32 %v767_v40, %v3323_v11  ;;  %1944 = vmatmul.mubr.f32.gmra.mrb[14].mxu0 %v3433_v33  ;;  %v3466_v24 = vmul.f32 -0.004166667, %v1209_v25  ;;  %v1164_v36 = vsel %vm625_vm14, %v1156_v55, %v1157_v8 }
 0x19f   : > { %v3468_v46 = vmul.f32 -0.004166667, %v1144_v63  ;;  %1630 = vst [vmem:[%s3376_s13 + $0x38] sm:$0xff] %v3452_v44  ;;  %v814_v57 = vadd.f32 %v809_v53, %v3326_v37  ;;  %1991 = vmatmul.mubr.f32.gmra.mrb[14].mxu1 %v3452_v44  ;;  %v526_v11 = vpop.f32.mrb[8].mxu0  ;;  %1946 = vmatprep.mubr.msk.f32.mxu0 %vm2445_vm0, %v2446_v1  ;;  %v1167_v40 = vmul.f32 0.004166667, %v1164_v36  ;;  %v1179_v22 = vsel %vm641_vm12, %v1171_v59, %v1172_v29 }
 0x1a0   : > { %v1192_v63 = vmul.f32 0.1125, %v3410_v31  ;;  %v3490_v37 = vadd.f32 %v3259_v34, %v772_v42  ;;  %861 = vst [vmem:[%s3106_s24 + $0x18] sm:$0xff] %v772_v42  ;;  %v768_v53 = vmul.f32 %v526_v11, %v3262_v58  ;;  %v616_v32 = vpop.f32.mrb[8].mxu1  ;;  %v1857_v25 = vpop.f32.mrb[9].mxu0  ;;  %1993 = vmatprep.mubr.msk.f32.mxu1 %vm2445_vm0, %v2446_v1  ;;  %v1203_v39 = vrot.slane %v3452_v44, 1 }
 0x1a1   : > { %v1182_v36 = vmul.f32 -0.1125, %v1179_v22  ;;  %v3498_v2 = vadd.f32 %v3268_v7, %v814_v57  ;;  %1641 = vst [vmem:[%s3106_s24 + $0x68] sm:$0xff] %v814_v57  ;;  %v810_v50 = vmul.f32 %v616_v32, %v3271_v26  ;;  %v1904_v34 = vpop.f32.mrb[9].mxu1  ;;  %v1099_v58 = vsel %vm641_vm12, %v1091_v13, %v1092_v28 }
 0x1a2   : > { %v1107_v42 = vmul.f32 -0.1125, %v3399_v3  ;;  %850 = vst [vmem:[%s3376_s13 + $0x18] sm:$0xff] %v3490_v37  ;;  %v773_v11 = vadd.f32 %v768_v53, %v3331_v45  ;;  %1947 = vmatmul.mubr.f32.gmra.mrb[16].mxu0 %v3490_v37  ;;  %v1208_v26 = vsel %vm672_vm13, %v1202_v38, %v1203_v39  ;;  %v1102_v57 = vmul.f32 0.004166667, %v1099_v58  ;;  %v901_v34 = vld [vmem:[#allocation9 + $0x120] sm:$0xff] }
 0x1a3   : > { %v1187_v7 = vadd.f32 %v1182_v36, %v1167_v40  ;;  %1631 = vst [vmem:[%s3376_s13 + $0x40] sm:$0xff] %v3498_v2  ;;  %v815_v22 = vadd.f32 %v810_v50, %v3334_v0  ;;  %1994 = vmatmul.mubr.f32.gmra.mrb[16].mxu1 %v3498_v2  ;;  %1949 = vmatprep.mubr.msk.f32.mxu0 %vm2445_vm0, %v2446_v1  ;;  %v1212_v45 = vmul.f32 -0.004166667, %v1208_v26  ;;  %v1118_v40 = vrot.slane %v3433_v33, 1  ;;  %v889_v36 = vld [vmem:[#allocation9 + $0xd0] sm:$0xff] }
 0x1a4   : > { %v1138_v53 = vrot.slane %v3433_v33, 2  ;;  %v3526_v32 = vadd.f32 %v3276_v43, %v773_v11  ;;  %862 = vst [vmem:[%s3106_s24 + $0x20] sm:$0xff] %v773_v11  ;;  %1996 = vmatprep.mubr.msk.f32.mxu1 %vm2445_vm0, %v2446_v1  ;;  %v1112_v0 = vadd.f32 %v1107_v42, %v1102_v57  ;;  %v1158_v50 = vrot.slane %v3452_v44, 6 }
 0x1a5   : > { %v1197_v38 = vadd.f32 %v1192_v63, %v1187_v7  ;;  %v3533_v25 = vadd.f32 %v3281_v47, %v815_v22  ;;  %1642 = vst [vmem:[%s3106_s24 + $0x70] sm:$0xff] %v815_v22  ;;  %v1123_v43 = vsel %vm672_vm13, %v1117_v20, %v1118_v40  ;;  %v1173_v47 = vrot.slane %v3452_v44, 7 }
 0x1a6   : > { %v1143_v1 = vsel %vm738_vm15, %v1137_v15, %v1138_v53  ;;  %851 = vst [vmem:[%s3376_s13 + $0x20] sm:$0xff] %v3526_v32  ;;  %1950 = vmatmul.mubr.f32.gmra.mrb[18].mxu0 %v3526_v32  ;;  %v3949_v63 = vrot.slane %v3526_v32, 7  ;;  %v1127_v42 = vmul.f32 0.1125, %v1123_v43  ;;  %v1163_v15 = vsel %vm625_vm14, %v1157_v8, %v1158_v50 }
 0x1a7   : > { %v1217_v58 = vadd.f32 %v1212_v45, %v1197_v38  ;;  %v1147_v11 = vmul.f32 -0.004166667, %v1143_v1  ;;  %1632 = vst [vmem:[%s3376_s13 + $0x48] sm:$0xff] %v3533_v25  ;;  %1997 = vmatmul.mubr.f32.gmra.mrb[18].mxu1 %v3533_v25  ;;  %v3950_v20 = vrot.slane %v3533_v25, 6  ;;  %v1175_v7 = vrot.slane %v3533_v25, 7  ;;  %v3594_v1 = vld [vmem:[#allocation9 + $0x148] sm:$0xff] }
 0x1a8   : > { %v1178_v26 = vsel %vm641_vm12, %v1172_v29, %v1173_v47  ;;  %v1100_v57 = vsel %vm641_vm12, %v3949_v63, %v1091_v13  ;;  %v1132_v38 = vadd.f32 %v1127_v42, %v1112_v0  ;;  %v1168_v29 = vmul.f32 0.004166667, %v1163_v15 }
 0x1a9   : > { %v1254_v22 = vmul.f32 %v1217_v58, %v889_v36  ;;  %v1296_v45 = vmul.f32 %v1217_v58, %v901_v34  ;;  %v1165_v31 = vsel %vm625_vm14, %v3950_v20, %v1156_v55  ;;  %v1180_v8 = vsel %vm641_vm12, %v1175_v7, %v1171_v59 }
 0x1aa   : > { %v1101_v13 = vmul.f32 0.004166667, %v1100_v57  ;;  %v1166_v36 = vmul.f32 0.004166667, %v1165_v31  ;;  %v1181_v34 = vmul.f32 -0.1125, %v1180_v8  ;;  %v1152_v58 = vadd.f32 %v1147_v11, %v1132_v38 }
 0x1ab   : > { %v3589_v0 = vadd.f32 %v1254_v22, %v3337_v52  ;;  %v3592_v43 = vadd.f32 %v1296_v45, %v3345_v27  ;;  %v1183_v42 = vmul.f32 -0.1125, %v1178_v26  ;;  %v1193_v63 = vmul.f32 0.1125, %v3452_v44  ;;  %v3609_v22 = vld [vmem:[#allocation9 + $0x140] sm:$0xff]  ;;  %v888_v31 = vld [vmem:[#allocation9 + $0xc8] sm:$0xff] }
 0x1ac   : > { %v1111_v55 = vadd.f32 %v3395_v10, %v1101_v13  ;;  %v1186_v20 = vadd.f32 %v1181_v34, %v1166_v36  ;;  %v1204_v59 = vrot.slane %v3498_v2, 1  ;;  %v1093_v52 = vrot.slane %v3433_v33, 7  ;;  %v900_v8 = vld [vmem:[#allocation9 + $0x118] sm:$0xff]  ;;  %v902_v34 = vld [vmem:[#allocation9 + $0x128] sm:$0xff] }
 0x1ad   : > { %1699 = vst [vmem:[%s3106_s24 + $0x148] sm:$0xff] %v3589_v0  ;;  %1709 = vst [vmem:[%s3106_s24 + $0x198] sm:$0xff] %v3592_v43  ;;  %v1108_v27 = vmul.f32 -0.1125, %v3433_v33  ;;  %v1317_v57 = vmul.f32 %v1152_v58, %v3594_v1  ;;  %v1188_v10 = vadd.f32 %v1183_v42, %v1168_v29  ;;  %v1119_v11 = vrot.slane %v3490_v37, 1  ;;  %v890_v36 = vld [vmem:[#allocation9 + $0xd8] sm:$0xff] }
 0x1ae   : > { %v1131_v15 = vadd.f32 %v3460_v6, %v1111_v55  ;;  %v1196_v26 = vadd.f32 %v3407_v30, %v1186_v20  ;;  %v1207_v45 = vsel %vm672_vm13, %v1203_v39, %v1204_v59  ;;  %v1098_v6 = vsel %vm641_vm12, %v1092_v28, %v1093_v52 }
 0x1af   : > { %v1139_v38 = vrot.slane %v3490_v37, 2  ;;  %v3624_v20 = vadd.f32 %v1317_v57, %v3348_v23  ;;  %v1198_v13 = vadd.f32 %v1193_v63, %v1188_v10  ;;  %v1213_v29 = vmul.f32 -0.004166667, %v1207_v45 }
 0x1b0   : > { %v1151_v30 = vadd.f32 %v3468_v46, %v1131_v15  ;;  %v1216_v39 = vadd.f32 %v3466_v24, %v1196_v26  ;;  %v1103_v3 = vmul.f32 0.004166667, %v1098_v6  ;;  %v1122_v28 = vsel %vm672_vm13, %v1118_v40, %v1119_v11 }
 0x1b1   : > { %v1142_v46 = vsel %vm738_vm15, %v1138_v53, %v1139_v38  ;;  %1714 = vst [vmem:[%s3106_s24 + $0x1c0] sm:$0xff] %v3624_v20  ;;  %v1218_v63 = vadd.f32 %v1213_v29, %v1198_v13  ;;  %v1128_v24 = vmul.f32 0.1125, %v1122_v28  ;;  %v1159_v57 = vrot.slane %v3498_v2, 6  ;;  %v1671_v28 = vld [vmem:[%s2733_s19 + $0x1d0] sm:$0xff] }
 0x1b2   : > { %v1316_v23 = vmul.f32 %v1151_v30, %v3609_v22  ;;  %v1148_v55 = vmul.f32 -0.004166667, %v1142_v46  ;;  %v1253_v58 = vmul.f32 %v1216_v39, %v888_v31  ;;  %v1295_v42 = vmul.f32 %v1216_v39, %v900_v8 }
 0x1b3   : > { %v1113_v15 = vadd.f32 %v1108_v27, %v1103_v3  ;;  %v1255_v10 = vmul.f32 %v1218_v63, %v890_v36  ;;  %v1297_v53 = vmul.f32 %v1218_v63, %v902_v34  ;;  %v1174_v26 = vrot.slane %v3498_v2, 7  ;;  %v1666_v3 = vld [vmem:[%s2733_s19 + $0x1a8] sm:$0xff] }
 0x1b4   : > { %v3640_v40 = vadd.f32 %v1316_v23, %v3361_v16  ;;  %v3644_v45 = vadd.f32 %v1253_v58, %v3342_v21  ;;  %v3647_v6 = vadd.f32 %v1295_v42, %v3358_v41  ;;  %v1162_v31 = vsel %vm625_vm14, %v1158_v50, %v1159_v57  ;;  %v3661_v21 = vld [vmem:[#allocation9 + $0x150] sm:$0xff] }
 0x1b5   : > { %v1133_v27 = vadd.f32 %v1128_v24, %v1113_v15  ;;  %v3656_v16 = vadd.f32 %v1255_v10, %v3369_v4  ;;  %v3659_v8 = vadd.f32 %v1297_v53, %v3372_v61  ;;  %v1169_v30 = vmul.f32 0.004166667, %v1162_v31  ;;  %v891_v10 = vld [vmem:[#allocation9 + $0xe0] sm:$0xff] }
 0x1b6   : > { %1713 = vst [vmem:[%s3106_s24 + $0x1b8] sm:$0xff] %v3640_v40  ;;  %v1177_v41 = vsel %vm641_vm12, %v1173_v47, %v1174_v26  ;;  %1698 = vst [vmem:[%s3106_s24 + $0x140] sm:$0xff] %v3644_v45  ;;  %v1194_v13 = vmul.f32 0.1125, %v3498_v2  ;;  %v1205_v61 = vrot.slane %v3533_v25, 1  ;;  %v1094_v44 = vrot.slane %v3490_v37, 7 }
 0x1b7   : > { %1708 = vst [vmem:[%s3106_s24 + $0x190] sm:$0xff] %v3647_v6  ;;  %v1153_v50 = vadd.f32 %v1148_v55, %v1133_v27  ;;  %v1184_v4 = vmul.f32 -0.1125, %v1177_v41  ;;  %1700 = vst [vmem:[%s3106_s24 + $0x150] sm:$0xff] %v3656_v16  ;;  %v1109_v47 = vmul.f32 -0.1125, %v3490_v37  ;;  %v1293_v53 = vmul.f32 %v1666_v3, %v3186_v56 }
 0x1b8   : > { %1710 = vst [vmem:[%s3106_s24 + $0x1a0] sm:$0xff] %v3659_v8  ;;  %v1120_v29 = vrot.slane %v3526_v32, 1  ;;  %v1140_v39 = vrot.slane %v3526_v32, 2  ;;  %v1206_v2 = vsel %vm672_vm13, %v1204_v59, %v1205_v61  ;;  %v3978_v46 = vrot.slane %v3533_v25, 6 }
 0x1b9   : > { %v1318_v36 = vmul.f32 %v1153_v50, %v3661_v21  ;;  %v1189_v34 = vadd.f32 %v1184_v4, %v1169_v30  ;;  %v1214_v63 = vmul.f32 -0.004166667, %v1206_v2  ;;  %v1097_v37 = vsel %vm641_vm12, %v1093_v52, %v1094_v44  ;;  %v1657_v2 = vld [vmem:[%s2733_s19 + $0x160] sm:$0xff] }
 0x1ba   : > { %v1161_v23 = vsel %vm625_vm14, %v1159_v57, %v3978_v46  ;;  %v1121_v24 = vsel %vm672_vm13, %v1119_v11, %v1120_v29  ;;  %v1141_v59 = vsel %vm738_vm15, %v1139_v38, %v1140_v39  ;;  %v1104_v42 = vmul.f32 0.004166667, %v1097_v37  ;;  %v903_v57 = vld [vmem:[#allocation9 + $0x130] sm:$0xff] }
 0x1bb   : > { %v3699_v55 = vadd.f32 %v1318_v36, %v3383_v49  ;;  %v1199_v58 = vadd.f32 %v1194_v13, %v1189_v34  ;;  %v1129_v15 = vmul.f32 0.1125, %v1121_v24  ;;  %v1314_v33 = vmul.f32 %v1671_v28, %v3297_v48  ;;  %v3722_v34 = vld [vmem:[#allocation9 + $0x158] sm:$0xff] }
 0x1bc   : > { %v1170_v27 = vmul.f32 0.004166667, %v1161_v23  ;;  %v1176_v52 = vsel %vm641_vm12, %v1174_v26, %v1175_v7  ;;  %v1114_v11 = vadd.f32 %v1109_v47, %v1104_v42  ;;  %v3979_v31 = vrot.slane %v3364_v60, 1 }
 0x1bd   : > { %1715 = vst [vmem:[%s3106_s24 + $0x1c8] sm:$0xff] %v3699_v55  ;;  %v1219_v49 = vadd.f32 %v1214_v63, %v1199_v58  ;;  %v1185_v38 = vmul.f32 -0.1125, %v1176_v52  ;;  %v1149_v41 = vmul.f32 -0.004166667, %v1141_v59  ;;  %v3980_v4 = vrot.slane %v3526_v32, 7 }
 0x1be   : > { %v1210_v30 = vsel %vm672_vm13, %v1205_v61, %v3979_v31  ;;  %v1195_v50 = vmul.f32 0.1125, %v3533_v25  ;;  %v3981_v7 = vrot.slane %v3353_v35, 1  ;;  %v1134_v60 = vadd.f32 %v1129_v15, %v1114_v11  ;;  %v1667_v25 = vld [vmem:[%s2733_s19 + $0x1b0] sm:$0xff]  ;;  %v904_v58 = vld [vmem:[#allocation9 + $0x138] sm:$0xff] }
 0x1bf   : > { %v1096_v13 = vsel %vm641_vm12, %v1094_v44, %v3980_v4  ;;  %v1256_v47 = vmul.f32 %v1219_v49, %v891_v10  ;;  %v1298_v36 = vmul.f32 %v1219_v49, %v903_v57  ;;  %v1190_v61 = vadd.f32 %v1185_v38, %v1170_v27  ;;  %v892_v59 = vld [vmem:[#allocation9 + $0xe8] sm:$0xff]  ;;  %v3746_v49 = vld [vmem:[#allocation9 + $0x160] sm:$0xff] }
 0x1c0   : > { %v1125_v26 = vsel %vm672_vm13, %v1120_v29, %v3981_v7  ;;  %v1215_v3 = vmul.f32 -0.004166667, %v1210_v30  ;;  %v1105_v28 = vmul.f32 0.004166667, %v1096_v13  ;;  %v1110_v46 = vmul.f32 -0.1125, %v3526_v32 }
 0x1c1   : > { %v3982_v44 = vrot.slane %v3353_v35, 2  ;;  %v3732_v23 = vadd.f32 %v1256_v47, %v3386_v62  ;;  %v3734_v63 = vadd.f32 %v1298_v36, %v1293_v53  ;;  %v1154_v37 = vadd.f32 %v1149_v41, %v1134_v60 }
 0x1c2   : > { %v1200_v24 = vadd.f32 %v1195_v50, %v1190_v61  ;;  %v1115_v42 = vadd.f32 %v1110_v46, %v1105_v28  ;;  %v1130_v15 = vmul.f32 0.1125, %v1125_v26  ;;  %v1252_v62 = vmul.f32 %v1657_v2, %v3246_v51 }
 0x1c3   : > { %v1145_v29 = vsel %vm738_vm15, %v1140_v39, %v3982_v44  ;;  %1701 = vst [vmem:[%s3106_s24 + $0x158] sm:$0xff] %v3732_v23  ;;  %1711 = vst [vmem:[%s3106_s24 + $0x1a8] sm:$0xff] %v3734_v63  ;;  %v1319_v17 = vmul.f32 %v1154_v37, %v3722_v34  ;;  %v1294_v32 = vmul.f32 %v1667_v25, %v3246_v51  ;;  %v1672_v39 = vld [vmem:[%s2733_s19 + $0x1d8] sm:$0xff] }
 0x1c4   : > { %v1220_v35 = vadd.f32 %v1215_v3, %v1200_v24  ;;  %v1135_v10 = vadd.f32 %v1130_v15, %v1115_v42  ;;  %v1150_v57 = vmul.f32 -0.004166667, %v1145_v29  ;;  %v1315_v38 = vmul.f32 %v1672_v39, %v3302_v14 }
 0x1c5   : > { %v3744_v53 = vadd.f32 %v1319_v17, %v1314_v33 }
 0x1c6   : > { %v1257_v27 = vmul.f32 %v1220_v35, %v892_v59  ;;  %v1299_v52 = vmul.f32 %v1220_v35, %v904_v58  ;;  %v1155_v11 = vadd.f32 %v1150_v57, %v1135_v10 }
 0x1c7   : > { %1716 = vst [vmem:[%s3106_s24 + $0x1d0] sm:$0xff] %v3744_v53 }
 0x1c8   : > { %v3751_v31 = vadd.f32 %v1257_v27, %v1252_v62  ;;  %v3753_v30 = vadd.f32 %v1299_v52, %v1294_v32  ;;  %v1320_v41 = vmul.f32 %v1155_v11, %v3746_v49 }
 0x1ca   : > { %1702 = vst [vmem:[%s3106_s24 + $0x160] sm:$0xff] %v3751_v31  ;;  %1712 = vst [vmem:[%s3106_s24 + $0x1b0] sm:$0xff] %v3753_v30  ;;  %v3760_v33 = vadd.f32 %v1320_v41, %v1315_v38 }
 0x1cc   : > { %1717 = vst [vmem:[%s3106_s24 + $0x1d8] sm:$0xff] %v3760_v33 }
 0x1cd   : > { %2339 = shalt.err (!%p2336_p1)
}
 0x1ce   : > { %s2340_s0 = scalar_lea.hbm %s3771_s11, 1280  ;;  %s2344_s18 = scalar_lea.hbm %s3940_s8, 5120 }
 0x1cf   : > { %p2341_p5 = scmp.ne.s32.totalorder %s3771_s11, %s2340_s0  ;;  %p2345_p4 = scmp.lt.u32.totalorder %s3771_s11, %s3940_s8 }
 0x1d0   : > { %p2346_p12 = scmp.lt.u32.totalorder %s2344_s18, %s2340_s0  ;;  %p2348_p9 = scmp.lt.u32.totalorder %s2340_s0, %s3771_s11 }
 0x1d1   : > { %p2342_p2 = pnand %p2341_p5, %p2676_p11 }
 0x1d2   : > { %p2347_p6 = por %p2346_p12, %p2345_p4 }
 0x1d3   : > { %p2343_p0 = pneg %p2342_p2 }
 0x1d4   : > { %p2349_p13 = por %p2348_p9, %p2347_p6 }
 0x1d6   : > { %p2350_p3 = pnand %p2349_p13, %p2343_p0 }
 0x1d8   : > { %2353 = shalt.err (!%p2350_p3)
}
 0x1d9   : > { %s2448_s15 = smov 128   ;;  %s2449_s12 = smov 8   ;;  %v1648_v50 = vld [vmem:[%s2733_s19 + $0x118] sm:$0xff]  ;;  %v1658_v4 = vld [vmem:[%s2733_s19 + $0x168] sm:$0xff]  ;;  %v1673_v13 = vld [vmem:[%s2733_s19 + $0x1e0] sm:$0xff] }
 0x1da   : > { %2116 = dma.vmem_to_hbm [thread:$0]  (%p2676_p11), %s3766_s20, 1280, %s3771_s11, %s1422_s23, %s2448_s15, %s2448_s15, %s2449_s12   ;;  %v882_v7 = vld [vmem:[#allocation9 + $0xa0] sm:$0xff]  ;;  %v894_v26 = vld [vmem:[#allocation9 + $0xf0] sm:$0xff]  ;;  %v1227_v47 = vmul.f32 %v1648_v50, %v3285_v5  ;;  %v1269_v36 = vmul.f32 %v1658_v4, %v3285_v5  ;;  %v1332_v61 = vmul.f32 %v1673_v13, %v3056_v9  ;;  %v883_v59 = vld [vmem:[#allocation9 + $0xa8] sm:$0xff] }
 0x1db   : > { %v1649_v2 = vld [vmem:[%s2733_s19 + $0x120] sm:$0xff]  ;;  %v1659_v25 = vld [vmem:[%s2733_s19 + $0x170] sm:$0xff]  ;;  %v1674_v29 = vld [vmem:[%s2733_s19 + $0x1e8] sm:$0xff]  ;;  %s1435_s20 = sshll.u32 %s3106_s24, 4  ;;  %s1417_s21 = scalar_lea.sflag [#allocation8], %s2727_s25  ;;  %s3884_s20 = int_to_ptr.vmem [resolvable:$true] %s1435_s20 }
 0x1dc   : > { %v895_v58 = vld [vmem:[#allocation9 + $0xf8] sm:$0xff]  ;;  %v1228_v9 = vmul.f32 %v1649_v2, %v3289_v18  ;;  %v1270_v15 = vmul.f32 %v1659_v25, %v3289_v18  ;;  %v1333_v62 = vmul.f32 %v1674_v29, %v3094_v12  ;;  %v1660_v39 = vld [vmem:[%s2733_s19 + $0x178] sm:$0xff]  ;;  %v1675_v11 = vld [vmem:[%s2733_s19 + $0x1f0] sm:$0xff]  ;;  %s2354_s17 = scalar_lea.vmem %s3884_s20, 8320  ;;  %s2450_s0 = smov [#allocation14]  }
 0x1dd   : > { %v1650_v32 = vld [vmem:[%s2733_s19 + $0x128] sm:$0xff]  ;;  %v897_v29 = vld [vmem:[#allocation9 + $0x108] sm:$0xff]  ;;  %p2355_p7 = scmp.ne.s32.totalorder %s3884_s20, %s2354_s17  ;;  %s2358_s29 = sshll.u32 %s2450_s0, 4  ;;  %s2359_s29 = int_to_ptr.vmem [resolvable:$false] %s2358_s29 }
 0x1de   : > { %v896_v50 = vld [vmem:[#allocation9 + $0x100] sm:$0xff]  ;;  %v1229_v13 = vmul.f32 %v1650_v32, %v3293_v19  ;;  %v1677_v32 = vld [vmem:[%s2733_s19 + $0x200] sm:$0xff]  ;;  %s2360_s13 = scalar_lea.vmem %s2359_s29, 16640  ;;  %p2361_p1 = scmp.lt.s32.totalorder %s3884_s20, %s2359_s29 }
 0x1df   : > { %p2356_p8 = pnand %p2355_p7, %p2676_p11  ;;  %p2362_p5 = scmp.lt.s32.totalorder %s2360_s13, %s2354_s17 }
 0x1e1   : > { %p2357_p10 = pneg %p2356_p8  ;;  %p2363_p2 = por %p2362_p5, %p2361_p1 }
 0x1e3   : > { %p2364_p0 = pnand %p2363_p2, %p2357_p10 }
 0x269   : > { %v977_v60 = vpop.f32.mrb[10].mxu0 }
 0x26a   : > { %v1232_v3 = vmul.f32 %v977_v60, %v882_v7  ;;  %v1274_v28 = vmul.f32 %v977_v60, %v894_v26  ;;  %v1067_v46 = vpop.f32.mrb[10].mxu1  ;;  %v1939_v44 = vpop.f32.mrb[11].mxu0  ;;  %v1271_v7 = vmul.f32 %v1660_v39, %v3293_v19 }
 0x26b   : > { %v1337_v37 = vmul.f32 %v1067_v46, %v3609_v22  ;;  %v1986_v24 = vpop.f32.mrb[11].mxu1 }
 0x26c   : > { %v1237_v5 = vadd.f32 %v1232_v3, %v1227_v47  ;;  %v1279_v42 = vadd.f32 %v1274_v28, %v1269_v36  ;;  %v1651_v47 = vld [vmem:[%s2733_s19 + $0x130] sm:$0xff]  ;;  %v1661_v36 = vld [vmem:[%s2733_s19 + $0x180] sm:$0xff]  ;;  %v1676_v28 = vld [vmem:[%s2733_s19 + $0x1f8] sm:$0xff] }
 0x26d   : > { %v1342_v17 = vadd.f32 %v1337_v37, %v1332_v61  ;;  %v982_v35 = vpop.f32.mrb[12].mxu0  ;;  %v1230_v24 = vmul.f32 %v1651_v47, %v3297_v48 }
 0x26e   : > { %v1347_v22 = vadd.f32 %v3644_v45, %v1237_v5  ;;  %v1358_v10 = vadd.f32 %v3647_v6, %v1279_v42  ;;  %1693 = vst [vmem:[%s3106_s24 + $0x118] sm:$0xff] %v1237_v5  ;;  %1703 = vst [vmem:[%s3106_s24 + $0x168] sm:$0xff] %v1279_v42  ;;  %v1233_v57 = vmul.f32 %v982_v35, %v883_v59  ;;  %v1072_v52 = vpop.f32.mrb[12].mxu1  ;;  %v1942_v18 = vpop.f32.mrb[13].mxu0  ;;  %v884_v45 = vld [vmem:[#allocation9 + $0xb0] sm:$0xff]  ;;  %v1662_v42 = vld [vmem:[%s2733_s19 + $0x188] sm:$0xff] }
 0x26f   : > { %v1275_v27 = vmul.f32 %v982_v35, %v895_v58  ;;  %v1369_v38 = vadd.f32 %v1342_v17, %v3640_v40  ;;  %1718 = vst [vmem:[%s3106_s24 + $0x1e0] sm:$0xff] %v1342_v17  ;;  %v1338_v12 = vmul.f32 %v1072_v52, %v3594_v1  ;;  %v1989_v41 = vpop.f32.mrb[13].mxu1  ;;  %v1334_v1 = vmul.f32 %v1675_v11, %v3131_v54  ;;  %v1652_v5 = vld [vmem:[%s2733_s19 + $0x138] sm:$0xff]  ;;  %s2099_s19 = smul.u32 8320, %s2544_s2 }
 0x270   : > { %1678 = vst [vmem:[%s3106_s24 + $0xa0] sm:$0xff] %v1347_v22  ;;  %1683 = vst [vmem:[%s3106_s24 + $0xc8] sm:$0xff] %v1358_v10  ;;  %v1238_v6 = vadd.f32 %v1233_v57, %v1228_v9  ;;  %v1272_v59 = vmul.f32 %v1661_v36, %v3297_v48  ;;  %v898_v10 = vld [vmem:[#allocation9 + $0x110] sm:$0xff]  ;;  %v1273_v52 = vmul.f32 %v1662_v42, %v3302_v14 }
 0x271   : > { %v1280_v4 = vadd.f32 %v1275_v27, %v1270_v15  ;;  %1688 = vst [vmem:[%s3106_s24 + $0xf0] sm:$0xff] %v1369_v38  ;;  %v1343_v40 = vadd.f32 %v1338_v12, %v1333_v62  ;;  %v987_v26 = vpop.f32.mrb[14].mxu0  ;;  %v1231_v27 = vmul.f32 %v1652_v5, %v3302_v14  ;;  %s3882_s23 = scalar_lea.hbm %s3939_s7, %s2099_s19 }
 0x272   : > { %v1348_v60 = vadd.f32 %v3589_v0, %v1238_v6  ;;  %1694 = vst [vmem:[%s3106_s24 + $0x120] sm:$0xff] %v1238_v6  ;;  %v1234_v2 = vmul.f32 %v987_v26, %v884_v45  ;;  %v1276_v25 = vmul.f32 %v987_v26, %v896_v50  ;;  %v1077_v19 = vpop.f32.mrb[14].mxu1  ;;  %v1945_v3 = vpop.f32.mrb[15].mxu0  ;;  %v885_v0 = vld [vmem:[#allocation9 + $0xb8] sm:$0xff] }
 0x273   : > { %v1359_v61 = vadd.f32 %v3592_v43, %v1280_v4  ;;  %1704 = vst [vmem:[%s3106_s24 + $0x170] sm:$0xff] %v1280_v4  ;;  %v1370_v46 = vadd.f32 %v1343_v40, %v3624_v20  ;;  %1719 = vst [vmem:[%s3106_s24 + $0x1e8] sm:$0xff] %v1343_v40  ;;  %v1339_v54 = vmul.f32 %v1077_v19, %v3661_v21  ;;  %v1992_v44 = vpop.f32.mrb[15].mxu1 }
 0x274   : > { %1679 = vst [vmem:[%s3106_s24 + $0xa8] sm:$0xff] %v1348_v60  ;;  %v1239_v43 = vadd.f32 %v1234_v2, %v1229_v13  ;;  %v1281_v37 = vadd.f32 %v1276_v25, %v1271_v7  ;;  %v1335_v21 = vmul.f32 %v1676_v28, %v3186_v56 }
 0x275   : > { %1684 = vst [vmem:[%s3106_s24 + $0xd0] sm:$0xff] %v1359_v61  ;;  %1689 = vst [vmem:[%s3106_s24 + $0xf8] sm:$0xff] %v1370_v46  ;;  %v1344_v20 = vadd.f32 %v1339_v54, %v1334_v1  ;;  %v992_v58 = vpop.f32.mrb[16].mxu0 }
 0x276   : > { %v1349_v9 = vadd.f32 %v3656_v16, %v1239_v43  ;;  %v1360_v15 = vadd.f32 %v3659_v8, %v1281_v37  ;;  %1695 = vst [vmem:[%s3106_s24 + $0x128] sm:$0xff] %v1239_v43  ;;  %1705 = vst [vmem:[%s3106_s24 + $0x178] sm:$0xff] %v1281_v37  ;;  %v1235_v17 = vmul.f32 %v992_v58, %v885_v0  ;;  %v1082_v48 = vpop.f32.mrb[16].mxu1  ;;  %v1948_v62 = vpop.f32.mrb[17].mxu0  ;;  %v886_v16 = vld [vmem:[#allocation9 + $0xc0] sm:$0xff] }
 0x277   : > { %v1277_v35 = vmul.f32 %v992_v58, %v897_v29  ;;  %v1371_v39 = vadd.f32 %v1344_v20, %v3699_v55  ;;  %1720 = vst [vmem:[%s3106_s24 + $0x1f0] sm:$0xff] %v1344_v20  ;;  %v1340_v56 = vmul.f32 %v1082_v48, %v3722_v34  ;;  %v1995_v22 = vpop.f32.mrb[17].mxu1  ;;  %v1336_v34 = vmul.f32 %v1677_v32, %v3246_v51 }
 0x278   : > { %1680 = vst [vmem:[%s3106_s24 + $0xb0] sm:$0xff] %v1349_v9  ;;  %1685 = vst [vmem:[%s3106_s24 + $0xd8] sm:$0xff] %v1360_v15  ;;  %v1240_v8 = vadd.f32 %v1235_v17, %v1230_v24 }
 0x279   : > { %v1282_v57 = vadd.f32 %v1277_v35, %v1272_v59  ;;  %1690 = vst [vmem:[%s3106_s24 + $0x100] sm:$0xff] %v1371_v39  ;;  %v1345_v55 = vadd.f32 %v1340_v56, %v1335_v21  ;;  %v997_v18 = vpop.f32.mrb[18].mxu0 }
 0x27a   : > { %v1350_v11 = vadd.f32 %v3732_v23, %v1240_v8  ;;  %1696 = vst [vmem:[%s3106_s24 + $0x130] sm:$0xff] %v1240_v8  ;;  %v1236_v12 = vmul.f32 %v997_v18, %v886_v16  ;;  %v1278_v41 = vmul.f32 %v997_v18, %v898_v10  ;;  %v1087_v45 = vpop.f32.mrb[18].mxu1  ;;  %v1951_v14 = vpop.f32.mrb[19].mxu0 }
 0x27b   : > { %v1361_v38 = vadd.f32 %v3734_v63, %v1282_v57  ;;  %1706 = vst [vmem:[%s3106_s24 + $0x180] sm:$0xff] %v1282_v57  ;;  %v1372_v50 = vadd.f32 %v1345_v55, %v3744_v53  ;;  %1721 = vst [vmem:[%s3106_s24 + $0x1f8] sm:$0xff] %v1345_v55  ;;  %v1341_v51 = vmul.f32 %v1087_v45, %v3746_v49  ;;  %v1998_v6 = vpop.f32.mrb[19].mxu1 }
 0x27c   : > { %1681 = vst [vmem:[%s3106_s24 + $0xb8] sm:$0xff] %v1350_v11  ;;  %v1241_v23 = vadd.f32 %v1236_v12, %v1231_v27  ;;  %v1283_v63 = vadd.f32 %v1278_v41, %v1273_v52 }
 0x27d   : > { %1686 = vst [vmem:[%s3106_s24 + $0xe0] sm:$0xff] %v1361_v38  ;;  %1691 = vst [vmem:[%s3106_s24 + $0x108] sm:$0xff] %v1372_v50  ;;  %v1346_v4 = vadd.f32 %v1341_v51, %v1336_v34 }
 0x27e   : > { %v1351_v53 = vadd.f32 %v3751_v31, %v1241_v23  ;;  %v1362_v13 = vadd.f32 %v3753_v30, %v1283_v63  ;;  %1697 = vst [vmem:[%s3106_s24 + $0x138] sm:$0xff] %v1241_v23  ;;  %1707 = vst [vmem:[%s3106_s24 + $0x188] sm:$0xff] %v1283_v63 }
 0x27f   : > { %v1373_v49 = vadd.f32 %v1346_v4, %v3760_v33  ;;  %1722 = vst [vmem:[%s3106_s24 + $0x200] sm:$0xff] %v1346_v4 }
 0x280   : > { %1682 = vst [vmem:[%s3106_s24 + $0xc0] sm:$0xff] %v1351_v53  ;;  %1687 = vst [vmem:[%s3106_s24 + $0xe8] sm:$0xff] %v1362_v13 }
 0x281   : > { %1692 = vst [vmem:[%s3106_s24 + $0x110] sm:$0xff] %v1373_v49 }
 0x282   : > { %2367 = shalt.err (!%p2364_p0)
}
 0x283   : > { %s2368_s24 = scalar_lea.hbm %s3882_s23, 8320  ;;  %s2372_s10 = scalar_lea.hbm %s3939_s7, 33280 }
 0x284   : > { %p2369_p4 = scmp.ne.s32.totalorder %s3882_s23, %s2368_s24  ;;  %p2373_p9 = scmp.lt.u32.totalorder %s3882_s23, %s3939_s7 }
 0x285   : > { %p2374_p13 = scmp.lt.u32.totalorder %s2372_s10, %s2368_s24  ;;  %p2376_p7 = scmp.lt.u32.totalorder %s2368_s24, %s3882_s23 }
 0x286   : > { %p2370_p12 = pnand %p2369_p4, %p2676_p11 }
 0x287   : > { %p2375_p3 = por %p2374_p13, %p2373_p9 }
 0x288   : > { %p2371_p6 = pneg %p2370_p12 }
 0x289   : > { %p2377_p8 = por %p2376_p7, %p2375_p3 }
 0x28b   : > { %p2378_p10 = pnand %p2377_p8, %p2371_p6 }
 0x28d   : > { %2381 = shalt.err (!%p2378_p10)
}
 0x28e   : > { %2115 = dma.vmem_to_hbm [thread:$0]  (%p2676_p11), %s3884_s20, 8320, %s3882_s23, %s1417_s21, %s2448_s15, %s2448_s15, %s2449_s12  }
 0x28f PF: > { %p2147_p1 = scmp.ge.s32.totalorder %s2434_s28, 2  ;;  %s1466_s11 = sand.u32 1, %s2422_s1  }
 0x290   : > { %p3983_p5 = scmp.ne.s32.totalorder %s3952_s9, 0  ;;  %s1467_s17 = scalar_lea.sflag [#allocation8], %s1466_s11 }
 0x292   : > { %p2134_p2 = pnand %p2147_p1, %p3983_p5 }
 0x294   : > { %2413 = dma.done.wait (!%p2134_p2), %s1467_s17, 8320  }
 0x295   : > { %2415 = vsyncadd (!%p2134_p2), %s1467_s17, 4294958976  ;;  %s1476_s16 = scalar_lea.sflag [#allocation16], %s1466_s11 }
 0x296   : > { %2417 = dma.done.wait (!%p2134_p2), %s1476_s16, 1280  }
 0x297   : > { %2419 = vsyncadd (!%p2134_p2), %s1476_s16, 4294966016  ;;  %p34_p11 = scmp.ge.s32.totalorder %s2662_s22, 6   ;;  %s3984_s1 = smov %s2426_s26 }
 0x298   : > { %s3985_s26 = smov %s2430_s27  ;;  %s3986_s27 = smov %s2672_s14 }
 0x299   : > { %s3987_s28 = smov %s2662_s22  ;;  %36 = sbr.rel (!%p34_p11) target bundleno = 28 (0x1c), region = 143 }
 0x2a0   :  { %1481 = vsyncpa [#allocation7], 1 }
 0x2a1   :  { %1483 = vsyncpa [#allocation7 + $0x1], 1 }
 0x2a2   :  { %1484 = vsyncpa [#allocation10], 1 }
 0x2a3   :  { %1485 = vsyncpa [#allocation13], 1 }
 0x2a4   :  { %1486 = vsyncpa [#allocation8], 1 }
 0x2a5   :  { %1488 = vsyncpa [#allocation8 + $0x1], 1 }
 0x2a6   :  { %1489 = vsyncpa [#allocation16], 1 }
 0x2a7   :  { %1491 = vsyncpa [#allocation16 + $0x1], 1 }

</bundles_post_ra>
